<compile_context>
chip_gen: v6e
topology: v6e:2x2x1
jax: 0.10.0
libtpu: 0.0.40
codegen_flags: <defaults>
</compile_context>

<pallas_src>
import math

import jax
import jax.numpy as jnp
import numpy as np
from jax.experimental import pallas as pl
from jax.experimental.pallas import tpu as pltpu  # noqa: F401 (no scratch needed anymore)

INPUT_DIM = 14
HIDDEN_DIM = 64
LAYER_DIM = 3
OUTPUT_DIM = 1


# --------------------------------------------------------------------------
# Fused Pallas kernel: 3 LSTM layers (wavefront) + FC head, VMEM-resident.
# --------------------------------------------------------------------------
def _lstm_fused_kernel(x_ref,
                       wih0_ref, whh0_ref, b0_ref,
                       wcat1_ref, b1_ref,
                       wcat2_ref, b2_ref,
                       fcw_ref, fcb_ref,
                       out_ref):
    TB = x_ref.shape[0]                 # (T*B, D) time-major, flattened
    H = whh0_ref.shape[0]
    B = out_ref.shape[0]
    T = TB // B
    L = LAYER_DIM                       # 3 (static)

    whh0 = whh0_ref[...]
    wcat1 = wcat1_ref[...]
    wcat2 = wcat2_ref[...]
    b1 = b1_ref[...]
    b2 = b2_ref[...]

    # Layer-0 input projection hoisted over all timesteps: one (T*B, D) x
    # (D, 4H) matmul instead of T tiny ones.
    xproj0 = jnp.dot(x_ref[...], wih0_ref[...],
                     preferred_element_type=jnp.float32) + b0_ref[...]

    def cell(gates, c_prev):
        # Kernel gate-column order is (f, i, o, g):
        #   * sigmoid only on the first 3H lanes, tanh only on the last H
        #   * f, o at lane offset 0 and i, g at offset H, so the products
        #     f*c, i*g, o*tanh(c) are lane-aligned (no XLU rotates).
        sg = jax.nn.sigmoid(gates[:, :3 * H])
        g_g = jnp.tanh(gates[:, 3 * H:])
        f_g = sg[:, 0 * H:1 * H]
        i_g = sg[:, 1 * H:2 * H]
        o_g = sg[:, 2 * H:3 * H]
        c_new = f_g * c_prev + i_g * g_g
        h_new = o_g * jnp.tanh(c_new)
        return h_new, c_new

    zeros = jnp.zeros((B, H), jnp.float32)
    h = [zeros, zeros, zeros]           # per-layer h_{t-1}, register-carried
    c = [zeros, zeros, zeros]           # per-layer c_{t-1}, register-carried

    # Fully-unrolled wavefront: wave w -> layer l does timestep (w - l).
    # Emit layers 2, 1, 0 within a wave: layer l reads h[l-1] (step w-l,
    # produced last wave) before layer l-1 overwrites it this wave.
    for wave in range(T + L - 1):
        t2 = wave - 2
        if 0 <= t2 < T:
            lhs = jnp.concatenate([h[1], h[2]], axis=-1)          # (B, 2H)
            gates = jnp.dot(lhs, wcat2,
                            preferred_element_type=jnp.float32) + b2
            h[2], c[2] = cell(gates, c[2])

        t1 = wave - 1
        if 0 <= t1 < T:
            lhs = jnp.concatenate([h[0], h[1]], axis=-1)          # (B, 2H)
            gates = jnp.dot(lhs, wcat1,
                            preferred_element_type=jnp.float32) + b1
            h[1], c[1] = cell(gates, c[1])

        t0 = wave
        if 0 <= t0 < T:
            gates = xproj0[t0 * B:(t0 + 1) * B, :] + jnp.dot(
                h[0], whh0, preferred_element_type=jnp.float32)
            h[0], c[0] = cell(gates, c[0])

    # FC head (O = 1): VPU multiply + lane reduction; avoids an N=1 MXU
    # push/pop round-trip at the very end of the dependency chain.
    out_ref[...] = jnp.sum(h[2] * fcw_ref[...], axis=-1,
                           keepdims=True) + fcb_ref[...]


def _full_spec(arr):
    """Whole-array block resident in VMEM (grid-less call)."""
    return pl.BlockSpec(arr.shape, lambda: (0,) * arr.ndim)


@jax.jit
def lstm_model_forward(kparams, x_btd):
    """x_btd: (B, T, D) float32 -> (B, OUTPUT_DIM) float32."""
    B, T, D = x_btd.shape
    O = OUTPUT_DIM

    # batch_first -> time-major, flattened to (T*B, D) so the layer-0 input
    # projection is a single matmul inside the kernel.
    x_seq = jnp.transpose(x_btd, (1, 0, 2)).reshape(T * B, D)

    operands = (x_seq,
                kparams["w_ih0"], kparams["w_hh0"], kparams["b0"],
                kparams["w_cat1"], kparams["b1"],
                kparams["w_cat2"], kparams["b2"],
                kparams["fc_w_row"], kparams["fc_b"])

    return pl.pallas_call(
        _lstm_fused_kernel,
        out_shape=jax.ShapeDtypeStruct((B, O), jnp.float32),
        in_specs=[_full_spec(a) for a in operands],
        out_specs=pl.BlockSpec((B, O), lambda: (0, 0)),
    )(*operands)


# --------------------------------------------------------------------------
# Parameter init (torch layout) + packing into the kernel layout.
# --------------------------------------------------------------------------
def init_raw_params(key, input_dim=INPUT_DIM, hidden_dim=HIDDEN_DIM,
                    layer_dim=LAYER_DIM, output_dim=OUTPUT_DIM):
    """Raw params mirroring torch: W_ih (4H, d_in), W_hh (4H, H), b_ih, b_hh
    in torch gate order (i, f, g, o); U(-1/sqrt(H), 1/sqrt(H)) init."""
    k = 1.0 / math.sqrt(hidden_dim)
    raw = {"lstm": []}
    for layer in range(layer_dim):
        d_in = input_dim if layer == 0 else hidden_dim
        key, k1, k2, k3, k4 = jax.random.split(key, 5)
        raw["lstm"].append({
            "w_ih": jax.random.uniform(k1, (4 * hidden_dim, d_in),
                                       jnp.float32, -k, k),
            "w_hh": jax.random.uniform(k2, (4 * hidden_dim, hidden_dim),
                                       jnp.float32, -k, k),
            "b_ih": jax.random.uniform(k3, (4 * hidden_dim,), jnp.float32, -k, k),
            "b_hh": jax.random.uniform(k4, (4 * hidden_dim,), jnp.float32, -k, k),
        })
    key, k5, k6 = jax.random.split(key, 3)
    raw["fc_w"] = jax.random.uniform(k5, (output_dim, hidden_dim),
                                     jnp.float32, -k, k)
    raw["fc_b"] = jax.random.uniform(k6, (output_dim,), jnp.float32, -k, k)
    return raw


def _reorder_ifgo_to_figo(w_t, H):
    """Permute the 4H (last) axis from torch order (i, f, g, o) to the
    kernel order (f, i, o, g).  Applied consistently to W_ih^T, W_hh^T and
    the combined bias of every layer."""
    i = w_t[..., 0 * H:1 * H]
    f = w_t[..., 1 * H:2 * H]
    g = w_t[..., 2 * H:3 * H]
    o = w_t[..., 3 * H:4 * H]
    return jnp.concatenate([f, i, o, g], axis=-1)


def pack_kernel_params(raw, hidden_dim=HIDDEN_DIM):
    """Pre-transpose / permute / K-concatenate weights into the kernel layout
    (all lane-dense, 4H = 256 = 2*128)."""
    H = hidden_dim
    layers = raw["lstm"]
    packed = {}

    # Layer 0: W_ih / W_hh kept separate (input projection is hoisted over T).
    l0 = layers[0]
    packed["w_ih0"] = _reorder_ifgo_to_figo(l0["w_ih"].T, H)           # (D, 4H)
    packed["w_hh0"] = _reorder_ifgo_to_figo(l0["w_hh"].T, H)           # (H, 4H)
    packed["b0"] = _reorder_ifgo_to_figo(
        (l0["b_ih"] + l0["b_hh"]).reshape(1, -1), H)                   # (1, 4H)

    # Layers 1/2: K-concatenated [W_ih^T ; W_hh^T] -> (2H, 4H) = (128, 256)
    # so each wavefront step is a single MXU matmul.
    for idx in (1, 2):
        l = layers[idx]
        w_ih_t = _reorder_ifgo_to_figo(l["w_ih"].T, H)
        w_hh_t = _reorder_ifgo_to_figo(l["w_hh"].T, H)
        packed[f"w_cat{idx}"] = jnp.concatenate([w_ih_t, w_hh_t], axis=0)
        packed[f"b{idx}"] = _reorder_ifgo_to_figo(
            (l["b_ih"] + l["b_hh"]).reshape(1, -1), H)

    # FC head stored as a (1, H) row for the VPU multiply+reduce (O == 1).
    packed["fc_w_row"] = raw["fc_w"].reshape(1, H)
    packed["fc_b"] = raw["fc_b"].reshape(1, -1)                        # (1, O)
    return packed


# --------------------------------------------------------------------------
# Pure-JAX reference in torch layout / gate order (correctness check only).
# --------------------------------------------------------------------------
def lstm_model_reference(raw, x_btd):
    H = HIDDEN_DIM
    seq = jnp.transpose(x_btd, (1, 0, 2))                              # (T, B, D)
    for lp in raw["lstm"]:
        w_ih_t = lp["w_ih"].T
        w_hh_t = lp["w_hh"].T
        b = (lp["b_ih"] + lp["b_hh"]).reshape(1, -1)

        def step(carry, x_t, w_ih_t=w_ih_t, w_hh_t=w_hh_t, b=b):
            h, c = carry
            gates = x_t @ w_ih_t + h @ w_hh_t + b
            i = jax.nn.sigmoid(gates[:, 0 * H:1 * H])
            f = jax.nn.sigmoid(gates[:, 1 * H:2 * H])
            g = jnp.tanh(gates[:, 2 * H:3 * H])
            o = jax.nn.sigmoid(gates[:, 3 * H:4 * H])
            c = f * c + i * g
            h = o * jnp.tanh(c)
            return (h, c), h

        B = seq.shape[1]
        init = (jnp.zeros((B, H), jnp.float32), jnp.zeros((B, H), jnp.float32))
        _, seq = jax.lax.scan(step, init, seq)
    return seq[-1] @ raw["fc_w"].T + raw["fc_b"].reshape(1, -1)


# --------------------------------------------------------------------------
if __name__ == "__main__":
    key = jax.random.PRNGKey(0)
    key, pkey, xkey = jax.random.split(key, 3)

    batch, seq_len = 2, 8
    raw_params = init_raw_params(pkey)
    kparams = pack_kernel_params(raw_params)
    x = jax.random.normal(xkey, (batch, seq_len, INPUT_DIM), dtype=jnp.float32)

    out = jax.block_until_ready(lstm_model_forward(kparams, x))
    assert out.shape == (batch, OUTPUT_DIM), out.shape

    ref = jax.block_until_ready(lstm_model_reference(raw_params, x))
    np.testing.assert_allclose(np.asarray(out), np.asarray(ref),
                               rtol=1e-4, atol=2e-4)

    print("KERNEL_OK")
</pallas_src>

<mosaic_0001>
module attributes {stable_mosaic.version = 11 : i64} {
  func.func @_lstm_fused_kernel(%arg0: memref<16x14xf32, #tpu.memory_space<vmem>>, %arg1: memref<14x256xf32, #tpu.memory_space<vmem>>, %arg2: memref<64x256xf32, #tpu.memory_space<vmem>>, %arg3: memref<1x256xf32, #tpu.memory_space<vmem>>, %arg4: memref<128x256xf32, #tpu.memory_space<vmem>>, %arg5: memref<1x256xf32, #tpu.memory_space<vmem>>, %arg6: memref<128x256xf32, #tpu.memory_space<vmem>>, %arg7: memref<1x256xf32, #tpu.memory_space<vmem>>, %arg8: memref<1x64xf32, #tpu.memory_space<vmem>>, %arg9: memref<1x1xf32, #tpu.memory_space<vmem>>, %arg10: memref<2x1xf32, #tpu.memory_space<vmem>>) attributes {dimension_semantics = [], scalar_prefetch = 0 : i64, scratch_operands = 0 : i64, tpu.core_type = #tpu.core_type<tc>} {
    %c0 = arith.constant 0 : index
    %c0_0 = arith.constant 0 : index
    %0 = vector.load %arg2[%c0, %c0_0] : memref<64x256xf32, #tpu.memory_space<vmem>>, vector<64x256xf32>
    %c0_1 = arith.constant 0 : index
    %c0_2 = arith.constant 0 : index
    %1 = vector.load %arg4[%c0_1, %c0_2] : memref<128x256xf32, #tpu.memory_space<vmem>>, vector<128x256xf32>
    %c0_3 = arith.constant 0 : index
    %c0_4 = arith.constant 0 : index
    %2 = vector.load %arg6[%c0_3, %c0_4] : memref<128x256xf32, #tpu.memory_space<vmem>>, vector<128x256xf32>
    %c0_5 = arith.constant 0 : index
    %c0_6 = arith.constant 0 : index
    %3 = vector.load %arg5[%c0_5, %c0_6] : memref<1x256xf32, #tpu.memory_space<vmem>>, vector<1x256xf32>
    %c0_7 = arith.constant 0 : index
    %c0_8 = arith.constant 0 : index
    %4 = vector.load %arg7[%c0_7, %c0_8] : memref<1x256xf32, #tpu.memory_space<vmem>>, vector<1x256xf32>
    %c0_9 = arith.constant 0 : index
    %c0_10 = arith.constant 0 : index
    %5 = vector.load %arg0[%c0_9, %c0_10] : memref<16x14xf32, #tpu.memory_space<vmem>>, vector<16x14xf32>
    %c0_11 = arith.constant 0 : index
    %c0_12 = arith.constant 0 : index
    %6 = vector.load %arg1[%c0_11, %c0_12] : memref<14x256xf32, #tpu.memory_space<vmem>>, vector<14x256xf32>
    %cst = arith.constant dense<0.000000e+00> : vector<16x256xf32>
    %7 = tpu.matmul %5, %6, %cst {dimension_numbers = #tpu.dot_dimension_numbers<[1], [0], [0], [1], [0, 0, 1, 1], [], []>} : vector<16x14xf32>, vector<14x256xf32>, vector<16x256xf32> -> vector<16x256xf32>
    %c0_13 = arith.constant 0 : index
    %c0_14 = arith.constant 0 : index
    %8 = vector.load %arg3[%c0_13, %c0_14] : memref<1x256xf32, #tpu.memory_space<vmem>>, vector<1x256xf32>
    %9 = vector.broadcast %8 : vector<1x256xf32> to vector<16x256xf32>
    %10 = arith.addf %7, %9 : vector<16x256xf32>
    %cst_15 = arith.constant 0.000000e+00 : f32
    %11 = vector.broadcast %cst_15 : f32 to vector<2x64xf32>
    %12 = vector.extract_strided_slice %10 {offsets = [0, 0], sizes = [2, 256], strides = [1, 1]} : vector<16x256xf32> to vector<2x256xf32>
    %cst_16 = arith.constant dense<0.000000e+00> : vector<2x256xf32>
    %13 = tpu.matmul %11, %0, %cst_16 {dimension_numbers = #tpu.dot_dimension_numbers<[1], [0], [0], [1], [0, 0, 1, 1], [], []>} : vector<2x64xf32>, vector<64x256xf32>, vector<2x256xf32> -> vector<2x256xf32>
    %14 = arith.addf %12, %13 : vector<2x256xf32>
    %15 = vector.extract_strided_slice %14 {offsets = [0, 0], sizes = [2, 192], strides = [1, 1]} : vector<2x256xf32> to vector<2x192xf32>
    %16 = arith.negf %15 : vector<2x192xf32>
    %17 = math.exp %16 : vector<2x192xf32>
    %cst_17 = arith.constant 1.000000e+00 : f32
    %18 = vector.broadcast %cst_17 : f32 to vector<2x192xf32>
    %19 = arith.addf %18, %17 : vector<2x192xf32>
    %20 = arith.divf %18, %19 : vector<2x192xf32>
    %21 = vector.extract_strided_slice %14 {offsets = [0, 192], sizes = [2, 64], strides = [1, 1]} : vector<2x256xf32> to vector<2x64xf32>
    %22 = math.tanh %21 : vector<2x64xf32>
    %23 = vector.extract_strided_slice %20 {offsets = [0, 0], sizes = [2, 64], strides = [1, 1]} : vector<2x192xf32> to vector<2x64xf32>
    %24 = vector.extract_strided_slice %20 {offsets = [0, 64], sizes = [2, 64], strides = [1, 1]} : vector<2x192xf32> to vector<2x64xf32>
    %25 = vector.extract_strided_slice %20 {offsets = [0, 128], sizes = [2, 64], strides = [1, 1]} : vector<2x192xf32> to vector<2x64xf32>
    %26 = arith.mulf %23, %11 : vector<2x64xf32>
    %27 = arith.mulf %24, %22 : vector<2x64xf32>
    %28 = arith.addf %26, %27 : vector<2x64xf32>
    %29 = math.tanh %28 : vector<2x64xf32>
    %30 = arith.mulf %25, %29 : vector<2x64xf32>
    %31 = tpu.concatenate %30, %11 in 1 : vector<2x64xf32>, vector<2x64xf32> -> vector<2x128xf32>
    %cst_18 = arith.constant dense<0.000000e+00> : vector<2x256xf32>
    %32 = tpu.matmul %31, %1, %cst_18 {dimension_numbers = #tpu.dot_dimension_numbers<[1], [0], [0], [1], [0, 0, 1, 1], [], []>} : vector<2x128xf32>, vector<128x256xf32>, vector<2x256xf32> -> vector<2x256xf32>
    %33 = vector.broadcast %3 : vector<1x256xf32> to vector<2x256xf32>
    %34 = arith.addf %32, %33 : vector<2x256xf32>
    %35 = vector.extract_strided_slice %34 {offsets = [0, 0], sizes = [2, 192], strides = [1, 1]} : vector<2x256xf32> to vector<2x192xf32>
    %36 = arith.negf %35 : vector<2x192xf32>
    %37 = math.exp %36 : vector<2x192xf32>
    %cst_19 = arith.constant 1.000000e+00 : f32
    %38 = vector.broadcast %cst_19 : f32 to vector<2x192xf32>
    %39 = arith.addf %38, %37 : vector<2x192xf32>
    %40 = arith.divf %38, %39 : vector<2x192xf32>
    %41 = vector.extract_strided_slice %34 {offsets = [0, 192], sizes = [2, 64], strides = [1, 1]} : vector<2x256xf32> to vector<2x64xf32>
    %42 = math.tanh %41 : vector<2x64xf32>
    %43 = vector.extract_strided_slice %40 {offsets = [0, 0], sizes = [2, 64], strides = [1, 1]} : vector<2x192xf32> to vector<2x64xf32>
    %44 = vector.extract_strided_slice %40 {offsets = [0, 64], sizes = [2, 64], strides = [1, 1]} : vector<2x192xf32> to vector<2x64xf32>
    %45 = vector.extract_strided_slice %40 {offsets = [0, 128], sizes = [2, 64], strides = [1, 1]} : vector<2x192xf32> to vector<2x64xf32>
    %46 = arith.mulf %43, %11 : vector<2x64xf32>
    %47 = arith.mulf %44, %42 : vector<2x64xf32>
    %48 = arith.addf %46, %47 : vector<2x64xf32>
    %49 = math.tanh %48 : vector<2x64xf32>
    %50 = arith.mulf %45, %49 : vector<2x64xf32>
    %51 = vector.extract_strided_slice %10 {offsets = [2, 0], sizes = [2, 256], strides = [1, 1]} : vector<16x256xf32> to vector<2x256xf32>
    %cst_20 = arith.constant dense<0.000000e+00> : vector<2x256xf32>
    %52 = tpu.matmul %30, %0, %cst_20 {dimension_numbers = #tpu.dot_dimension_numbers<[1], [0], [0], [1], [0, 0, 1, 1], [], []>} : vector<2x64xf32>, vector<64x256xf32>, vector<2x256xf32> -> vector<2x256xf32>
    %53 = arith.addf %51, %52 : vector<2x256xf32>
    %54 = vector.extract_strided_slice %53 {offsets = [0, 0], sizes = [2, 192], strides = [1, 1]} : vector<2x256xf32> to vector<2x192xf32>
    %55 = arith.negf %54 : vector<2x192xf32>
    %56 = math.exp %55 : vector<2x192xf32>
    %cst_21 = arith.constant 1.000000e+00 : f32
    %57 = vector.broadcast %cst_21 : f32 to vector<2x192xf32>
    %58 = arith.addf %57, %56 : vector<2x192xf32>
    %59 = arith.divf %57, %58 : vector<2x192xf32>
    %60 = vector.extract_strided_slice %53 {offsets = [0, 192], sizes = [2, 64], strides = [1, 1]} : vector<2x256xf32> to vector<2x64xf32>
    %61 = math.tanh %60 : vector<2x64xf32>
    %62 = vector.extract_strided_slice %59 {offsets = [0, 0], sizes = [2, 64], strides = [1, 1]} : vector<2x192xf32> to vector<2x64xf32>
    %63 = vector.extract_strided_slice %59 {offsets = [0, 64], sizes = [2, 64], strides = [1, 1]} : vector<2x192xf32> to vector<2x64xf32>
    %64 = vector.extract_strided_slice %59 {offsets = [0, 128], sizes = [2, 64], strides = [1, 1]} : vector<2x192xf32> to vector<2x64xf32>
    %65 = arith.mulf %62, %28 : vector<2x64xf32>
    %66 = arith.mulf %63, %61 : vector<2x64xf32>
    %67 = arith.addf %65, %66 : vector<2x64xf32>
    %68 = math.tanh %67 : vector<2x64xf32>
    %69 = arith.mulf %64, %68 : vector<2x64xf32>
    %70 = tpu.concatenate %50, %11 in 1 : vector<2x64xf32>, vector<2x64xf32> -> vector<2x128xf32>
    %cst_22 = arith.constant dense<0.000000e+00> : vector<2x256xf32>
    %71 = tpu.matmul %70, %2, %cst_22 {dimension_numbers = #tpu.dot_dimension_numbers<[1], [0], [0], [1], [0, 0, 1, 1], [], []>} : vector<2x128xf32>, vector<128x256xf32>, vector<2x256xf32> -> vector<2x256xf32>
    %72 = vector.broadcast %4 : vector<1x256xf32> to vector<2x256xf32>
    %73 = arith.addf %71, %72 : vector<2x256xf32>
    %74 = vector.extract_strided_slice %73 {offsets = [0, 0], sizes = [2, 192], strides = [1, 1]} : vector<2x256xf32> to vector<2x192xf32>
    %75 = arith.negf %74 : vector<2x192xf32>
    %76 = math.exp %75 : vector<2x192xf32>
    %cst_23 = arith.constant 1.000000e+00 : f32
    %77 = vector.broadcast %cst_23 : f32 to vector<2x192xf32>
    %78 = arith.addf %77, %76 : vector<2x192xf32>
    %79 = arith.divf %77, %78 : vector<2x192xf32>
    %80 = vector.extract_strided_slice %73 {offsets = [0, 192], sizes = [2, 64], strides = [1, 1]} : vector<2x256xf32> to vector<2x64xf32>
    %81 = math.tanh %80 : vector<2x64xf32>
    %82 = vector.extract_strided_slice %79 {offsets = [0, 0], sizes = [2, 64], strides = [1, 1]} : vector<2x192xf32> to vector<2x64xf32>
    %83 = vector.extract_strided_slice %79 {offsets = [0, 64], sizes = [2, 64], strides = [1, 1]} : vector<2x192xf32> to vector<2x64xf32>
    %84 = vector.extract_strided_slice %79 {offsets = [0, 128], sizes = [2, 64], strides = [1, 1]} : vector<2x192xf32> to vector<2x64xf32>
    %85 = arith.mulf %82, %11 : vector<2x64xf32>
    %86 = arith.mulf %83, %81 : vector<2x64xf32>
    %87 = arith.addf %85, %86 : vector<2x64xf32>
    %88 = math.tanh %87 : vector<2x64xf32>
    %89 = arith.mulf %84, %88 : vector<2x64xf32>
    %90 = tpu.concatenate %69, %50 in 1 : vector<2x64xf32>, vector<2x64xf32> -> vector<2x128xf32>
    %cst_24 = arith.constant dense<0.000000e+00> : vector<2x256xf32>
    %91 = tpu.matmul %90, %1, %cst_24 {dimension_numbers = #tpu.dot_dimension_numbers<[1], [0], [0], [1], [0, 0, 1, 1], [], []>} : vector<2x128xf32>, vector<128x256xf32>, vector<2x256xf32> -> vector<2x256xf32>
    %92 = vector.broadcast %3 : vector<1x256xf32> to vector<2x256xf32>
    %93 = arith.addf %91, %92 : vector<2x256xf32>
    %94 = vector.extract_strided_slice %93 {offsets = [0, 0], sizes = [2, 192], strides = [1, 1]} : vector<2x256xf32> to vector<2x192xf32>
    %95 = arith.negf %94 : vector<2x192xf32>
    %96 = math.exp %95 : vector<2x192xf32>
    %cst_25 = arith.constant 1.000000e+00 : f32
    %97 = vector.broadcast %cst_25 : f32 to vector<2x192xf32>
    %98 = arith.addf %97, %96 : vector<2x192xf32>
    %99 = arith.divf %97, %98 : vector<2x192xf32>
    %100 = vector.extract_strided_slice %93 {offsets = [0, 192], sizes = [2, 64], strides = [1, 1]} : vector<2x256xf32> to vector<2x64xf32>
    %101 = math.tanh %100 : vector<2x64xf32>
    %102 = vector.extract_strided_slice %99 {offsets = [0, 0], sizes = [2, 64], strides = [1, 1]} : vector<2x192xf32> to vector<2x64xf32>
    %103 = vector.extract_strided_slice %99 {offsets = [0, 64], sizes = [2, 64], strides = [1, 1]} : vector<2x192xf32> to vector<2x64xf32>
    %104 = vector.extract_strided_slice %99 {offsets = [0, 128], sizes = [2, 64], strides = [1, 1]} : vector<2x192xf32> to vector<2x64xf32>
    %105 = arith.mulf %102, %48 : vector<2x64xf32>
    %106 = arith.mulf %103, %101 : vector<2x64xf32>
    %107 = arith.addf %105, %106 : vector<2x64xf32>
    %108 = math.tanh %107 : vector<2x64xf32>
    %109 = arith.mulf %104, %108 : vector<2x64xf32>
    %110 = vector.extract_strided_slice %10 {offsets = [4, 0], sizes = [2, 256], strides = [1, 1]} : vector<16x256xf32> to vector<2x256xf32>
    %cst_26 = arith.constant dense<0.000000e+00> : vector<2x256xf32>
    %111 = tpu.matmul %69, %0, %cst_26 {dimension_numbers = #tpu.dot_dimension_numbers<[1], [0], [0], [1], [0, 0, 1, 1], [], []>} : vector<2x64xf32>, vector<64x256xf32>, vector<2x256xf32> -> vector<2x256xf32>
    %112 = arith.addf %110, %111 : vector<2x256xf32>
    %113 = vector.extract_strided_slice %112 {offsets = [0, 0], sizes = [2, 192], strides = [1, 1]} : vector<2x256xf32> to vector<2x192xf32>
    %114 = arith.negf %113 : vector<2x192xf32>
    %115 = math.exp %114 : vector<2x192xf32>
    %cst_27 = arith.constant 1.000000e+00 : f32
    %116 = vector.broadcast %cst_27 : f32 to vector<2x192xf32>
    %117 = arith.addf %116, %115 : vector<2x192xf32>
    %118 = arith.divf %116, %117 : vector<2x192xf32>
    %119 = vector.extract_strided_slice %112 {offsets = [0, 192], sizes = [2, 64], strides = [1, 1]} : vector<2x256xf32> to vector<2x64xf32>
    %120 = math.tanh %119 : vector<2x64xf32>
    %121 = vector.extract_strided_slice %118 {offsets = [0, 0], sizes = [2, 64], strides = [1, 1]} : vector<2x192xf32> to vector<2x64xf32>
    %122 = vector.extract_strided_slice %118 {offsets = [0, 64], sizes = [2, 64], strides = [1, 1]} : vector<2x192xf32> to vector<2x64xf32>
    %123 = vector.extract_strided_slice %118 {offsets = [0, 128], sizes = [2, 64], strides = [1, 1]} : vector<2x192xf32> to vector<2x64xf32>
    %124 = arith.mulf %121, %67 : vector<2x64xf32>
    %125 = arith.mulf %122, %120 : vector<2x64xf32>
    %126 = arith.addf %124, %125 : vector<2x64xf32>
    %127 = math.tanh %126 : vector<2x64xf32>
    %128 = arith.mulf %123, %127 : vector<2x64xf32>
    %129 = tpu.concatenate %109, %89 in 1 : vector<2x64xf32>, vector<2x64xf32> -> vector<2x128xf32>
    %cst_28 = arith.constant dense<0.000000e+00> : vector<2x256xf32>
    %130 = tpu.matmul %129, %2, %cst_28 {dimension_numbers = #tpu.dot_dimension_numbers<[1], [0], [0], [1], [0, 0, 1, 1], [], []>} : vector<2x128xf32>, vector<128x256xf32>, vector<2x256xf32> -> vector<2x256xf32>
    %131 = vector.broadcast %4 : vector<1x256xf32> to vector<2x256xf32>
    %132 = arith.addf %130, %131 : vector<2x256xf32>
    %133 = vector.extract_strided_slice %132 {offsets = [0, 0], sizes = [2, 192], strides = [1, 1]} : vector<2x256xf32> to vector<2x192xf32>
    %134 = arith.negf %133 : vector<2x192xf32>
    %135 = math.exp %134 : vector<2x192xf32>
    %cst_29 = arith.constant 1.000000e+00 : f32
    %136 = vector.broadcast %cst_29 : f32 to vector<2x192xf32>
    %137 = arith.addf %136, %135 : vector<2x192xf32>
    %138 = arith.divf %136, %137 : vector<2x192xf32>
    %139 = vector.extract_strided_slice %132 {offsets = [0, 192], sizes = [2, 64], strides = [1, 1]} : vector<2x256xf32> to vector<2x64xf32>
    %140 = math.tanh %139 : vector<2x64xf32>
    %141 = vector.extract_strided_slice %138 {offsets = [0, 0], sizes = [2, 64], strides = [1, 1]} : vector<2x192xf32> to vector<2x64xf32>
    %142 = vector.extract_strided_slice %138 {offsets = [0, 64], sizes = [2, 64], strides = [1, 1]} : vector<2x192xf32> to vector<2x64xf32>
    %143 = vector.extract_strided_slice %138 {offsets = [0, 128], sizes = [2, 64], strides = [1, 1]} : vector<2x192xf32> to vector<2x64xf32>
    %144 = arith.mulf %141, %87 : vector<2x64xf32>
    %145 = arith.mulf %142, %140 : vector<2x64xf32>
    %146 = arith.addf %144, %145 : vector<2x64xf32>
    %147 = math.tanh %146 : vector<2x64xf32>
    %148 = arith.mulf %143, %147 : vector<2x64xf32>
    %149 = tpu.concatenate %128, %109 in 1 : vector<2x64xf32>, vector<2x64xf32> -> vector<2x128xf32>
    %cst_30 = arith.constant dense<0.000000e+00> : vector<2x256xf32>
    %150 = tpu.matmul %149, %1, %cst_30 {dimension_numbers = #tpu.dot_dimension_numbers<[1], [0], [0], [1], [0, 0, 1, 1], [], []>} : vector<2x128xf32>, vector<128x256xf32>, vector<2x256xf32> -> vector<2x256xf32>
    %151 = vector.broadcast %3 : vector<1x256xf32> to vector<2x256xf32>
    %152 = arith.addf %150, %151 : vector<2x256xf32>
    %153 = vector.extract_strided_slice %152 {offsets = [0, 0], sizes = [2, 192], strides = [1, 1]} : vector<2x256xf32> to vector<2x192xf32>
    %154 = arith.negf %153 : vector<2x192xf32>
    %155 = math.exp %154 : vector<2x192xf32>
    %cst_31 = arith.constant 1.000000e+00 : f32
    %156 = vector.broadcast %cst_31 : f32 to vector<2x192xf32>
    %157 = arith.addf %156, %155 : vector<2x192xf32>
    %158 = arith.divf %156, %157 : vector<2x192xf32>
    %159 = vector.extract_strided_slice %152 {offsets = [0, 192], sizes = [2, 64], strides = [1, 1]} : vector<2x256xf32> to vector<2x64xf32>
    %160 = math.tanh %159 : vector<2x64xf32>
    %161 = vector.extract_strided_slice %158 {offsets = [0, 0], sizes = [2, 64], strides = [1, 1]} : vector<2x192xf32> to vector<2x64xf32>
    %162 = vector.extract_strided_slice %158 {offsets = [0, 64], sizes = [2, 64], strides = [1, 1]} : vector<2x192xf32> to vector<2x64xf32>
    %163 = vector.extract_strided_slice %158 {offsets = [0, 128], sizes = [2, 64], strides = [1, 1]} : vector<2x192xf32> to vector<2x64xf32>
    %164 = arith.mulf %161, %107 : vector<2x64xf32>
    %165 = arith.mulf %162, %160 : vector<2x64xf32>
    %166 = arith.addf %164, %165 : vector<2x64xf32>
    %167 = math.tanh %166 : vector<2x64xf32>
    %168 = arith.mulf %163, %167 : vector<2x64xf32>
    %169 = vector.extract_strided_slice %10 {offsets = [6, 0], sizes = [2, 256], strides = [1, 1]} : vector<16x256xf32> to vector<2x256xf32>
    %cst_32 = arith.constant dense<0.000000e+00> : vector<2x256xf32>
    %170 = tpu.matmul %128, %0, %cst_32 {dimension_numbers = #tpu.dot_dimension_numbers<[1], [0], [0], [1], [0, 0, 1, 1], [], []>} : vector<2x64xf32>, vector<64x256xf32>, vector<2x256xf32> -> vector<2x256xf32>
    %171 = arith.addf %169, %170 : vector<2x256xf32>
    %172 = vector.extract_strided_slice %171 {offsets = [0, 0], sizes = [2, 192], strides = [1, 1]} : vector<2x256xf32> to vector<2x192xf32>
    %173 = arith.negf %172 : vector<2x192xf32>
    %174 = math.exp %173 : vector<2x192xf32>
    %cst_33 = arith.constant 1.000000e+00 : f32
    %175 = vector.broadcast %cst_33 : f32 to vector<2x192xf32>
    %176 = arith.addf %175, %174 : vector<2x192xf32>
    %177 = arith.divf %175, %176 : vector<2x192xf32>
    %178 = vector.extract_strided_slice %171 {offsets = [0, 192], sizes = [2, 64], strides = [1, 1]} : vector<2x256xf32> to vector<2x64xf32>
    %179 = math.tanh %178 : vector<2x64xf32>
    %180 = vector.extract_strided_slice %177 {offsets = [0, 0], sizes = [2, 64], strides = [1, 1]} : vector<2x192xf32> to vector<2x64xf32>
    %181 = vector.extract_strided_slice %177 {offsets = [0, 64], sizes = [2, 64], strides = [1, 1]} : vector<2x192xf32> to vector<2x64xf32>
    %182 = vector.extract_strided_slice %177 {offsets = [0, 128], sizes = [2, 64], strides = [1, 1]} : vector<2x192xf32> to vector<2x64xf32>
    %183 = arith.mulf %180, %126 : vector<2x64xf32>
    %184 = arith.mulf %181, %179 : vector<2x64xf32>
    %185 = arith.addf %183, %184 : vector<2x64xf32>
    %186 = math.tanh %185 : vector<2x64xf32>
    %187 = arith.mulf %182, %186 : vector<2x64xf32>
    %188 = tpu.concatenate %168, %148 in 1 : vector<2x64xf32>, vector<2x64xf32> -> vector<2x128xf32>
    %cst_34 = arith.constant dense<0.000000e+00> : vector<2x256xf32>
    %189 = tpu.matmul %188, %2, %cst_34 {dimension_numbers = #tpu.dot_dimension_numbers<[1], [0], [0], [1], [0, 0, 1, 1], [], []>} : vector<2x128xf32>, vector<128x256xf32>, vector<2x256xf32> -> vector<2x256xf32>
    %190 = vector.broadcast %4 : vector<1x256xf32> to vector<2x256xf32>
    %191 = arith.addf %189, %190 : vector<2x256xf32>
    %192 = vector.extract_strided_slice %191 {offsets = [0, 0], sizes = [2, 192], strides = [1, 1]} : vector<2x256xf32> to vector<2x192xf32>
    %193 = arith.negf %192 : vector<2x192xf32>
    %194 = math.exp %193 : vector<2x192xf32>
    %cst_35 = arith.constant 1.000000e+00 : f32
    %195 = vector.broadcast %cst_35 : f32 to vector<2x192xf32>
    %196 = arith.addf %195, %194 : vector<2x192xf32>
    %197 = arith.divf %195, %196 : vector<2x192xf32>
    %198 = vector.extract_strided_slice %191 {offsets = [0, 192], sizes = [2, 64], strides = [1, 1]} : vector<2x256xf32> to vector<2x64xf32>
    %199 = math.tanh %198 : vector<2x64xf32>
    %200 = vector.extract_strided_slice %197 {offsets = [0, 0], sizes = [2, 64], strides = [1, 1]} : vector<2x192xf32> to vector<2x64xf32>
    %201 = vector.extract_strided_slice %197 {offsets = [0, 64], sizes = [2, 64], strides = [1, 1]} : vector<2x192xf32> to vector<2x64xf32>
    %202 = vector.extract_strided_slice %197 {offsets = [0, 128], sizes = [2, 64], strides = [1, 1]} : vector<2x192xf32> to vector<2x64xf32>
    %203 = arith.mulf %200, %146 : vector<2x64xf32>
    %204 = arith.mulf %201, %199 : vector<2x64xf32>
    %205 = arith.addf %203, %204 : vector<2x64xf32>
    %206 = math.tanh %205 : vector<2x64xf32>
    %207 = arith.mulf %202, %206 : vector<2x64xf32>
    %208 = tpu.concatenate %187, %168 in 1 : vector<2x64xf32>, vector<2x64xf32> -> vector<2x128xf32>
    %cst_36 = arith.constant dense<0.000000e+00> : vector<2x256xf32>
    %209 = tpu.matmul %208, %1, %cst_36 {dimension_numbers = #tpu.dot_dimension_numbers<[1], [0], [0], [1], [0, 0, 1, 1], [], []>} : vector<2x128xf32>, vector<128x256xf32>, vector<2x256xf32> -> vector<2x256xf32>
    %210 = vector.broadcast %3 : vector<1x256xf32> to vector<2x256xf32>
    %211 = arith.addf %209, %210 : vector<2x256xf32>
    %212 = vector.extract_strided_slice %211 {offsets = [0, 0], sizes = [2, 192], strides = [1, 1]} : vector<2x256xf32> to vector<2x192xf32>
    %213 = arith.negf %212 : vector<2x192xf32>
    %214 = math.exp %213 : vector<2x192xf32>
    %cst_37 = arith.constant 1.000000e+00 : f32
    %215 = vector.broadcast %cst_37 : f32 to vector<2x192xf32>
    %216 = arith.addf %215, %214 : vector<2x192xf32>
    %217 = arith.divf %215, %216 : vector<2x192xf32>
    %218 = vector.extract_strided_slice %211 {offsets = [0, 192], sizes = [2, 64], strides = [1, 1]} : vector<2x256xf32> to vector<2x64xf32>
    %219 = math.tanh %218 : vector<2x64xf32>
    %220 = vector.extract_strided_slice %217 {offsets = [0, 0], sizes = [2, 64], strides = [1, 1]} : vector<2x192xf32> to vector<2x64xf32>
    %221 = vector.extract_strided_slice %217 {offsets = [0, 64], sizes = [2, 64], strides = [1, 1]} : vector<2x192xf32> to vector<2x64xf32>
    %222 = vector.extract_strided_slice %217 {offsets = [0, 128], sizes = [2, 64], strides = [1, 1]} : vector<2x192xf32> to vector<2x64xf32>
    %223 = arith.mulf %220, %166 : vector<2x64xf32>
    %224 = arith.mulf %221, %219 : vector<2x64xf32>
    %225 = arith.addf %223, %224 : vector<2x64xf32>
    %226 = math.tanh %225 : vector<2x64xf32>
    %227 = arith.mulf %222, %226 : vector<2x64xf32>
    %228 = vector.extract_strided_slice %10 {offsets = [8, 0], sizes = [2, 256], strides = [1, 1]} : vector<16x256xf32> to vector<2x256xf32>
    %cst_38 = arith.constant dense<0.000000e+00> : vector<2x256xf32>
    %229 = tpu.matmul %187, %0, %cst_38 {dimension_numbers = #tpu.dot_dimension_numbers<[1], [0], [0], [1], [0, 0, 1, 1], [], []>} : vector<2x64xf32>, vector<64x256xf32>, vector<2x256xf32> -> vector<2x256xf32>
    %230 = arith.addf %228, %229 : vector<2x256xf32>
    %231 = vector.extract_strided_slice %230 {offsets = [0, 0], sizes = [2, 192], strides = [1, 1]} : vector<2x256xf32> to vector<2x192xf32>
    %232 = arith.negf %231 : vector<2x192xf32>
    %233 = math.exp %232 : vector<2x192xf32>
    %cst_39 = arith.constant 1.000000e+00 : f32
    %234 = vector.broadcast %cst_39 : f32 to vector<2x192xf32>
    %235 = arith.addf %234, %233 : vector<2x192xf32>
    %236 = arith.divf %234, %235 : vector<2x192xf32>
    %237 = vector.extract_strided_slice %230 {offsets = [0, 192], sizes = [2, 64], strides = [1, 1]} : vector<2x256xf32> to vector<2x64xf32>
    %238 = math.tanh %237 : vector<2x64xf32>
    %239 = vector.extract_strided_slice %236 {offsets = [0, 0], sizes = [2, 64], strides = [1, 1]} : vector<2x192xf32> to vector<2x64xf32>
    %240 = vector.extract_strided_slice %236 {offsets = [0, 64], sizes = [2, 64], strides = [1, 1]} : vector<2x192xf32> to vector<2x64xf32>
    %241 = vector.extract_strided_slice %236 {offsets = [0, 128], sizes = [2, 64], strides = [1, 1]} : vector<2x192xf32> to vector<2x64xf32>
    %242 = arith.mulf %239, %185 : vector<2x64xf32>
    %243 = arith.mulf %240, %238 : vector<2x64xf32>
    %244 = arith.addf %242, %243 : vector<2x64xf32>
    %245 = math.tanh %244 : vector<2x64xf32>
    %246 = arith.mulf %241, %245 : vector<2x64xf32>
    %247 = tpu.concatenate %227, %207 in 1 : vector<2x64xf32>, vector<2x64xf32> -> vector<2x128xf32>
    %cst_40 = arith.constant dense<0.000000e+00> : vector<2x256xf32>
    %248 = tpu.matmul %247, %2, %cst_40 {dimension_numbers = #tpu.dot_dimension_numbers<[1], [0], [0], [1], [0, 0, 1, 1], [], []>} : vector<2x128xf32>, vector<128x256xf32>, vector<2x256xf32> -> vector<2x256xf32>
    %249 = vector.broadcast %4 : vector<1x256xf32> to vector<2x256xf32>
    %250 = arith.addf %248, %249 : vector<2x256xf32>
    %251 = vector.extract_strided_slice %250 {offsets = [0, 0], sizes = [2, 192], strides = [1, 1]} : vector<2x256xf32> to vector<2x192xf32>
    %252 = arith.negf %251 : vector<2x192xf32>
    %253 = math.exp %252 : vector<2x192xf32>
    %cst_41 = arith.constant 1.000000e+00 : f32
    %254 = vector.broadcast %cst_41 : f32 to vector<2x192xf32>
    %255 = arith.addf %254, %253 : vector<2x192xf32>
    %256 = arith.divf %254, %255 : vector<2x192xf32>
    %257 = vector.extract_strided_slice %250 {offsets = [0, 192], sizes = [2, 64], strides = [1, 1]} : vector<2x256xf32> to vector<2x64xf32>
    %258 = math.tanh %257 : vector<2x64xf32>
    %259 = vector.extract_strided_slice %256 {offsets = [0, 0], sizes = [2, 64], strides = [1, 1]} : vector<2x192xf32> to vector<2x64xf32>
    %260 = vector.extract_strided_slice %256 {offsets = [0, 64], sizes = [2, 64], strides = [1, 1]} : vector<2x192xf32> to vector<2x64xf32>
    %261 = vector.extract_strided_slice %256 {offsets = [0, 128], sizes = [2, 64], strides = [1, 1]} : vector<2x192xf32> to vector<2x64xf32>
    %262 = arith.mulf %259, %205 : vector<2x64xf32>
    %263 = arith.mulf %260, %258 : vector<2x64xf32>
    %264 = arith.addf %262, %263 : vector<2x64xf32>
    %265 = math.tanh %264 : vector<2x64xf32>
    %266 = arith.mulf %261, %265 : vector<2x64xf32>
    %267 = tpu.concatenate %246, %227 in 1 : vector<2x64xf32>, vector<2x64xf32> -> vector<2x128xf32>
    %cst_42 = arith.constant dense<0.000000e+00> : vector<2x256xf32>
    %268 = tpu.matmul %267, %1, %cst_42 {dimension_numbers = #tpu.dot_dimension_numbers<[1], [0], [0], [1], [0, 0, 1, 1], [], []>} : vector<2x128xf32>, vector<128x256xf32>, vector<2x256xf32> -> vector<2x256xf32>
    %269 = vector.broadcast %3 : vector<1x256xf32> to vector<2x256xf32>
    %270 = arith.addf %268, %269 : vector<2x256xf32>
    %271 = vector.extract_strided_slice %270 {offsets = [0, 0], sizes = [2, 192], strides = [1, 1]} : vector<2x256xf32> to vector<2x192xf32>
    %272 = arith.negf %271 : vector<2x192xf32>
    %273 = math.exp %272 : vector<2x192xf32>
    %cst_43 = arith.constant 1.000000e+00 : f32
    %274 = vector.broadcast %cst_43 : f32 to vector<2x192xf32>
    %275 = arith.addf %274, %273 : vector<2x192xf32>
    %276 = arith.divf %274, %275 : vector<2x192xf32>
    %277 = vector.extract_strided_slice %270 {offsets = [0, 192], sizes = [2, 64], strides = [1, 1]} : vector<2x256xf32> to vector<2x64xf32>
    %278 = math.tanh %277 : vector<2x64xf32>
    %279 = vector.extract_strided_slice %276 {offsets = [0, 0], sizes = [2, 64], strides = [1, 1]} : vector<2x192xf32> to vector<2x64xf32>
    %280 = vector.extract_strided_slice %276 {offsets = [0, 64], sizes = [2, 64], strides = [1, 1]} : vector<2x192xf32> to vector<2x64xf32>
    %281 = vector.extract_strided_slice %276 {offsets = [0, 128], sizes = [2, 64], strides = [1, 1]} : vector<2x192xf32> to vector<2x64xf32>
    %282 = arith.mulf %279, %225 : vector<2x64xf32>
    %283 = arith.mulf %280, %278 : vector<2x64xf32>
    %284 = arith.addf %282, %283 : vector<2x64xf32>
    %285 = math.tanh %284 : vector<2x64xf32>
    %286 = arith.mulf %281, %285 : vector<2x64xf32>
    %287 = vector.extract_strided_slice %10 {offsets = [10, 0], sizes = [2, 256], strides = [1, 1]} : vector<16x256xf32> to vector<2x256xf32>
    %cst_44 = arith.constant dense<0.000000e+00> : vector<2x256xf32>
    %288 = tpu.matmul %246, %0, %cst_44 {dimension_numbers = #tpu.dot_dimension_numbers<[1], [0], [0], [1], [0, 0, 1, 1], [], []>} : vector<2x64xf32>, vector<64x256xf32>, vector<2x256xf32> -> vector<2x256xf32>
    %289 = arith.addf %287, %288 : vector<2x256xf32>
    %290 = vector.extract_strided_slice %289 {offsets = [0, 0], sizes = [2, 192], strides = [1, 1]} : vector<2x256xf32> to vector<2x192xf32>
    %291 = arith.negf %290 : vector<2x192xf32>
    %292 = math.exp %291 : vector<2x192xf32>
    %cst_45 = arith.constant 1.000000e+00 : f32
    %293 = vector.broadcast %cst_45 : f32 to vector<2x192xf32>
    %294 = arith.addf %293, %292 : vector<2x192xf32>
    %295 = arith.divf %293, %294 : vector<2x192xf32>
    %296 = vector.extract_strided_slice %289 {offsets = [0, 192], sizes = [2, 64], strides = [1, 1]} : vector<2x256xf32> to vector<2x64xf32>
    %297 = math.tanh %296 : vector<2x64xf32>
    %298 = vector.extract_strided_slice %295 {offsets = [0, 0], sizes = [2, 64], strides = [1, 1]} : vector<2x192xf32> to vector<2x64xf32>
    %299 = vector.extract_strided_slice %295 {offsets = [0, 64], sizes = [2, 64], strides = [1, 1]} : vector<2x192xf32> to vector<2x64xf32>
    %300 = vector.extract_strided_slice %295 {offsets = [0, 128], sizes = [2, 64], strides = [1, 1]} : vector<2x192xf32> to vector<2x64xf32>
    %301 = arith.mulf %298, %244 : vector<2x64xf32>
    %302 = arith.mulf %299, %297 : vector<2x64xf32>
    %303 = arith.addf %301, %302 : vector<2x64xf32>
    %304 = math.tanh %303 : vector<2x64xf32>
    %305 = arith.mulf %300, %304 : vector<2x64xf32>
    %306 = tpu.concatenate %286, %266 in 1 : vector<2x64xf32>, vector<2x64xf32> -> vector<2x128xf32>
    %cst_46 = arith.constant dense<0.000000e+00> : vector<2x256xf32>
    %307 = tpu.matmul %306, %2, %cst_46 {dimension_numbers = #tpu.dot_dimension_numbers<[1], [0], [0], [1], [0, 0, 1, 1], [], []>} : vector<2x128xf32>, vector<128x256xf32>, vector<2x256xf32> -> vector<2x256xf32>
    %308 = vector.broadcast %4 : vector<1x256xf32> to vector<2x256xf32>
    %309 = arith.addf %307, %308 : vector<2x256xf32>
    %310 = vector.extract_strided_slice %309 {offsets = [0, 0], sizes = [2, 192], strides = [1, 1]} : vector<2x256xf32> to vector<2x192xf32>
    %311 = arith.negf %310 : vector<2x192xf32>
    %312 = math.exp %311 : vector<2x192xf32>
    %cst_47 = arith.constant 1.000000e+00 : f32
    %313 = vector.broadcast %cst_47 : f32 to vector<2x192xf32>
    %314 = arith.addf %313, %312 : vector<2x192xf32>
    %315 = arith.divf %313, %314 : vector<2x192xf32>
    %316 = vector.extract_strided_slice %309 {offsets = [0, 192], sizes = [2, 64], strides = [1, 1]} : vector<2x256xf32> to vector<2x64xf32>
    %317 = math.tanh %316 : vector<2x64xf32>
    %318 = vector.extract_strided_slice %315 {offsets = [0, 0], sizes = [2, 64], strides = [1, 1]} : vector<2x192xf32> to vector<2x64xf32>
    %319 = vector.extract_strided_slice %315 {offsets = [0, 64], sizes = [2, 64], strides = [1, 1]} : vector<2x192xf32> to vector<2x64xf32>
    %320 = vector.extract_strided_slice %315 {offsets = [0, 128], sizes = [2, 64], strides = [1, 1]} : vector<2x192xf32> to vector<2x64xf32>
    %321 = arith.mulf %318, %264 : vector<2x64xf32>
    %322 = arith.mulf %319, %317 : vector<2x64xf32>
    %323 = arith.addf %321, %322 : vector<2x64xf32>
    %324 = math.tanh %323 : vector<2x64xf32>
    %325 = arith.mulf %320, %324 : vector<2x64xf32>
    %326 = tpu.concatenate %305, %286 in 1 : vector<2x64xf32>, vector<2x64xf32> -> vector<2x128xf32>
    %cst_48 = arith.constant dense<0.000000e+00> : vector<2x256xf32>
    %327 = tpu.matmul %326, %1, %cst_48 {dimension_numbers = #tpu.dot_dimension_numbers<[1], [0], [0], [1], [0, 0, 1, 1], [], []>} : vector<2x128xf32>, vector<128x256xf32>, vector<2x256xf32> -> vector<2x256xf32>
    %328 = vector.broadcast %3 : vector<1x256xf32> to vector<2x256xf32>
    %329 = arith.addf %327, %328 : vector<2x256xf32>
    %330 = vector.extract_strided_slice %329 {offsets = [0, 0], sizes = [2, 192], strides = [1, 1]} : vector<2x256xf32> to vector<2x192xf32>
    %331 = arith.negf %330 : vector<2x192xf32>
    %332 = math.exp %331 : vector<2x192xf32>
    %cst_49 = arith.constant 1.000000e+00 : f32
    %333 = vector.broadcast %cst_49 : f32 to vector<2x192xf32>
    %334 = arith.addf %333, %332 : vector<2x192xf32>
    %335 = arith.divf %333, %334 : vector<2x192xf32>
    %336 = vector.extract_strided_slice %329 {offsets = [0, 192], sizes = [2, 64], strides = [1, 1]} : vector<2x256xf32> to vector<2x64xf32>
    %337 = math.tanh %336 : vector<2x64xf32>
    %338 = vector.extract_strided_slice %335 {offsets = [0, 0], sizes = [2, 64], strides = [1, 1]} : vector<2x192xf32> to vector<2x64xf32>
    %339 = vector.extract_strided_slice %335 {offsets = [0, 64], sizes = [2, 64], strides = [1, 1]} : vector<2x192xf32> to vector<2x64xf32>
    %340 = vector.extract_strided_slice %335 {offsets = [0, 128], sizes = [2, 64], strides = [1, 1]} : vector<2x192xf32> to vector<2x64xf32>
    %341 = arith.mulf %338, %284 : vector<2x64xf32>
    %342 = arith.mulf %339, %337 : vector<2x64xf32>
    %343 = arith.addf %341, %342 : vector<2x64xf32>
    %344 = math.tanh %343 : vector<2x64xf32>
    %345 = arith.mulf %340, %344 : vector<2x64xf32>
    %346 = vector.extract_strided_slice %10 {offsets = [12, 0], sizes = [2, 256], strides = [1, 1]} : vector<16x256xf32> to vector<2x256xf32>
    %cst_50 = arith.constant dense<0.000000e+00> : vector<2x256xf32>
    %347 = tpu.matmul %305, %0, %cst_50 {dimension_numbers = #tpu.dot_dimension_numbers<[1], [0], [0], [1], [0, 0, 1, 1], [], []>} : vector<2x64xf32>, vector<64x256xf32>, vector<2x256xf32> -> vector<2x256xf32>
    %348 = arith.addf %346, %347 : vector<2x256xf32>
    %349 = vector.extract_strided_slice %348 {offsets = [0, 0], sizes = [2, 192], strides = [1, 1]} : vector<2x256xf32> to vector<2x192xf32>
    %350 = arith.negf %349 : vector<2x192xf32>
    %351 = math.exp %350 : vector<2x192xf32>
    %cst_51 = arith.constant 1.000000e+00 : f32
    %352 = vector.broadcast %cst_51 : f32 to vector<2x192xf32>
    %353 = arith.addf %352, %351 : vector<2x192xf32>
    %354 = arith.divf %352, %353 : vector<2x192xf32>
    %355 = vector.extract_strided_slice %348 {offsets = [0, 192], sizes = [2, 64], strides = [1, 1]} : vector<2x256xf32> to vector<2x64xf32>
    %356 = math.tanh %355 : vector<2x64xf32>
    %357 = vector.extract_strided_slice %354 {offsets = [0, 0], sizes = [2, 64], strides = [1, 1]} : vector<2x192xf32> to vector<2x64xf32>
    %358 = vector.extract_strided_slice %354 {offsets = [0, 64], sizes = [2, 64], strides = [1, 1]} : vector<2x192xf32> to vector<2x64xf32>
    %359 = vector.extract_strided_slice %354 {offsets = [0, 128], sizes = [2, 64], strides = [1, 1]} : vector<2x192xf32> to vector<2x64xf32>
    %360 = arith.mulf %357, %303 : vector<2x64xf32>
    %361 = arith.mulf %358, %356 : vector<2x64xf32>
    %362 = arith.addf %360, %361 : vector<2x64xf32>
    %363 = math.tanh %362 : vector<2x64xf32>
    %364 = arith.mulf %359, %363 : vector<2x64xf32>
    %365 = tpu.concatenate %345, %325 in 1 : vector<2x64xf32>, vector<2x64xf32> -> vector<2x128xf32>
    %cst_52 = arith.constant dense<0.000000e+00> : vector<2x256xf32>
    %366 = tpu.matmul %365, %2, %cst_52 {dimension_numbers = #tpu.dot_dimension_numbers<[1], [0], [0], [1], [0, 0, 1, 1], [], []>} : vector<2x128xf32>, vector<128x256xf32>, vector<2x256xf32> -> vector<2x256xf32>
    %367 = vector.broadcast %4 : vector<1x256xf32> to vector<2x256xf32>
    %368 = arith.addf %366, %367 : vector<2x256xf32>
    %369 = vector.extract_strided_slice %368 {offsets = [0, 0], sizes = [2, 192], strides = [1, 1]} : vector<2x256xf32> to vector<2x192xf32>
    %370 = arith.negf %369 : vector<2x192xf32>
    %371 = math.exp %370 : vector<2x192xf32>
    %cst_53 = arith.constant 1.000000e+00 : f32
    %372 = vector.broadcast %cst_53 : f32 to vector<2x192xf32>
    %373 = arith.addf %372, %371 : vector<2x192xf32>
    %374 = arith.divf %372, %373 : vector<2x192xf32>
    %375 = vector.extract_strided_slice %368 {offsets = [0, 192], sizes = [2, 64], strides = [1, 1]} : vector<2x256xf32> to vector<2x64xf32>
    %376 = math.tanh %375 : vector<2x64xf32>
    %377 = vector.extract_strided_slice %374 {offsets = [0, 0], sizes = [2, 64], strides = [1, 1]} : vector<2x192xf32> to vector<2x64xf32>
    %378 = vector.extract_strided_slice %374 {offsets = [0, 64], sizes = [2, 64], strides = [1, 1]} : vector<2x192xf32> to vector<2x64xf32>
    %379 = vector.extract_strided_slice %374 {offsets = [0, 128], sizes = [2, 64], strides = [1, 1]} : vector<2x192xf32> to vector<2x64xf32>
    %380 = arith.mulf %377, %323 : vector<2x64xf32>
    %381 = arith.mulf %378, %376 : vector<2x64xf32>
    %382 = arith.addf %380, %381 : vector<2x64xf32>
    %383 = math.tanh %382 : vector<2x64xf32>
    %384 = arith.mulf %379, %383 : vector<2x64xf32>
    %385 = tpu.concatenate %364, %345 in 1 : vector<2x64xf32>, vector<2x64xf32> -> vector<2x128xf32>
    %cst_54 = arith.constant dense<0.000000e+00> : vector<2x256xf32>
    %386 = tpu.matmul %385, %1, %cst_54 {dimension_numbers = #tpu.dot_dimension_numbers<[1], [0], [0], [1], [0, 0, 1, 1], [], []>} : vector<2x128xf32>, vector<128x256xf32>, vector<2x256xf32> -> vector<2x256xf32>
    %387 = vector.broadcast %3 : vector<1x256xf32> to vector<2x256xf32>
    %388 = arith.addf %386, %387 : vector<2x256xf32>
    %389 = vector.extract_strided_slice %388 {offsets = [0, 0], sizes = [2, 192], strides = [1, 1]} : vector<2x256xf32> to vector<2x192xf32>
    %390 = arith.negf %389 : vector<2x192xf32>
    %391 = math.exp %390 : vector<2x192xf32>
    %cst_55 = arith.constant 1.000000e+00 : f32
    %392 = vector.broadcast %cst_55 : f32 to vector<2x192xf32>
    %393 = arith.addf %392, %391 : vector<2x192xf32>
    %394 = arith.divf %392, %393 : vector<2x192xf32>
    %395 = vector.extract_strided_slice %388 {offsets = [0, 192], sizes = [2, 64], strides = [1, 1]} : vector<2x256xf32> to vector<2x64xf32>
    %396 = math.tanh %395 : vector<2x64xf32>
    %397 = vector.extract_strided_slice %394 {offsets = [0, 0], sizes = [2, 64], strides = [1, 1]} : vector<2x192xf32> to vector<2x64xf32>
    %398 = vector.extract_strided_slice %394 {offsets = [0, 64], sizes = [2, 64], strides = [1, 1]} : vector<2x192xf32> to vector<2x64xf32>
    %399 = vector.extract_strided_slice %394 {offsets = [0, 128], sizes = [2, 64], strides = [1, 1]} : vector<2x192xf32> to vector<2x64xf32>
    %400 = arith.mulf %397, %343 : vector<2x64xf32>
    %401 = arith.mulf %398, %396 : vector<2x64xf32>
    %402 = arith.addf %400, %401 : vector<2x64xf32>
    %403 = math.tanh %402 : vector<2x64xf32>
    %404 = arith.mulf %399, %403 : vector<2x64xf32>
    %405 = vector.extract_strided_slice %10 {offsets = [14, 0], sizes = [2, 256], strides = [1, 1]} : vector<16x256xf32> to vector<2x256xf32>
    %cst_56 = arith.constant dense<0.000000e+00> : vector<2x256xf32>
    %406 = tpu.matmul %364, %0, %cst_56 {dimension_numbers = #tpu.dot_dimension_numbers<[1], [0], [0], [1], [0, 0, 1, 1], [], []>} : vector<2x64xf32>, vector<64x256xf32>, vector<2x256xf32> -> vector<2x256xf32>
    %407 = arith.addf %405, %406 : vector<2x256xf32>
    %408 = vector.extract_strided_slice %407 {offsets = [0, 0], sizes = [2, 192], strides = [1, 1]} : vector<2x256xf32> to vector<2x192xf32>
    %409 = arith.negf %408 : vector<2x192xf32>
    %410 = math.exp %409 : vector<2x192xf32>
    %cst_57 = arith.constant 1.000000e+00 : f32
    %411 = vector.broadcast %cst_57 : f32 to vector<2x192xf32>
    %412 = arith.addf %411, %410 : vector<2x192xf32>
    %413 = arith.divf %411, %412 : vector<2x192xf32>
    %414 = vector.extract_strided_slice %407 {offsets = [0, 192], sizes = [2, 64], strides = [1, 1]} : vector<2x256xf32> to vector<2x64xf32>
    %415 = math.tanh %414 : vector<2x64xf32>
    %416 = vector.extract_strided_slice %413 {offsets = [0, 0], sizes = [2, 64], strides = [1, 1]} : vector<2x192xf32> to vector<2x64xf32>
    %417 = vector.extract_strided_slice %413 {offsets = [0, 64], sizes = [2, 64], strides = [1, 1]} : vector<2x192xf32> to vector<2x64xf32>
    %418 = vector.extract_strided_slice %413 {offsets = [0, 128], sizes = [2, 64], strides = [1, 1]} : vector<2x192xf32> to vector<2x64xf32>
    %419 = arith.mulf %416, %362 : vector<2x64xf32>
    %420 = arith.mulf %417, %415 : vector<2x64xf32>
    %421 = arith.addf %419, %420 : vector<2x64xf32>
    %422 = math.tanh %421 : vector<2x64xf32>
    %423 = arith.mulf %418, %422 : vector<2x64xf32>
    %424 = tpu.concatenate %404, %384 in 1 : vector<2x64xf32>, vector<2x64xf32> -> vector<2x128xf32>
    %cst_58 = arith.constant dense<0.000000e+00> : vector<2x256xf32>
    %425 = tpu.matmul %424, %2, %cst_58 {dimension_numbers = #tpu.dot_dimension_numbers<[1], [0], [0], [1], [0, 0, 1, 1], [], []>} : vector<2x128xf32>, vector<128x256xf32>, vector<2x256xf32> -> vector<2x256xf32>
    %426 = vector.broadcast %4 : vector<1x256xf32> to vector<2x256xf32>
    %427 = arith.addf %425, %426 : vector<2x256xf32>
    %428 = vector.extract_strided_slice %427 {offsets = [0, 0], sizes = [2, 192], strides = [1, 1]} : vector<2x256xf32> to vector<2x192xf32>
    %429 = arith.negf %428 : vector<2x192xf32>
    %430 = math.exp %429 : vector<2x192xf32>
    %cst_59 = arith.constant 1.000000e+00 : f32
    %431 = vector.broadcast %cst_59 : f32 to vector<2x192xf32>
    %432 = arith.addf %431, %430 : vector<2x192xf32>
    %433 = arith.divf %431, %432 : vector<2x192xf32>
    %434 = vector.extract_strided_slice %427 {offsets = [0, 192], sizes = [2, 64], strides = [1, 1]} : vector<2x256xf32> to vector<2x64xf32>
    %435 = math.tanh %434 : vector<2x64xf32>
    %436 = vector.extract_strided_slice %433 {offsets = [0, 0], sizes = [2, 64], strides = [1, 1]} : vector<2x192xf32> to vector<2x64xf32>
    %437 = vector.extract_strided_slice %433 {offsets = [0, 64], sizes = [2, 64], strides = [1, 1]} : vector<2x192xf32> to vector<2x64xf32>
    %438 = vector.extract_strided_slice %433 {offsets = [0, 128], sizes = [2, 64], strides = [1, 1]} : vector<2x192xf32> to vector<2x64xf32>
    %439 = arith.mulf %436, %382 : vector<2x64xf32>
    %440 = arith.mulf %437, %435 : vector<2x64xf32>
    %441 = arith.addf %439, %440 : vector<2x64xf32>
    %442 = math.tanh %441 : vector<2x64xf32>
    %443 = arith.mulf %438, %442 : vector<2x64xf32>
    %444 = tpu.concatenate %423, %404 in 1 : vector<2x64xf32>, vector<2x64xf32> -> vector<2x128xf32>
    %cst_60 = arith.constant dense<0.000000e+00> : vector<2x256xf32>
    %445 = tpu.matmul %444, %1, %cst_60 {dimension_numbers = #tpu.dot_dimension_numbers<[1], [0], [0], [1], [0, 0, 1, 1], [], []>} : vector<2x128xf32>, vector<128x256xf32>, vector<2x256xf32> -> vector<2x256xf32>
    %446 = vector.broadcast %3 : vector<1x256xf32> to vector<2x256xf32>
    %447 = arith.addf %445, %446 : vector<2x256xf32>
    %448 = vector.extract_strided_slice %447 {offsets = [0, 0], sizes = [2, 192], strides = [1, 1]} : vector<2x256xf32> to vector<2x192xf32>
    %449 = arith.negf %448 : vector<2x192xf32>
    %450 = math.exp %449 : vector<2x192xf32>
    %cst_61 = arith.constant 1.000000e+00 : f32
    %451 = vector.broadcast %cst_61 : f32 to vector<2x192xf32>
    %452 = arith.addf %451, %450 : vector<2x192xf32>
    %453 = arith.divf %451, %452 : vector<2x192xf32>
    %454 = vector.extract_strided_slice %447 {offsets = [0, 192], sizes = [2, 64], strides = [1, 1]} : vector<2x256xf32> to vector<2x64xf32>
    %455 = math.tanh %454 : vector<2x64xf32>
    %456 = vector.extract_strided_slice %453 {offsets = [0, 0], sizes = [2, 64], strides = [1, 1]} : vector<2x192xf32> to vector<2x64xf32>
    %457 = vector.extract_strided_slice %453 {offsets = [0, 64], sizes = [2, 64], strides = [1, 1]} : vector<2x192xf32> to vector<2x64xf32>
    %458 = vector.extract_strided_slice %453 {offsets = [0, 128], sizes = [2, 64], strides = [1, 1]} : vector<2x192xf32> to vector<2x64xf32>
    %459 = arith.mulf %456, %402 : vector<2x64xf32>
    %460 = arith.mulf %457, %455 : vector<2x64xf32>
    %461 = arith.addf %459, %460 : vector<2x64xf32>
    %462 = math.tanh %461 : vector<2x64xf32>
    %463 = arith.mulf %458, %462 : vector<2x64xf32>
    %464 = tpu.concatenate %463, %443 in 1 : vector<2x64xf32>, vector<2x64xf32> -> vector<2x128xf32>
    %cst_62 = arith.constant dense<0.000000e+00> : vector<2x256xf32>
    %465 = tpu.matmul %464, %2, %cst_62 {dimension_numbers = #tpu.dot_dimension_numbers<[1], [0], [0], [1], [0, 0, 1, 1], [], []>} : vector<2x128xf32>, vector<128x256xf32>, vector<2x256xf32> -> vector<2x256xf32>
    %466 = vector.broadcast %4 : vector<1x256xf32> to vector<2x256xf32>
    %467 = arith.addf %465, %466 : vector<2x256xf32>
    %468 = vector.extract_strided_slice %467 {offsets = [0, 0], sizes = [2, 192], strides = [1, 1]} : vector<2x256xf32> to vector<2x192xf32>
    %469 = arith.negf %468 : vector<2x192xf32>
    %470 = math.exp %469 : vector<2x192xf32>
    %cst_63 = arith.constant 1.000000e+00 : f32
    %471 = vector.broadcast %cst_63 : f32 to vector<2x192xf32>
    %472 = arith.addf %471, %470 : vector<2x192xf32>
    %473 = arith.divf %471, %472 : vector<2x192xf32>
    %474 = vector.extract_strided_slice %467 {offsets = [0, 192], sizes = [2, 64], strides = [1, 1]} : vector<2x256xf32> to vector<2x64xf32>
    %475 = math.tanh %474 : vector<2x64xf32>
    %476 = vector.extract_strided_slice %473 {offsets = [0, 0], sizes = [2, 64], strides = [1, 1]} : vector<2x192xf32> to vector<2x64xf32>
    %477 = vector.extract_strided_slice %473 {offsets = [0, 64], sizes = [2, 64], strides = [1, 1]} : vector<2x192xf32> to vector<2x64xf32>
    %478 = vector.extract_strided_slice %473 {offsets = [0, 128], sizes = [2, 64], strides = [1, 1]} : vector<2x192xf32> to vector<2x64xf32>
    %479 = arith.mulf %476, %441 : vector<2x64xf32>
    %480 = arith.mulf %477, %475 : vector<2x64xf32>
    %481 = arith.addf %479, %480 : vector<2x64xf32>
    %482 = math.tanh %481 : vector<2x64xf32>
    %483 = arith.mulf %478, %482 : vector<2x64xf32>
    %c0_64 = arith.constant 0 : index
    %c0_65 = arith.constant 0 : index
    %484 = vector.load %arg8[%c0_64, %c0_65] : memref<1x64xf32, #tpu.memory_space<vmem>>, vector<1x64xf32>
    %485 = vector.broadcast %484 : vector<1x64xf32> to vector<2x64xf32>
    %486 = arith.mulf %483, %485 : vector<2x64xf32>
    %cst_66 = arith.constant dense<0.000000e+00> : vector<2xf32>
    %487 = vector.multi_reduction <add>, %486, %cst_66 [1] : vector<2x64xf32> to vector<2xf32>
    %488 = vector.shape_cast %487 : vector<2xf32> to vector<2x1xf32>
    %c0_67 = arith.constant 0 : index
    %c0_68 = arith.constant 0 : index
    %489 = vector.load %arg9[%c0_67, %c0_68] : memref<1x1xf32, #tpu.memory_space<vmem>>, vector<1x1xf32>
    %490 = vector.broadcast %489 : vector<1x1xf32> to vector<2x1xf32>
    %491 = arith.addf %488, %490 : vector<2x1xf32>
    %c0_69 = arith.constant 0 : index
    %c0_70 = arith.constant 0 : index
    %492 = vector.load %arg10[%c0_69, %c0_70] : memref<2x1xf32, #tpu.memory_space<vmem>>, vector<2x1xf32>
    tpu.vector_store %arg10[%c0_69, %c0_70], %491 {strides = array<i32>} : memref<2x1xf32, #tpu.memory_space<vmem>>, vector<2x1xf32>,
    return
  }
}

</mosaic_0001>

<bundles_post_ra>
// kernel: lstm_model_forward.1
= control target key start
LH: loop header
LB: loop body
LE: loop exit
PB: predicated region body
PF: predicated region fallthrough
CT: control target
= control target key end

     0   :  { %s4692_s0 = inlined_call_operand.vmem [shape: f32[16,14], index: 0, kind: input, shape index: {}]   ;;  %s4693_s1 = inlined_call_operand.vmem [shape: f32[14,256], index: 1, kind: input, shape index: {}]   ;;  %s4694_s2 = inlined_call_operand.hbm [shape: f32[64,256], index: 2, kind: input, shape index: {}]   ;;  %s4695_s3 = inlined_call_operand.vmem [shape: f32[1,256], index: 3, kind: input, shape index: {}]   ;;  %s4696_s4 = inlined_call_operand.hbm [shape: f32[128,256], index: 4, kind: input, shape index: {}]   ;;  %s4697_s5 = inlined_call_operand.vmem [shape: f32[1,256], index: 5, kind: input, shape index: {}]   ;;  %s4698_s6 = inlined_call_operand.hbm [shape: f32[128,256], index: 6, kind: input, shape index: {}]   ;;  %s4699_s7 = inlined_call_operand.hbm [shape: f32[1,256], index: 7, kind: input, shape index: {}]   ;;  %s4700_s8 = inlined_call_operand.hbm [shape: f32[1,64], index: 8, kind: input, shape index: {}]   ;;  %s4701_s9 = inlined_call_operand.<no memory space> [shape: f32[1,1], index: 9, kind: input, shape index: {}]   ;;  %s4702_s10 = inlined_call_operand.vmem [shape: f32[2,1], index: 10, kind: output, shape index: {}]  }
   0x1   :  { %v15_v0 = vstv %s4701_s9 }
   0x2   :  { %16 = vst [vmem:[#allocation2] sm:$0x1] %v15_v0 }
   0x3   :  { %17 = vsyncpa [#allocation4], 0 }
   0x4   :  { %18 = vsyncpa [#allocation6], 0 }
   0x5   :  { %19 = vsyncpa [#allocation9], 0  ;;  %s3383_s15 = smov [#allocation5]   ;;  %s3384_s17 = smov [#allocation8]  }
   0x6   :  { %s43_s16 = sshll.u32 %s3383_s15, 4  ;;  %s70_s18 = sshll.u32 %s3384_s17, 4  ;;  %s44_s16 = int_to_ptr.vmem [resolvable:$true] %s43_s16  ;;  %s71_s18 = int_to_ptr.vmem [resolvable:$true] %s70_s18 }
   0x7   :  { %s3285_s19 = scalar_lea.vmem %s44_s16, 4096  ;;  %p3290_p1 = scmp.lt.s32.totalorder %s44_s16, %s44_s16 }
   0x8   :  { %p3286_p0 = scmp.ne.s32.totalorder %s44_s16, %s3285_s19  ;;  %p3291_p2 = scmp.lt.s32.totalorder %s3285_s19, %s3285_s19 }
   0xa   :  { %p3292_p3 = por %p3291_p2, %p3290_p1 }
   0xc   :  { %p3293_p4 = pnand %p3292_p3, %p3286_p0 }
   0xe   :  { %3296 = shalt.err (!%p3293_p4)
}
   0xf   :  { %s3385_s20 = smov 256   ;;  %s3386_s21 = smov 16  }
  0x10   :  { %49 = dma.hbm_to_vmem [thread:$0]  %s4696_s4, 4096, %s44_s16, [#allocation6], %s3385_s20, %s3385_s20, %s3386_s21  }
  0x11   :  { %s3305_s23 = scalar_lea.vmem %s71_s18, 32  ;;  %p3310_p6 = scmp.lt.s32.totalorder %s71_s18, %s71_s18 }
  0x12   :  { %p3306_p5 = scmp.ne.s32.totalorder %s71_s18, %s3305_s23  ;;  %p3311_p7 = scmp.lt.s32.totalorder %s3305_s23, %s3305_s23 }
  0x14   :  { %p3312_p8 = por %p3311_p7, %p3310_p6 }
  0x16   :  { %p3313_p9 = pnand %p3312_p8, %p3306_p5 }
  0x18   :  { %3316 = shalt.err (!%p3313_p9)
}
  0x19   :  { %73 = dma.hbm_to_vmem [thread:$0]  %s4699_s7, 32, %s71_s18, [#allocation9]  }
  0x1a   :  { %s3387_s26 = smov [#allocation3]   ;;  %s3388_s28 = smov [#allocation7]  }
  0x1b   :  { %s29_s27 = sshll.u32 %s3387_s26, 4  ;;  %s57_s29 = sshll.u32 %s3388_s28, 4  ;;  %s30_s27 = int_to_ptr.vmem [resolvable:$true] %s29_s27  ;;  %s58_s29 = int_to_ptr.vmem [resolvable:$true] %s57_s29 }
  0x1c   :  { %s3325_s30 = scalar_lea.vmem %s30_s27, 2048  ;;  %p3330_p11 = scmp.lt.s32.totalorder %s30_s27, %s30_s27 }
  0x1d   :  { %p3326_p10 = scmp.ne.s32.totalorder %s30_s27, %s3325_s30  ;;  %p3331_p12 = scmp.lt.s32.totalorder %s3325_s30, %s3325_s30 }
  0x1f   :  { %p3332_p13 = por %p3331_p12, %p3330_p11 }
  0x21   :  { %p3333_p0 = pnand %p3332_p13, %p3326_p10 }
  0x23   :  { %3336 = shalt.err (!%p3333_p0)
}
  0x24   :  { %35 = dma.hbm_to_vmem [thread:$0]  %s4694_s2, 2048, %s30_s27, [#allocation4], %s3385_s20, %s3385_s20, %s3386_s21  }
  0x25   :  { %s3345_s7 = scalar_lea.vmem %s58_s29, 4096  ;;  %p3350_p2 = scmp.lt.s32.totalorder %s58_s29, %s58_s29 }
  0x26   :  { %p3346_p1 = scmp.ne.s32.totalorder %s58_s29, %s3345_s7  ;;  %p3351_p3 = scmp.lt.s32.totalorder %s3345_s7, %s3345_s7 }
  0x28   :  { %p3352_p4 = por %p3351_p3, %p3350_p2 }
  0x2a   :  { %p3353_p5 = pnand %p3352_p4, %p3346_p1 }
  0x2c   :  { %3356 = shalt.err (!%p3353_p5)
}
  0x2d   :  { %63 = dma.hbm_to_vmem [thread:$0]  %s4698_s6, 4096, %s58_s29, [#allocation6], %s3385_s20, %s3385_s20, %s3386_s21  }
  0x2e   :  { %s3389_s14 = smov [#allocation10]  }
  0x2f   :  { %s80_s15 = sshll.u32 %s3389_s14, 4  ;;  %s81_s15 = int_to_ptr.vmem [resolvable:$true] %s80_s15 }
  0x30   :  { %s3365_s16 = scalar_lea.vmem %s81_s15, 16  ;;  %s3369_s2 = scalar_lea.vmem %s81_s15, 32 }
  0x31   :  { %p3366_p6 = scmp.ne.s32.totalorder %s81_s15, %s3365_s16  ;;  %p3370_p7 = scmp.lt.s32.totalorder %s81_s15, %s81_s15 }
  0x32   :  { %p3371_p8 = scmp.lt.s32.totalorder %s3369_s2, %s3365_s16 }
  0x34   :  { %p3372_p9 = por %p3371_p8, %p3370_p7 }
  0x36   :  { %p3373_p10 = pnand %p3372_p9, %p3366_p6 }
  0x38   :  { %3376 = shalt.err (!%p3373_p10)
}
  0x39   :  { %83 = dma.hbm_to_vmem [thread:$0]  %s4700_s8, 16, %s81_s15, [#allocation9]  }
  0x3a   :  { %3377 = dma.done.wait [#allocation4], 2048  }
  0x3b   :  { %3378 = vsyncadd [#allocation4], 4294965248 }
  0x3c   :  { %3379 = dma.done.wait [#allocation6], 8192  }
  0x3d   :  { %3380 = vsyncadd [#allocation6], 4294959104 }
  0x3e   :  { %3381 = dma.done.wait [#allocation9], 48  }
  0x3f   :  { %3382 = vsyncadd [#allocation9], 4294967248  ;;  %v4703_v1 = vmov 0.0   ;;  %vm208_vm0 = vcmask 1045504   ;;  %v188_v2 = vld [vmem:[%s4693_s1 + $0x18] sm:$0x3f]  ;;  %v191_v38 = vlaneseq }
  0x40   :  { %279 = vmatprep.mubr.f32.mxu0 %v4703_v1  ;;  %563 = vmatprep.mubr.f32.mxu1 %v4703_v1  ;;  %v187_v3 = vld [vmem:[%s4693_s1 + $0x10] sm:$0x3f]  ;;  %v186_v4 = vld [vmem:[%s4693_s1 + $0x8] sm:$0xff]  ;;  %v185_v5 = vld [vmem:[%s4693_s1] sm:$0xff]  ;;  %vm201_vm1 = vcmask 113664   ;;  %vm292_vm2 = vcmask 523264  }
  0x41   :  { %2774 = vmatprep.subr.msk.mxu0 %vm208_vm0, %v188_v2  ;;  %v3488_v6 = vld [vmem:[#allocation3 + $0x78] sm:$0xff]  ;;  %v3493_v8 = vld [vmem:[#allocation3 + $0x70] sm:$0xff]  ;;  %v3496_v9 = vld [vmem:[#allocation3 + $0x68] sm:$0xff]  ;;  %v192_v39 = vshrl.u32 %v191_v38, 7  ;;  %vm2753_vm3 = vcmask 517120   ;;  %vm2765_vm4 = vcmask 1024  }
  0x42   :  { %4892 = vst [vmem:[#allocation14_spill] sm:$0xff] %v3488_v6  ;;  %2775 = vmatpush1.msk.msra.mxu0 %vm208_vm0, %v187_v3  ;;  %v183_v7 = vld [vmem:[%s4692_s0] sm:$0xff]  ;;  %515 = vmatprep.subr.mxu1 %v3488_v6  ;;  %v184_v12 = vld [vmem:[%s4692_s0 + $0x8] sm:$0xff]  ;;  %v3512_v13 = vld [vmem:[#allocation3 + $0x50] sm:$0xff] }
  0x43   :  { %245 = vmatprep.subr.mxu0 %v186_v4  ;;  %516 = vmatpush1.msra.mxu1 %v3493_v8  ;;  %v3502_v10 = vld [vmem:[#allocation3 + $0x60] sm:$0xff]  ;;  %v3505_v11 = vld [vmem:[#allocation3 + $0x58] sm:$0xff]  ;;  %v3516_v14 = vld [vmem:[#allocation3 + $0x48] sm:$0xff]  ;;  %v3606_v40 = vsub.s32 0, %v192_v39  ;;  %v3611_v43 = vsub.s32 1, %v192_v39 }
  0x44   :  { %246 = vmatpush1.msra.mxu0 %v185_v5  ;;  %517 = vmatprep.subr.mxu1 %v3496_v9  ;;  %v3520_v15 = vld [vmem:[#allocation3 + $0x40] sm:$0xff]  ;;  %v3524_v16 = vld [vmem:[#allocation3 + $0x38] sm:$0xff]  ;;  %v3528_v17 = vld [vmem:[#allocation3 + $0x30] sm:$0xff] }
  0x45   :  { %2776 = vmatmul.mubr.msk.f32.vlgmr.msra.gmra.mxu0 %vm201_vm1, %v183_v7  ;;  %312 = vmatprep.subr.mxu0 %v3488_v6  ;;  %v3532_v18 = vld [vmem:[#allocation3 + $0x28] sm:$0xff]  ;;  %v3536_v19 = vld [vmem:[#allocation3 + $0x20] sm:$0xff]  ;;  %v3540_v20 = vld [vmem:[#allocation3 + $0x18] sm:$0xff]  ;;  %4893 = vst [vmem:[#allocation15_spill] sm:$0xff] %v3606_v40 }
  0x46   :  { %313 = vmatpush1.msra.mxu0 %v3493_v8  ;;  %285 = vmatprep.mubr.f32.mxu0 %v4703_v1  ;;  %v3544_v21 = vld [vmem:[#allocation3 + $0x10] sm:$0xff]  ;;  %v3548_v22 = vld [vmem:[#allocation3 + $0x8] sm:$0xff]  ;;  %v3552_v23 = vld [vmem:[#allocation3] sm:$0xff]  ;;  %4894 = vst [vmem:[#allocation16_spill] sm:$0xff] %v3611_v43 }
  0x47   :  { %314 = vmatprep.subr.mxu0 %v3496_v9  ;;  %518 = vmatpush1.msra.mxu1 %v3502_v10  ;;  %v3564_v24 = vld [vmem:[#allocation5 + $0xf8] sm:$0xff]  ;;  %v3566_v25 = vld [vmem:[#allocation5 + $0xf0] sm:$0xff]  ;;  %v3568_v26 = vld [vmem:[#allocation5 + $0xe8] sm:$0xff] }
  0x48   :  { %315 = vmatpush1.msra.mxu0 %v3502_v10  ;;  %519 = vmatprep.subr.mxu1 %v3505_v11  ;;  %v3571_v27 = vld [vmem:[#allocation5 + $0xe0] sm:$0xff]  ;;  %v3574_v28 = vld [vmem:[#allocation5 + $0xd8] sm:$0xff]  ;;  %v3577_v29 = vld [vmem:[#allocation5 + $0xd0] sm:$0xff] }
  0x49   :  { %316 = vmatprep.subr.mxu0 %v3505_v11  ;;  %2777 = vmatmul.mubr.msk.f32.gmra.mxu0 %vm201_vm1, %v184_v12  ;;  %v3580_v30 = vld [vmem:[#allocation5 + $0xc8] sm:$0xff]  ;;  %v3583_v31 = vld [vmem:[#allocation5 + $0xc0] sm:$0xff]  ;;  %v3586_v32 = vld [vmem:[#allocation5 + $0xb8] sm:$0xff] }
  0x4a   :  { %317 = vmatpush1.msra.mxu0 %v3512_v13  ;;  %360 = vmatprep.mubr.f32.mxu0 %v4703_v1  ;;  %v3589_v33 = vld [vmem:[#allocation5 + $0xb0] sm:$0xff]  ;;  %v3592_v34 = vld [vmem:[#allocation5 + $0xa8] sm:$0xff]  ;;  %v3595_v35 = vld [vmem:[#allocation5 + $0xa0] sm:$0xff] }
  0x4b   :  { %318 = vmatprep.subr.mxu0 %v3516_v14  ;;  %520 = vmatpush1.msra.mxu1 %v3512_v13  ;;  %v3598_v36 = vld [vmem:[#allocation5 + $0x98] sm:$0xff]  ;;  %v3601_v37 = vld [vmem:[#allocation5 + $0x90] sm:$0xff]  ;;  %v3625_v60 = vld [vmem:[#allocation5 + $0x88] sm:$0xff] }
  0x4c   :  { %319 = vmatpush1.msra.mxu0 %v3520_v15  ;;  %521 = vmatprep.subr.mxu1 %v3516_v14  ;;  %v189_v41 = vld [vmem:[%s4695_s3] sm:$0x3]  ;;  %v3633_v63 = vld [vmem:[#allocation5 + $0x70] sm:$0xff]  ;;  %v3635_v0 = vld [vmem:[#allocation5 + $0x68] sm:$0xff]  ;;  %s3391_s3 = smov 64  }
  0x4d   :  { %320 = vmatprep.subr.mxu0 %v3524_v16  ;;  %522 = vmatpush1.msra.mxu1 %v3520_v15  ;;  %v194_v45 = vrot.slane %v189_v41, %v3606_v40  ;;  %v198_v47 = vrot.slane %v189_v41, %v3611_v43  ;;  %v3628_v61 = vld [vmem:[#allocation5 + $0x80] sm:$0xff]  ;;  %v3631_v62 = vld [vmem:[#allocation5 + $0x78] sm:$0xff]  ;;  %v3644_v4 = vld [vmem:[#allocation5 + $0x50] sm:$0xff] }
  0x4e   :  { %321 = vmatpush1.msra.mxu0 %v3528_v17  ;;  %523 = vmatprep.subr.mxu1 %v3524_v16  ;;  %v3638_v2 = vld [vmem:[#allocation5 + $0x60] sm:$0xff]  ;;  %v3641_v3 = vld [vmem:[#allocation5 + $0x58] sm:$0xff]  ;;  %v3647_v5 = vld [vmem:[#allocation5 + $0x48] sm:$0xff] }
  0x4f   :  { %322 = vmatprep.subr.mxu0 %v3532_v18  ;;  %524 = vmatpush1.msra.mxu1 %v3528_v17  ;;  %v3650_v7 = vld [vmem:[#allocation5 + $0x40] sm:$0xff]  ;;  %v3653_v12 = vld [vmem:[#allocation5 + $0x38] sm:$0xff]  ;;  %v3656_v39 = vld [vmem:[#allocation5 + $0x30] sm:$0xff] }
  0x50   :  { %323 = vmatpush1.msra.mxu0 %v3536_v19  ;;  %525 = vmatprep.subr.mxu1 %v3532_v18 }
  0x51   :  { %324 = vmatprep.subr.mxu0 %v3540_v20  ;;  %526 = vmatpush1.msra.mxu1 %v3536_v19 }
  0x52   :  { %325 = vmatpush1.msra.mxu0 %v3544_v21  ;;  %527 = vmatprep.subr.mxu1 %v3540_v20 }
  0x53   :  { %326 = vmatprep.subr.mxu0 %v3548_v22  ;;  %528 = vmatpush1.msra.mxu1 %v3544_v21 }
  0x54   :  { %327 = vmatpush1.msra.mxu0 %v3552_v23  ;;  %529 = vmatprep.subr.mxu1 %v3548_v22 }
  0x55   :  { %361 = vmatmul.mubr.f32.vlgmr.msra.gmra.mxu0 %v4703_v1  ;;  %530 = vmatpush1.msra.mxu1 %v3552_v23 }
  0x56   :  { %467 = vmatprep.mubr.f32.mxu0 %v4703_v1  ;;  %403 = vmatprep.subr.mxu0 %v3564_v24 }
  0x57   :  { %404 = vmatpush1.msra.mxu0 %v3566_v25 }
  0x58   :  { %405 = vmatprep.subr.mxu0 %v3568_v26 }
  0x59   :  { %406 = vmatpush1.msra.mxu0 %v3571_v27 }
  0x5a   :  { %407 = vmatprep.subr.mxu0 %v3574_v28 }
  0x5b   :  { %408 = vmatpush1.msra.mxu0 %v3577_v29 }
  0x5c   :  { %409 = vmatprep.subr.mxu0 %v3580_v30 }
  0x5d   :  { %410 = vmatpush1.msra.mxu0 %v3583_v31 }
  0x5e   :  { %411 = vmatprep.subr.mxu0 %v3586_v32 }
  0x5f   :  { %412 = vmatpush1.msra.mxu0 %v3589_v33 }
  0x60   :  { %413 = vmatprep.subr.mxu0 %v3592_v34 }
  0x61   :  { %414 = vmatpush1.msra.mxu0 %v3595_v35 }
  0x62   :  { %415 = vmatprep.subr.mxu0 %v3598_v36 }
  0x63   :  { %416 = vmatpush1.msra.mxu0 %v3601_v37 }
  0x64   :  { %417 = vmatprep.subr.mxu0 %v3625_v60 }
  0x65   :  { %418 = vmatpush1.msra.mxu0 %v3628_v61 }
  0x66   :  { %419 = vmatprep.subr.mxu0 %v3631_v62 }
  0x67   :  { %420 = vmatpush1.msra.mxu0 %v3633_v63 }
  0x68   :  { %421 = vmatprep.subr.mxu0 %v3635_v0 }
  0x69   :  { %422 = vmatpush1.msra.mxu0 %v3638_v2 }
  0x6a   :  { %423 = vmatprep.subr.mxu0 %v3641_v3 }
  0x6b   :  { %424 = vmatpush1.msra.mxu0 %v3644_v4 }
  0x6c   :  { %425 = vmatprep.subr.mxu0 %v3647_v5 }
  0x6d   :  { %426 = vmatpush1.msra.mxu0 %v3650_v7 }
  0x6e   :  { %427 = vmatprep.subr.mxu0 %v3653_v12 }
  0x6f   :  { %428 = vmatpush1.msra.mxu0 %v3656_v39 }
 0x105   :  { %v281_v42 = vpop.f32.mrf.mxu0 }
 0x106   :  { %v3619_v51 = vadd.f32 %v281_v42, %v194_v45  ;;  %v3659_v42 = vld [vmem:[#allocation5 + $0x28] sm:$0xff] }
 0x107   :  { %v283_v44 = vpop.f32.mrf.mxu0  ;;  %4899 = vst [vmem:[#allocation21_spill] sm:$0xff] %v3659_v42  ;;  %429 = vmatprep.subr.mxu0 %v3659_v42 }
 0x108   :  { %4897 = vst [vmem:[#allocation19_spill] sm:$0xff] %v3619_v51  ;;  %v3622_v56 = vadd.f32 %v283_v44, %v198_v47 }
 0x109   :  { %v287_v46 = vpop.f32.mrf.mxu0 }
 0x10a   :  { %v3615_v48 = vadd.f32 %v287_v46, %v194_v45  ;;  %4898 = vst [vmem:[#allocation20_spill] sm:$0xff] %v3622_v56  ;;  %v3662_v45 = vld [vmem:[#allocation5 + $0x20] sm:$0xff]  ;;  %v3665_v46 = vld [vmem:[#allocation5 + $0x18] sm:$0xff] }
 0x10b   :  { %v289_v49 = vpop.f32.mrf.mxu0  ;;  %4900 = vst [vmem:[#allocation22_spill] sm:$0xff] %v3662_v45  ;;  %4901 = vst [vmem:[#allocation23_spill] sm:$0xff] %v3665_v46  ;;  %430 = vmatpush1.msra.mxu0 %v3662_v45 }
 0x10c   :  { %4895 = vst [vmem:[#allocation17_spill] sm:$0xff] %v3615_v48  ;;  %v3617_v50 = vadd.f32 %v289_v49, %v198_v47  ;;  %v3669_v47 = vld [vmem:[#allocation5 + $0x10] sm:$0xff]  ;;  %v3672_v49 = vld [vmem:[#allocation5 + $0x8] sm:$0xff]  ;;  %431 = vmatprep.subr.mxu0 %v3665_v46  ;;  %v4905_v48 = vmov 0.0  }
 0x10d   :  { %4902 = vst [vmem:[#allocation24_spill] sm:$0xff] %v3669_v47  ;;  %4903 = vst [vmem:[#allocation25_spill] sm:$0xff] %v3672_v49  ;;  %432 = vmatpush1.msra.mxu0 %v3669_v47 }
 0x10e   :  { %4896 = vst [vmem:[#allocation18_spill] sm:$0xff] %v3617_v50  ;;  %433 = vmatprep.subr.mxu0 %v3672_v49 }
 0x115   :  { %v362_v52 = vpop.f32.mrf.mxu0 }
 0x116   :  { %v367_v53 = vadd.f32 %v362_v52, %v3619_v51  ;;  %v3675_v52 = vld [vmem:[#allocation5] sm:$0xff] }
 0x117   :  { %v364_v55 = vpop.f32.mrf.mxu0  ;;  %4904 = vst [vmem:[#allocation26_spill] sm:$0xff] %v3675_v52  ;;  %434 = vmatpush1.msra.mxu0 %v3675_v52 }
 0x118   :  { %v2778_v54 = vmul.f32 -1.442695, %v367_v53  ;;  %v368_v57 = vadd.f32 %v364_v55, %v3622_v56  ;;  %717 = vmatprep.subr.mxu0 %v3564_v24 }
 0x11a   :  { %2846 = vpow2.f32 %v2778_v54  ;;  %v2779_v53 = vmul.f32 -1.442695, %v368_v57 }
 0x11b   :  { %2848 = vtanh.f32 %v368_v57  ;;  %v3723_v57 = vld [vmem:[#allocation7 + $0xe8] sm:$0xff] }
 0x11c   :  { %4908 = vst [vmem:[#allocation29_spill] sm:$0xff] %v3723_v57 }
 0x127   :  { %v2847_v58 = vpop.eup %2846 }
 0x128   :  { %v375_v59 = vadd.f32 1.0, %v2847_v58  ;;  %v2849_v38 = vpop.eup %2848 }
 0x12a   :  { %2850 = vrcp.f32 %v375_v59 }
 0x12b   :  { %2852 = vpow2.f32 %v2779_v53  ;;  %v3730_v53 = vld [vmem:[#allocation7 + $0xd8] sm:$0xff] }
 0x12c   :  { %4910 = vst [vmem:[#allocation31_spill] sm:$0xff] %v3730_v53 }
 0x137   :  { %v2851_v41 = vpop.eup %2850 }
 0x138   :  { %v383_v44 = vmul.f32 %v2851_v41, %v2849_v38  ;;  %v2853_v54 = vpop.eup %2852  ;;  %v382_v58 = vmul.f32 0.0, %v2851_v41  ;;  %v3726_v41 = vld [vmem:[#allocation7 + $0xe0] sm:$0xff] }
 0x139   :  { %v376_v55 = vadd.f32 1.0, %v2853_v54  ;;  %4909 = vst [vmem:[#allocation30_spill] sm:$0xff] %v3726_v41  ;;  %v3733_v54 = vld [vmem:[#allocation7 + $0xd0] sm:$0xff] }
 0x13a   :  { %385 = vrot.lane.b32.xlu0 %v383_v44, %s3391_s3  ;;  %4911 = vst [vmem:[#allocation32_spill] sm:$0xff] %v3733_v54 }
 0x13b   :  { %2854 = vrcp.f32 %v376_v55  ;;  %v3736_v55 = vld [vmem:[#allocation7 + $0xc8] sm:$0xff] }
 0x13c   :  { %4912 = vst [vmem:[#allocation33_spill] sm:$0xff] %v3736_v55 }
 0x148   :  { %v2855_v44 = vpop.eup %2854 }
 0x1ac   :  { %v386_v59 = vpop.permute.xlu0 %385 }
 0x1ad   :  { %v3681_v38 = vadd.f32 %v386_v59, %v382_v58  ;;  %v3739_v58 = vld [vmem:[#allocation7 + $0xc0] sm:$0xff]  ;;  %v3742_v59 = vld [vmem:[#allocation7 + $0xb8] sm:$0xff] }
 0x1ae   :  { %4913 = vst [vmem:[#allocation34_spill] sm:$0xff] %v3739_v58  ;;  %4914 = vst [vmem:[#allocation35_spill] sm:$0xff] %v3742_v59 }
 0x1af   :  { %2856 = vtanh.f32 %v3681_v38 }
 0x1bc   :  { %v2857_v1 = vpop.eup %2856 }
 0x1bd   :  { %v390_v50 = vmul.f32 %v2857_v1, %v2855_v44  ;;  %v3719_v1 = vld [vmem:[#allocation7 + $0xf8] sm:$0xff]  ;;  %v3745_v44 = vld [vmem:[#allocation7 + $0xb0] sm:$0xff] }
 0x1be   :  { %4906 = vst [vmem:[#allocation27_spill] sm:$0xff] %v3719_v1  ;;  %615 = vmatprep.subr.mxu1 %v3719_v1  ;;  %4915 = vst [vmem:[#allocation36_spill] sm:$0xff] %v3745_v44 }
 0x1bf   :  { %2780 = vmatmul.mubr.msk.f32.vlgmr.msra.gmra.mxu0 %vm292_vm2, %v390_v50  ;;  %2783 = vmatmul.mubr.msk.f32.vlgmr.msra.gmra.mxu1 %vm292_vm2, %v390_v50  ;;  %v3721_v50 = vld [vmem:[#allocation7 + $0xf0] sm:$0xff] }
 0x1c0   :  { %679 = vmatprep.mubr.f32.mxu1 %v4905_v48  ;;  %718 = vmatpush1.msra.mxu0 %v3566_v25  ;;  %4907 = vst [vmem:[#allocation28_spill] sm:$0xff] %v3721_v50 }
 0x1c1   :  { %719 = vmatprep.subr.mxu0 %v3568_v26  ;;  %781 = vmatprep.mubr.f32.mxu0 %v4905_v48 }
 0x1c2   :  { %720 = vmatpush1.msra.mxu0 %v3571_v27  ;;  %616 = vmatpush1.msra.mxu1 %v3721_v50 }
 0x1c3   :  { %721 = vmatprep.subr.mxu0 %v3574_v28  ;;  %617 = vmatprep.subr.mxu1 %v3723_v57  ;;  %v3748_v57 = vld [vmem:[#allocation7 + $0xa8] sm:$0xff] }
 0x1c4   :  { %722 = vmatpush1.msra.mxu0 %v3577_v29  ;;  %618 = vmatpush1.msra.mxu1 %v3726_v41  ;;  %4916 = vst [vmem:[#allocation37_spill] sm:$0xff] %v3748_v57  ;;  %v3751_v41 = vld [vmem:[#allocation7 + $0xa0] sm:$0xff] }
 0x1c5   :  { %723 = vmatprep.subr.mxu0 %v3580_v30  ;;  %619 = vmatprep.subr.mxu1 %v3730_v53  ;;  %4917 = vst [vmem:[#allocation38_spill] sm:$0xff] %v3751_v41  ;;  %v3754_v53 = vld [vmem:[#allocation7 + $0x98] sm:$0xff] }
 0x1c6   :  { %724 = vmatpush1.msra.mxu0 %v3583_v31  ;;  %620 = vmatpush1.msra.mxu1 %v3733_v54  ;;  %4918 = vst [vmem:[#allocation39_spill] sm:$0xff] %v3754_v53  ;;  %v3757_v54 = vld [vmem:[#allocation7 + $0x90] sm:$0xff] }
 0x1c7   :  { %725 = vmatprep.subr.mxu0 %v3586_v32  ;;  %621 = vmatprep.subr.mxu1 %v3736_v55  ;;  %4919 = vst [vmem:[#allocation40_spill] sm:$0xff] %v3757_v54  ;;  %v3760_v55 = vld [vmem:[#allocation7 + $0x88] sm:$0xff] }
 0x1c8   :  { %726 = vmatpush1.msra.mxu0 %v3589_v33  ;;  %622 = vmatpush1.msra.mxu1 %v3739_v58  ;;  %4920 = vst [vmem:[#allocation41_spill] sm:$0xff] %v3760_v55 }
 0x1c9   :  { %727 = vmatprep.subr.mxu0 %v3592_v34  ;;  %623 = vmatprep.subr.mxu1 %v3742_v59 }
 0x1ca   :  { %728 = vmatpush1.msra.mxu0 %v3595_v35  ;;  %624 = vmatpush1.msra.mxu1 %v3745_v44  ;;  %v181_v44 = vld [vmem:[%s4697_s5] sm:$0x3] }
 0x1cb   :  { %729 = vmatprep.subr.mxu0 %v3598_v36  ;;  %625 = vmatprep.subr.mxu1 %v3748_v57  ;;  %v3769_v59 = vrot.slane %v181_v44, %v3606_v40 }
 0x1cc   :  { %730 = vmatpush1.msra.mxu0 %v3601_v37  ;;  %626 = vmatpush1.msra.mxu1 %v3751_v41 }
 0x1cd   :  { %731 = vmatprep.subr.mxu0 %v3625_v60  ;;  %627 = vmatprep.subr.mxu1 %v3754_v53  ;;  %4921 = vst [vmem:[#allocation42_spill] sm:$0xff] %v3769_v59 }
 0x1ce   :  { %732 = vmatpush1.msra.mxu0 %v3628_v61  ;;  %628 = vmatpush1.msra.mxu1 %v3757_v54 }
 0x1cf   :  { %733 = vmatprep.subr.mxu0 %v3631_v62  ;;  %629 = vmatprep.subr.mxu1 %v3760_v55  ;;  %v3774_v55 = vrot.slane %v181_v44, %v3611_v43  ;;  %v3803_v44 = vld [vmem:[#allocation7 + $0x38] sm:$0xff] }
 0x1d0   :  { %734 = vmatpush1.msra.mxu0 %v3633_v63  ;;  %4932 = vst [vmem:[#allocation53_spill] sm:$0xff] %v3803_v44 }
 0x1d1   :  { %735 = vmatprep.subr.mxu0 %v3635_v0  ;;  %4922 = vst [vmem:[#allocation43_spill] sm:$0xff] %v3774_v55 }
 0x1d2   :  { %736 = vmatpush1.msra.mxu0 %v3638_v2 }
 0x1d3   :  { %737 = vmatprep.subr.mxu0 %v3641_v3 }
 0x1d4   :  { %738 = vmatpush1.msra.mxu0 %v3644_v4 }
 0x1d5   :  { %739 = vmatprep.subr.mxu0 %v3647_v5 }
 0x1d6   :  { %740 = vmatpush1.msra.mxu0 %v3650_v7 }
 0x1d7   :  { %741 = vmatprep.subr.mxu0 %v3653_v12 }
 0x1d8   :  { %742 = vmatpush1.msra.mxu0 %v3656_v39 }
 0x1d9   :  { %743 = vmatprep.subr.mxu0 %v3659_v42 }
 0x1da   :  { %744 = vmatpush1.msra.mxu0 %v3662_v45 }
 0x1db   :  { %745 = vmatprep.subr.mxu0 %v3665_v46 }
 0x1dc   :  { %746 = vmatpush1.msra.mxu0 %v3669_v47 }
 0x1dd   :  { %747 = vmatprep.subr.mxu0 %v3672_v49 }
 0x1de   :  { %748 = vmatpush1.msra.mxu0 %v3675_v52 }
 0x1df   :  { %923 = vmatprep.subr.mxu0 %v3719_v1 }
 0x27f   :  { %v469_v57 = vpop.f32.mrf.mxu0  ;;  %v565_v58 = vpop.f32.mrf.mxu1 }
 0x280   :  { %v470_v50 = vadd.f32 %v469_v57, %v3769_v59  ;;  %v572_v41 = vrot.slane %v565_v58, 6 }
 0x281   :  { %v567_v54 = vpop.f32.mrf.mxu1  ;;  %v471_v49 = vpop.f32.mrf.mxu0 }
 0x282   :  { %v2781_v1 = vmul.f32 -1.442695, %v470_v50  ;;  %v576_v52 = vadd.f32 %v572_v41, %v3619_v51  ;;  %v573_v47 = vrot.slane %v567_v54, 6  ;;  %v472_v40 = vadd.f32 %v471_v49, %v3774_v55  ;;  %v3784_v41 = vld [vmem:[#allocation7 + $0x70] sm:$0xff]  ;;  %v3786_v49 = vld [vmem:[#allocation7 + $0x68] sm:$0xff]  ;;  %v3800_v54 = vld [vmem:[#allocation7 + $0x40] sm:$0xff] }
 0x283   :  { %4925 = vst [vmem:[#allocation46_spill] sm:$0xff] %v3784_v41  ;;  %4926 = vst [vmem:[#allocation47_spill] sm:$0xff] %v3786_v49  ;;  %v592_v55 = vrot.slane %v3681_v38, 6  ;;  %v3810_v51 = vld [vmem:[#allocation7 + $0x28] sm:$0xff]  ;;  %v3820_v38 = vld [vmem:[#allocation7 + $0x10] sm:$0xff] }
 0x284   :  { %2858 = vpow2.f32 %v2781_v1  ;;  %v2784_v53 = vmul.f32 -1.442695, %v576_v52  ;;  %v577_v45 = vadd.f32 %v573_v47, %v3622_v56  ;;  %v3778_v52 = vld [vmem:[#allocation7 + $0x80] sm:$0xff]  ;;  %v3780_v1 = vld [vmem:[#allocation7 + $0x78] sm:$0xff]  ;;  %4931 = vst [vmem:[#allocation52_spill] sm:$0xff] %v3800_v54  ;;  %4934 = vst [vmem:[#allocation55_spill] sm:$0xff] %v3810_v51 }
 0x285   :  { %4923 = vst [vmem:[#allocation44_spill] sm:$0xff] %v3778_v52  ;;  %4924 = vst [vmem:[#allocation45_spill] sm:$0xff] %v3780_v1  ;;  %630 = vmatpush1.msra.mxu1 %v3778_v52  ;;  %v3788_v47 = vld [vmem:[#allocation7 + $0x60] sm:$0xff] }
 0x286   :  { %2860 = vpow2.f32 %v2784_v53  ;;  %631 = vmatprep.subr.mxu1 %v3780_v1  ;;  %4927 = vst [vmem:[#allocation48_spill] sm:$0xff] %v3788_v47  ;;  %v3797_v53 = vld [vmem:[#allocation7 + $0x48] sm:$0xff]  ;;  %4937 = vst [vmem:[#allocation58_spill] sm:$0xff] %v3820_v38 }
 0x287   :  { %2862 = vtanh.f32 %v472_v40  ;;  %632 = vmatpush1.msra.mxu1 %v3784_v41  ;;  %4930 = vst [vmem:[#allocation51_spill] sm:$0xff] %v3797_v53 }
 0x288   :  { %633 = vmatprep.subr.mxu1 %v3786_v49 }
 0x289   :  { %634 = vmatpush1.msra.mxu1 %v3788_v47 }
 0x291   :  { %v2859_v46 = vpop.eup %2858 }
 0x292   :  { %v480_v42 = vadd.f32 1.0, %v2859_v46  ;;  %v3794_v46 = vld [vmem:[#allocation7 + $0x50] sm:$0xff] }
 0x293   :  { %v2861_v57 = vpop.eup %2860  ;;  %4929 = vst [vmem:[#allocation50_spill] sm:$0xff] %v3794_v46 }
 0x294   :  { %2864 = vrcp.f32 %v480_v42  ;;  %v584_v50 = vadd.f32 1.0, %v2861_v57  ;;  %v3791_v42 = vld [vmem:[#allocation7 + $0x58] sm:$0xff]  ;;  %v2863_v58 = vpop.eup %2862 }
 0x295   :  { %2866 = vtanh.f32 %v577_v45  ;;  %4928 = vst [vmem:[#allocation49_spill] sm:$0xff] %v3791_v42  ;;  %635 = vmatprep.subr.mxu1 %v3791_v42  ;;  %v3813_v42 = vld [vmem:[#allocation7 + $0x20] sm:$0xff] }
 0x296   :  { %2868 = vrcp.f32 %v584_v50  ;;  %636 = vmatpush1.msra.mxu1 %v3794_v46  ;;  %v3806_v50 = vld [vmem:[#allocation7 + $0x30] sm:$0xff]  ;;  %4935 = vst [vmem:[#allocation56_spill] sm:$0xff] %v3813_v42 }
 0x297   :  { %637 = vmatprep.subr.mxu1 %v3797_v53  ;;  %4933 = vst [vmem:[#allocation54_spill] sm:$0xff] %v3806_v50  ;;  %v3817_v53 = vld [vmem:[#allocation7 + $0x18] sm:$0xff] }
 0x298   :  { %638 = vmatpush1.msra.mxu1 %v3800_v54  ;;  %4936 = vst [vmem:[#allocation57_spill] sm:$0xff] %v3817_v53 }
 0x299   :  { %639 = vmatprep.subr.mxu1 %v3803_v44  ;;  %v3827_v44 = vld [vmem:[#allocation7] sm:$0xff] }
 0x29a   :  { %640 = vmatpush1.msra.mxu1 %v3806_v50  ;;  %4939 = vst [vmem:[#allocation60_spill] sm:$0xff] %v3827_v44 }
 0x29b   :  { %641 = vmatprep.subr.mxu1 %v3810_v51 }
 0x29c   :  { %642 = vmatpush1.msra.mxu1 %v3813_v42 }
 0x29d   :  { %643 = vmatprep.subr.mxu1 %v3817_v53 }
 0x29e   :  { %644 = vmatpush1.msra.mxu1 %v3820_v38 }
 0x2a1   :  { %v2865_v57 = vpop.eup %2864 }
 0x2a2   :  { %v2867_v56 = vpop.eup %2866  ;;  %v488_v59 = vmul.f32 %v2865_v57, %v2863_v58  ;;  %v3824_v58 = vld [vmem:[#allocation7 + $0x8] sm:$0xff]  ;;  %v487_v42 = vmul.f32 0.0, %v2865_v57 }
 0x2a3   :  { %v2869_v43 = vpop.eup %2868  ;;  %4938 = vst [vmem:[#allocation59_spill] sm:$0xff] %v3824_v58  ;;  %645 = vmatprep.subr.mxu1 %v3824_v58 }
 0x2a4   :  { %490 = vrot.lane.b32.xlu0 %v488_v59, %s3391_s3  ;;  %v595_v46 = vmul.f32 %v2869_v43, %v2867_v56  ;;  %v594_v47 = vmul.f32 %v2869_v43, %v592_v55  ;;  %646 = vmatpush1.msra.mxu1 %v3827_v44  ;;  %v2782_v43 = vmul.f32 -1.442695, %v472_v40  ;;  %v2785_v56 = vmul.f32 -1.442695, %v577_v45 }
 0x2a5   :  { %830 = vmatprep.subr.mxu1 %v3488_v6 }
 0x2a6   :  { %597 = vrot.lane.b32.xlu1 %v595_v46, %s3391_s3  ;;  %2870 = vpow2.f32 %v2782_v43 }
 0x2a7   :  { %2872 = vpow2.f32 %v2785_v56 }
 0x2b3   :  { %v2871_v55 = vpop.eup %2870 }
 0x2b4   :  { %v2873_v59 = vpop.eup %2872  ;;  %v481_v46 = vadd.f32 1.0, %v2871_v55 }
 0x2b5   :  { %v585_v51 = vadd.f32 1.0, %v2873_v59  ;;  %v4945_v59 = vld [vmem:[#allocation26_spill] sm:$0xff] }
 0x2b6   :  { %2874 = vrcp.f32 %v481_v46  ;;  %v4946_v46 = vld [vmem:[#allocation27_spill] sm:$0xff] }
 0x2c3   :  { %v2875_v40 = vpop.eup %2874 }
 0x316   :  { %v491_v53 = vpop.permute.xlu0 %490 }
 0x317   :  { %v3833_v50 = vadd.f32 %v491_v53, %v487_v42  ;;  %v4942_v42 = vld [vmem:[#allocation23_spill] sm:$0xff]  ;;  %v4943_v53 = vld [vmem:[#allocation24_spill] sm:$0xff] }
 0x318   :  { %v598_v38 = vpop.permute.xlu1 %597 }
 0x319   :  { %2876 = vtanh.f32 %v3833_v50  ;;  %v3836_v58 = vadd.f32 %v598_v38, %v594_v47  ;;  %v4941_v47 = vld [vmem:[#allocation22_spill] sm:$0xff]  ;;  %v4944_v38 = vld [vmem:[#allocation25_spill] sm:$0xff] }
 0x31a   :  { %2878 = vrcp.f32 %v585_v51  ;;  %v4940_v51 = vld [vmem:[#allocation21_spill] sm:$0xff] }
 0x31b   :  { %2880 = vtanh.f32 %v3836_v58 }
 0x326   :  { %v2877_v45 = vpop.eup %2876 }
 0x327   :  { %v2879_v43 = vpop.eup %2878  ;;  %v495_v56 = vmul.f32 %v2877_v45, %v2875_v40 }
 0x328   :  { %v2881_v6 = vpop.eup %2880 }
 0x329   :  { %2786 = vmatmul.mubr.msk.f32.vlgmr.msra.gmra.mxu1 %vm292_vm2, %v495_v56  ;;  %v709_v57 = vrot.slane %v495_v56, 6  ;;  %v602_v55 = vmul.f32 %v2881_v6, %v2879_v43  ;;  %v4947_v56 = vld [vmem:[#allocation28_spill] sm:$0xff] }
 0x32a   :  { %831 = vmatpush1.msra.mxu1 %v3493_v8  ;;  %878 = vmatprep.mubr.f32.mxu1 %v4905_v48 }
 0x32b   :  { %832 = vmatprep.subr.mxu1 %v3496_v9  ;;  %710 = vrot.lane.b32.xlu1 %v709_v57, %s3391_s3  ;;  %v811_v6 = vrot.slane %v602_v55, 2  ;;  %v4948_v57 = vld [vmem:[#allocation29_spill] sm:$0xff] }
 0x32c   :  { %833 = vmatpush1.msra.mxu1 %v3502_v10 }
 0x32d   :  { %834 = vmatprep.subr.mxu1 %v3505_v11 }
 0x32e   :  { %835 = vmatpush1.msra.mxu1 %v3512_v13 }
 0x32f   :  { %836 = vmatprep.subr.mxu1 %v3516_v14 }
 0x330   :  { %837 = vmatpush1.msra.mxu1 %v3520_v15 }
 0x331   :  { %838 = vmatprep.subr.mxu1 %v3524_v16 }
 0x332   :  { %839 = vmatpush1.msra.mxu1 %v3528_v17 }
 0x333   :  { %840 = vmatprep.subr.mxu1 %v3532_v18 }
 0x334   :  { %841 = vmatpush1.msra.mxu1 %v3536_v19 }
 0x335   :  { %842 = vmatprep.subr.mxu1 %v3540_v20 }
 0x336   :  { %843 = vmatpush1.msra.mxu1 %v3544_v21 }
 0x337   :  { %844 = vmatprep.subr.mxu1 %v3548_v22 }
 0x338   :  { %845 = vmatpush1.msra.mxu1 %v3552_v23 }
 0x339   :  { %2791 = vmatmul.mubr.msk.f32.vlgmr.msra.gmra.mxu1 %vm292_vm2, %v811_v6  ;;  %1025 = vmatprep.subr.mxu1 %v3564_v24  ;;  %v4949_v6 = vld [vmem:[#allocation30_spill] sm:$0xff] }
 0x33a   :  { %1026 = vmatpush1.msra.mxu1 %v3566_v25  ;;  %1089 = vmatprep.mubr.f32.mxu1 %v4905_v48 }
 0x33b   :  { %1027 = vmatprep.subr.mxu1 %v3568_v26 }
 0x33c   :  { %1028 = vmatpush1.msra.mxu1 %v3571_v27 }
 0x33d   :  { %1029 = vmatprep.subr.mxu1 %v3574_v28 }
 0x33e   :  { %1030 = vmatpush1.msra.mxu1 %v3577_v29 }
 0x33f   :  { %1031 = vmatprep.subr.mxu1 %v3580_v30 }
 0x340   :  { %1032 = vmatpush1.msra.mxu1 %v3583_v31 }
 0x341   :  { %1033 = vmatprep.subr.mxu1 %v3586_v32 }
 0x342   :  { %1034 = vmatpush1.msra.mxu1 %v3589_v33 }
 0x343   :  { %1035 = vmatprep.subr.mxu1 %v3592_v34 }
 0x344   :  { %1036 = vmatpush1.msra.mxu1 %v3595_v35 }
 0x345   :  { %1037 = vmatprep.subr.mxu1 %v3598_v36 }
 0x346   :  { %1038 = vmatpush1.msra.mxu1 %v3601_v37 }
 0x347   :  { %1039 = vmatprep.subr.mxu1 %v3625_v60 }
 0x348   :  { %1040 = vmatpush1.msra.mxu1 %v3628_v61 }
 0x349   :  { %1041 = vmatprep.subr.mxu1 %v3631_v62 }
 0x34a   :  { %1042 = vmatpush1.msra.mxu1 %v3633_v63 }
 0x34b   :  { %1043 = vmatprep.subr.mxu1 %v3635_v0 }
 0x34c   :  { %1044 = vmatpush1.msra.mxu1 %v3638_v2 }
 0x34d   :  { %1045 = vmatprep.subr.mxu1 %v3641_v3 }
 0x34e   :  { %1046 = vmatpush1.msra.mxu1 %v3644_v4 }
 0x34f   :  { %1047 = vmatprep.subr.mxu1 %v3647_v5 }
 0x350   :  { %1048 = vmatpush1.msra.mxu1 %v3650_v7 }
 0x351   :  { %1049 = vmatprep.subr.mxu1 %v3653_v12 }
 0x352   :  { %1050 = vmatpush1.msra.mxu1 %v3656_v39 }
 0x353   :  { %1051 = vmatprep.subr.mxu1 %v4940_v51 }
 0x354   :  { %1052 = vmatpush1.msra.mxu1 %v4941_v47 }
 0x355   :  { %1053 = vmatprep.subr.mxu1 %v4942_v42  ;;  %v4954_v42 = vld [vmem:[#allocation35_spill] sm:$0xff] }
 0x356   :  { %1054 = vmatpush1.msra.mxu1 %v4943_v53  ;;  %v4950_v53 = vld [vmem:[#allocation31_spill] sm:$0xff] }
 0x357   :  { %1055 = vmatprep.subr.mxu1 %v4944_v38  ;;  %v4951_v38 = vld [vmem:[#allocation32_spill] sm:$0xff] }
 0x358   :  { %1056 = vmatpush1.msra.mxu1 %v4945_v59  ;;  %v4952_v59 = vld [vmem:[#allocation33_spill] sm:$0xff] }
 0x359   :  { %1231 = vmatprep.subr.mxu1 %v4946_v46  ;;  %v4953_v46 = vld [vmem:[#allocation34_spill] sm:$0xff] }
 0x39d   :  { %v711_v40 = vpop.permute.xlu1 %710 }
 0x39e   :  { %v713_v45 = vsel %vm292_vm2, %v602_v55, %v711_v40  ;;  %v4955_v55 = vld [vmem:[#allocation36_spill] sm:$0xff]  ;;  %v4956_v40 = vld [vmem:[#allocation37_spill] sm:$0xff] }
 0x39f   :  { %v715_v43 = vrot.slane %v713_v45, 2  ;;  %v4957_v45 = vld [vmem:[#allocation38_spill] sm:$0xff] }
 0x3a1   :  { %782 = vmatmul.mubr.f32.vlgmr.msra.gmra.mxu0 %v715_v43  ;;  %v4958_v43 = vld [vmem:[#allocation39_spill] sm:$0xff] }
 0x3a2   :  { %924 = vmatpush1.msra.mxu0 %v4947_v56  ;;  %987 = vmatprep.mubr.f32.mxu0 %v4905_v48 }
 0x3a3   :  { %925 = vmatprep.subr.mxu0 %v4948_v57  ;;  %v4959_v57 = vld [vmem:[#allocation40_spill] sm:$0xff] }
 0x3a4   :  { %926 = vmatpush1.msra.mxu0 %v4949_v6  ;;  %v4960_v6 = vld [vmem:[#allocation41_spill] sm:$0xff] }
 0x3a5   :  { %927 = vmatprep.subr.mxu0 %v4950_v53 }
 0x3a6   :  { %928 = vmatpush1.msra.mxu0 %v4951_v38 }
 0x3a7   :  { %929 = vmatprep.subr.mxu0 %v4952_v59 }
 0x3a8   :  { %930 = vmatpush1.msra.mxu0 %v4953_v46 }
 0x3a9   :  { %931 = vmatprep.subr.mxu0 %v4954_v42  ;;  %v4961_v42 = vld [vmem:[#allocation48_spill] sm:$0xff] }
 0x3aa   :  { %932 = vmatpush1.msra.mxu0 %v4955_v55  ;;  %v4962_v55 = vld [vmem:[#allocation49_spill] sm:$0xff] }
 0x3ab   :  { %933 = vmatprep.subr.mxu0 %v4956_v40  ;;  %v4963_v40 = vld [vmem:[#allocation50_spill] sm:$0xff] }
 0x3ac   :  { %934 = vmatpush1.msra.mxu0 %v4957_v45  ;;  %v4964_v45 = vld [vmem:[#allocation51_spill] sm:$0xff] }
 0x3ad   :  { %935 = vmatprep.subr.mxu0 %v4958_v43 }
 0x3ae   :  { %936 = vmatpush1.msra.mxu0 %v4959_v57  ;;  %v4965_v57 = vld [vmem:[#allocation53_spill] sm:$0xff] }
 0x3af   :  { %937 = vmatprep.subr.mxu0 %v4960_v6  ;;  %v4966_v6 = vld [vmem:[#allocation54_spill] sm:$0xff] }
 0x3b0   :  { %938 = vmatpush1.msra.mxu0 %v3778_v52  ;;  %v4967_v52 = vld [vmem:[#allocation55_spill] sm:$0xff] }
 0x3b1   :  { %939 = vmatprep.subr.mxu0 %v3780_v1  ;;  %v4968_v1 = vld [vmem:[#allocation56_spill] sm:$0xff] }
 0x3b2   :  { %940 = vmatpush1.msra.mxu0 %v3784_v41  ;;  %v4969_v41 = vld [vmem:[#allocation57_spill] sm:$0xff] }
 0x3b3   :  { %941 = vmatprep.subr.mxu0 %v3786_v49  ;;  %v4970_v49 = vld [vmem:[#allocation58_spill] sm:$0xff] }
 0x3b4   :  { %942 = vmatpush1.msra.mxu0 %v4961_v42  ;;  %v4971_v42 = vld [vmem:[#allocation59_spill] sm:$0xff] }
 0x3b5   :  { %943 = vmatprep.subr.mxu0 %v4962_v55 }
 0x3b6   :  { %944 = vmatpush1.msra.mxu0 %v4963_v40  ;;  %v4972_v40 = vld [vmem:[#allocation14_spill] sm:$0xff] }
 0x3b7   :  { %945 = vmatprep.subr.mxu0 %v4964_v45  ;;  %v182_v45 = vld [vmem:[#allocation8] sm:$0x3] }
 0x3b8   :  { %946 = vmatpush1.msra.mxu0 %v3800_v54  ;;  %v4973_v54 = vld [vmem:[#allocation15_spill] sm:$0xff] }
 0x3b9   :  { %947 = vmatprep.subr.mxu0 %v4965_v57  ;;  %v3927_v55 = vrot.slane %v182_v45, %v4973_v54 }
 0x3ba   :  { %948 = vmatpush1.msra.mxu0 %v4966_v6 }
 0x3bb   :  { %949 = vmatprep.subr.mxu0 %v4967_v52  ;;  %4974 = vst [vmem:[#allocation14_spill] sm:$0xff] %v3927_v55 }
 0x3bc   :  { %950 = vmatpush1.msra.mxu0 %v4968_v1  ;;  %v4975_v1 = vld [vmem:[#allocation16_spill] sm:$0xff] }
 0x3bd   :  { %951 = vmatprep.subr.mxu0 %v4969_v41  ;;  %v3931_v43 = vrot.slane %v182_v45, %v4975_v1 }
 0x3be   :  { %952 = vmatpush1.msra.mxu0 %v4970_v49 }
 0x3bf   :  { %953 = vmatprep.subr.mxu0 %v4971_v42  ;;  %4976 = vst [vmem:[#allocation15_spill] sm:$0xff] %v3931_v43 }
 0x3c0   :  { %954 = vmatpush1.msra.mxu0 %v3827_v44 }
 0x3c1   :  { %1138 = vmatprep.subr.mxu0 %v4972_v40  ;;  %v4977_v40 = vld [vmem:[#allocation19_spill] sm:$0xff] }
 0x3e9   :  { %v681_v57 = vpop.f32.mrf.mxu1 }
 0x3ea   :  { %v682_v6 = vadd.f32 %v681_v57, %v3927_v55 }
 0x3eb   :  { %v683_v41 = vpop.f32.mrf.mxu1 }
 0x3ec   :  { %v2787_v52 = vmul.f32 -1.442695, %v682_v6  ;;  %v684_v49 = vadd.f32 %v683_v41, %v3931_v43  ;;  %v907_v41 = vrot.slane %v3836_v58, 6 }
 0x3ee   :  { %2882 = vpow2.f32 %v2787_v52 }
 0x3ef   :  { %2884 = vtanh.f32 %v684_v49 }
 0x3f9   :  { %v880_v42 = vpop.f32.mrf.mxu1 }
 0x3fa   :  { %v887_v46 = vrot.slane %v880_v42, 4 }
 0x3fb   :  { %v2883_v44 = vpop.eup %2882 }
 0x3fc   :  { %v692_v59 = vadd.f32 1.0, %v2883_v44  ;;  %v891_v38 = vadd.f32 %v887_v46, %v4977_v40  ;;  %v2885_v53 = vpop.eup %2884  ;;  %v4978_v44 = vld [vmem:[#allocation42_spill] sm:$0xff]  ;;  %v4979_v40 = vld [vmem:[#allocation43_spill] sm:$0xff] }
 0x3fe   :  { %2886 = vrcp.f32 %v692_v59  ;;  %v2792_v54 = vmul.f32 -1.442695, %v891_v38  ;;  %v2788_v59 = vmul.f32 -1.442695, %v684_v49 }
 0x400   :  { %2888 = vpow2.f32 %v2792_v54  ;;  %v882_v54 = vpop.f32.mrf.mxu1 }
 0x401   :  { %v888_v56 = vrot.slane %v882_v54, 4 }
 0x40b   :  { %v2887_v57 = vpop.eup %2886 }
 0x40c   :  { %v700_v6 = vmul.f32 %v2887_v57, %v2885_v53  ;;  %v699_v51 = vmul.f32 0.0, %v2887_v57 }
 0x40d   :  { %v2889_v52 = vpop.eup %2888 }
 0x40e   :  { %702 = vrot.lane.b32.xlu0 %v700_v6, %s3391_s3  ;;  %v899_v1 = vadd.f32 1.0, %v2889_v52  ;;  %v4980_v52 = vld [vmem:[#allocation20_spill] sm:$0xff] }
 0x410   :  { %2890 = vrcp.f32 %v899_v1  ;;  %v892_v1 = vadd.f32 %v888_v56, %v4980_v52 }
 0x41d   :  { %v2891_v45 = vpop.eup %2890 }
 0x41e   :  { %v909_v42 = vmul.f32 %v2891_v45, %v907_v41 }
 0x461   :  { %v783_v43 = vpop.f32.mrf.mxu0 }
 0x462   :  { %v784_v55 = vadd.f32 %v783_v43, %v4978_v44 }
 0x463   :  { %v785_v38 = vpop.f32.mrf.mxu0 }
 0x464   :  { %v2789_v46 = vmul.f32 -1.442695, %v784_v55  ;;  %v786_v53 = vadd.f32 %v785_v38, %v4979_v40 }
 0x466   :  { %2892 = vpow2.f32 %v2789_v46  ;;  %v2790_v57 = vmul.f32 -1.442695, %v786_v53 }
 0x467   :  { %2894 = vpow2.f32 %v2788_v59 }
 0x468   :  { %2896 = vtanh.f32 %v786_v53 }
 0x473   :  { %v2893_v47 = vpop.eup %2892 }
 0x474   :  { %v794_v6 = vadd.f32 1.0, %v2893_v47  ;;  %v2895_v58 = vpop.eup %2894 }
 0x475   :  { %v693_v41 = vadd.f32 1.0, %v2895_v58  ;;  %v2897_v49 = vpop.eup %2896 }
 0x476   :  { %2898 = vrcp.f32 %v794_v6 }
 0x477   :  { %2900 = vtanh.f32 %v892_v1 }
 0x478   :  { %2902 = vrcp.f32 %v693_v41 }
 0x480   :  { %v703_v43 = vpop.permute.xlu0 %702 }
 0x481   :  { %v3940_v55 = vadd.f32 %v703_v43, %v699_v51  ;;  %v2793_v51 = vmul.f32 -1.442695, %v892_v1 }
 0x483   :  { %4981 = vst [vmem:[#allocation16_spill] sm:$0xff] %v3940_v55  ;;  %v2899_v46 = vpop.eup %2898  ;;  %2904 = vtanh.f32 %v3940_v55 }
 0x484   :  { %v802_v59 = vmul.f32 %v2899_v46, %v2897_v49  ;;  %v2901_v47 = vpop.eup %2900  ;;  %2906 = vpow2.f32 %v2790_v57  ;;  %v801_v49 = vmul.f32 %v2899_v46, %v3833_v50 }
 0x485   :  { %v910_v38 = vmul.f32 %v2901_v47, %v2891_v45  ;;  %v2903_v56 = vpop.eup %2902  ;;  %2908 = vpow2.f32 %v2793_v51  ;;  %v4039_v51 = vld [vmem:[#allocation3 + $0x78] sm:$0xff] }
 0x486   :  { %804 = vrot.lane.b32.xlu1 %v802_v59, %s3391_s3 }
 0x48a   :  { %912 = vrot.lane.b32.xlu1 %v910_v38, %s3391_s3 }
 0x490   :  { %v2905_v54 = vpop.eup %2904 }
 0x491   :  { %v707_v6 = vmul.f32 %v2905_v54, %v2903_v56  ;;  %v2907_v58 = vpop.eup %2906 }
 0x492   :  { %v795_v41 = vadd.f32 1.0, %v2907_v58  ;;  %v2909_v43 = vpop.eup %2908 }
 0x493   :  { %919 = vrot.lane.b32.xlu0 %v707_v6, %s3391_s3  ;;  %v900_v45 = vadd.f32 1.0, %v2909_v43 }
 0x494   :  { %2910 = vrcp.f32 %v795_v41  ;;  %v5020_v41 = vld [vmem:[#allocation14_spill] sm:$0xff] }
 0x4a1   :  { %v2911_v53 = vpop.eup %2910 }
 0x4f8   :  { %v805_v55 = vpop.permute.xlu1 %804 }
 0x4f9   :  { %v3947_v59 = vadd.f32 %v805_v55, %v801_v49 }
 0x4fb   :  { %2912 = vtanh.f32 %v3947_v59 }
 0x4fc   :  { %v913_v47 = vpop.permute.xlu1 %912  ;;  %2914 = vrcp.f32 %v900_v45 }
 0x4fd   :  { %v3950_v38 = vadd.f32 %v913_v47, %v909_v42  ;;  %v5019_v42 = vld [vmem:[#allocation60_spill] sm:$0xff]  ;;  %v5021_v47 = vld [vmem:[#allocation15_spill] sm:$0xff] }
 0x4ff   :  { %2916 = vtanh.f32 %v3950_v38 }
 0x505   :  { %v920_v54 = vpop.permute.xlu0 %919 }
 0x508   :  { %v2913_v1 = vpop.eup %2912 }
 0x509   :  { %v809_v56 = vmul.f32 %v2913_v1, %v2911_v53  ;;  %v2915_v6 = vpop.eup %2914 }
 0x50b   :  { %v922_v50 = vsel %vm292_vm2, %v809_v56, %v920_v54  ;;  %v1017_v46 = vrot.slane %v809_v56, 4 }
 0x50c   :  { %v2917_v55 = vpop.eup %2916  ;;  %988 = vmatmul.mubr.f32.vlgmr.msra.gmra.mxu0 %v922_v50  ;;  %v5022_v50 = vld [vmem:[#allocation19_spill] sm:$0xff] }
 0x50d   :  { %1139 = vmatpush1.msra.mxu0 %v3493_v8  ;;  %1018 = vrot.lane.b32.xlu0 %v1017_v46, %s3391_s3  ;;  %v917_v57 = vmul.f32 %v2917_v55, %v2915_v6 }
 0x50e   :  { %1140 = vmatprep.subr.mxu0 %v3496_v9  ;;  %1186 = vmatprep.mubr.f32.mxu0 %v4905_v48  ;;  %v4982_v9 = vld [vmem:[#allocation21_spill] sm:$0xff] }
 0x50f   :  { %1141 = vmatpush1.msra.mxu0 %v3502_v10  ;;  %v1119_v8 = vrot.slane %v917_v57, 4  ;;  %v4983_v10 = vld [vmem:[#allocation22_spill] sm:$0xff] }
 0x510   :  { %1142 = vmatprep.subr.mxu0 %v3505_v11  ;;  %v4984_v11 = vld [vmem:[#allocation23_spill] sm:$0xff] }
 0x511   :  { %1143 = vmatpush1.msra.mxu0 %v3512_v13  ;;  %v4985_v13 = vld [vmem:[#allocation24_spill] sm:$0xff] }
 0x512   :  { %1144 = vmatprep.subr.mxu0 %v3516_v14  ;;  %v4986_v14 = vld [vmem:[#allocation25_spill] sm:$0xff] }
 0x513   :  { %1145 = vmatpush1.msra.mxu0 %v3520_v15  ;;  %v4987_v15 = vld [vmem:[#allocation26_spill] sm:$0xff] }
 0x514   :  { %1146 = vmatprep.subr.mxu0 %v3524_v16  ;;  %v4988_v16 = vld [vmem:[#allocation27_spill] sm:$0xff] }
 0x515   :  { %1147 = vmatpush1.msra.mxu0 %v3528_v17 }
 0x516   :  { %1148 = vmatprep.subr.mxu0 %v3532_v18 }
 0x517   :  { %1149 = vmatpush1.msra.mxu0 %v3536_v19 }
 0x518   :  { %1150 = vmatprep.subr.mxu0 %v3540_v20  ;;  %v4989_v20 = vld [vmem:[#allocation28_spill] sm:$0xff] }
 0x519   :  { %1151 = vmatpush1.msra.mxu0 %v3544_v21  ;;  %v4990_v21 = vld [vmem:[#allocation29_spill] sm:$0xff] }
 0x51a   :  { %1152 = vmatprep.subr.mxu0 %v3548_v22  ;;  %v4991_v22 = vld [vmem:[#allocation30_spill] sm:$0xff] }
 0x51b   :  { %1153 = vmatpush1.msra.mxu0 %v3552_v23  ;;  %v4992_v23 = vld [vmem:[#allocation31_spill] sm:$0xff] }
 0x51c   :  { %2798 = vmatmul.mubr.msk.f32.vlgmr.msra.gmra.mxu0 %vm292_vm2, %v1119_v8  ;;  %1333 = vmatprep.subr.mxu0 %v3564_v24  ;;  %v4993_v24 = vld [vmem:[#allocation32_spill] sm:$0xff] }
 0x51d   :  { %1334 = vmatpush1.msra.mxu0 %v3566_v25  ;;  %1397 = vmatprep.mubr.f32.mxu0 %v4905_v48  ;;  %v4994_v25 = vld [vmem:[#allocation33_spill] sm:$0xff] }
 0x51e   :  { %1335 = vmatprep.subr.mxu0 %v3568_v26  ;;  %v4995_v26 = vld [vmem:[#allocation34_spill] sm:$0xff] }
 0x51f   :  { %1336 = vmatpush1.msra.mxu0 %v3571_v27  ;;  %v4996_v27 = vld [vmem:[#allocation35_spill] sm:$0xff] }
 0x520   :  { %1337 = vmatprep.subr.mxu0 %v3574_v28  ;;  %v4997_v28 = vld [vmem:[#allocation36_spill] sm:$0xff] }
 0x521   :  { %1338 = vmatpush1.msra.mxu0 %v3577_v29  ;;  %v4998_v29 = vld [vmem:[#allocation37_spill] sm:$0xff] }
 0x522   :  { %1339 = vmatprep.subr.mxu0 %v3580_v30  ;;  %v4999_v30 = vld [vmem:[#allocation38_spill] sm:$0xff] }
 0x523   :  { %1340 = vmatpush1.msra.mxu0 %v3583_v31  ;;  %v5000_v31 = vld [vmem:[#allocation39_spill] sm:$0xff] }
 0x524   :  { %1341 = vmatprep.subr.mxu0 %v3586_v32  ;;  %v5001_v32 = vld [vmem:[#allocation40_spill] sm:$0xff] }
 0x525   :  { %1342 = vmatpush1.msra.mxu0 %v3589_v33  ;;  %v5002_v33 = vld [vmem:[#allocation41_spill] sm:$0xff] }
 0x526   :  { %1343 = vmatprep.subr.mxu0 %v3592_v34  ;;  %v5003_v34 = vld [vmem:[#allocation44_spill] sm:$0xff] }
 0x527   :  { %1344 = vmatpush1.msra.mxu0 %v3595_v35  ;;  %v5004_v35 = vld [vmem:[#allocation45_spill] sm:$0xff] }
 0x528   :  { %1345 = vmatprep.subr.mxu0 %v3598_v36  ;;  %v5005_v36 = vld [vmem:[#allocation46_spill] sm:$0xff] }
 0x529   :  { %1346 = vmatpush1.msra.mxu0 %v3601_v37  ;;  %v5006_v37 = vld [vmem:[#allocation47_spill] sm:$0xff] }
 0x52a   :  { %1347 = vmatprep.subr.mxu0 %v3625_v60  ;;  %v5007_v60 = vld [vmem:[#allocation48_spill] sm:$0xff] }
 0x52b   :  { %1348 = vmatpush1.msra.mxu0 %v3628_v61  ;;  %v5008_v61 = vld [vmem:[#allocation49_spill] sm:$0xff] }
 0x52c   :  { %1349 = vmatprep.subr.mxu0 %v3631_v62  ;;  %v5009_v62 = vld [vmem:[#allocation50_spill] sm:$0xff] }
 0x52d   :  { %1350 = vmatpush1.msra.mxu0 %v3633_v63  ;;  %v5010_v63 = vld [vmem:[#allocation51_spill] sm:$0xff] }
 0x52e   :  { %1351 = vmatprep.subr.mxu0 %v3635_v0  ;;  %v5011_v0 = vld [vmem:[#allocation52_spill] sm:$0xff] }
 0x52f   :  { %1352 = vmatpush1.msra.mxu0 %v3638_v2  ;;  %v5012_v2 = vld [vmem:[#allocation53_spill] sm:$0xff] }
 0x530   :  { %1353 = vmatprep.subr.mxu0 %v3641_v3  ;;  %v5013_v3 = vld [vmem:[#allocation54_spill] sm:$0xff] }
 0x531   :  { %1354 = vmatpush1.msra.mxu0 %v3644_v4  ;;  %v5014_v4 = vld [vmem:[#allocation55_spill] sm:$0xff] }
 0x532   :  { %1355 = vmatprep.subr.mxu0 %v3647_v5  ;;  %v5015_v5 = vld [vmem:[#allocation56_spill] sm:$0xff] }
 0x533   :  { %1356 = vmatpush1.msra.mxu0 %v3650_v7  ;;  %v5016_v7 = vld [vmem:[#allocation57_spill] sm:$0xff] }
 0x534   :  { %1357 = vmatprep.subr.mxu0 %v3653_v12  ;;  %v5017_v12 = vld [vmem:[#allocation58_spill] sm:$0xff] }
 0x535   :  { %1358 = vmatpush1.msra.mxu0 %v3656_v39  ;;  %v5018_v39 = vld [vmem:[#allocation59_spill] sm:$0xff] }
 0x536   :  { %1359 = vmatprep.subr.mxu0 %v4982_v9 }
 0x537   :  { %1360 = vmatpush1.msra.mxu0 %v4983_v10 }
 0x538   :  { %1361 = vmatprep.subr.mxu0 %v4984_v11 }
 0x539   :  { %1362 = vmatpush1.msra.mxu0 %v4985_v13  ;;  %v1215_v13 = vrot.slane %v3950_v38, 6 }
 0x53a   :  { %1363 = vmatprep.subr.mxu0 %v4986_v14 }
 0x53b   :  { %1364 = vmatpush1.msra.mxu0 %v4987_v15 }
 0x53c   :  { %1533 = vmatprep.subr.mxu0 %v4988_v16 }
 0x57f   :  { %v1019_v17 = vpop.permute.xlu0 %1018 }
 0x580   :  { %v1021_v18 = vsel %vm292_vm2, %v917_v57, %v1019_v17 }
 0x581   :  { %v1023_v19 = vrot.slane %v1021_v18, 4 }
 0x583   :  { %1090 = vmatmul.mubr.f32.vlgmr.msra.gmra.mxu1 %v1023_v19 }
 0x584   :  { %1232 = vmatpush1.msra.mxu1 %v4989_v20  ;;  %1295 = vmatprep.mubr.f32.mxu1 %v4905_v48 }
 0x585   :  { %1233 = vmatprep.subr.mxu1 %v4990_v21 }
 0x586   :  { %1234 = vmatpush1.msra.mxu1 %v4991_v22 }
 0x587   :  { %1235 = vmatprep.subr.mxu1 %v4992_v23 }
 0x588   :  { %1236 = vmatpush1.msra.mxu1 %v4993_v24 }
 0x589   :  { %1237 = vmatprep.subr.mxu1 %v4994_v25 }
 0x58a   :  { %1238 = vmatpush1.msra.mxu1 %v4995_v26 }
 0x58b   :  { %1239 = vmatprep.subr.mxu1 %v4996_v27 }
 0x58c   :  { %1240 = vmatpush1.msra.mxu1 %v4997_v28  ;;  %v5023_v28 = vld [vmem:[#allocation16_spill] sm:$0xff] }
 0x58d   :  { %1241 = vmatprep.subr.mxu1 %v4998_v29 }
 0x58e   :  { %1242 = vmatpush1.msra.mxu1 %v4999_v30 }
 0x58f   :  { %1243 = vmatprep.subr.mxu1 %v5000_v31 }
 0x590   :  { %1244 = vmatpush1.msra.mxu1 %v5001_v32 }
 0x591   :  { %1245 = vmatprep.subr.mxu1 %v5002_v33 }
 0x592   :  { %1246 = vmatpush1.msra.mxu1 %v5003_v34 }
 0x593   :  { %1247 = vmatprep.subr.mxu1 %v5004_v35 }
 0x594   :  { %1248 = vmatpush1.msra.mxu1 %v5005_v36 }
 0x595   :  { %1249 = vmatprep.subr.mxu1 %v5006_v37 }
 0x596   :  { %1250 = vmatpush1.msra.mxu1 %v5007_v60 }
 0x597   :  { %1251 = vmatprep.subr.mxu1 %v5008_v61 }
 0x598   :  { %1252 = vmatpush1.msra.mxu1 %v5009_v62 }
 0x599   :  { %1253 = vmatprep.subr.mxu1 %v5010_v63 }
 0x59a   :  { %1254 = vmatpush1.msra.mxu1 %v5011_v0 }
 0x59b   :  { %1255 = vmatprep.subr.mxu1 %v5012_v2 }
 0x59c   :  { %1256 = vmatpush1.msra.mxu1 %v5013_v3 }
 0x59d   :  { %1257 = vmatprep.subr.mxu1 %v5014_v4 }
 0x59e   :  { %1258 = vmatpush1.msra.mxu1 %v5015_v5 }
 0x59f   :  { %1259 = vmatprep.subr.mxu1 %v5016_v7 }
 0x5a0   :  { %1260 = vmatpush1.msra.mxu1 %v5017_v12 }
 0x5a1   :  { %1261 = vmatprep.subr.mxu1 %v5018_v39 }
 0x5a2   :  { %1262 = vmatpush1.msra.mxu1 %v5019_v42 }
 0x5a3   :  { %1446 = vmatprep.subr.mxu1 %v4039_v51 }
 0x5cc   :  { %v989_v58 = vpop.f32.mrf.mxu0 }
 0x5cd   :  { %v990_v43 = vadd.f32 %v989_v58, %v5020_v41 }
 0x5ce   :  { %v991_v45 = vpop.f32.mrf.mxu0 }
 0x5cf   :  { %v2794_v49 = vmul.f32 -1.442695, %v990_v43  ;;  %v992_v53 = vadd.f32 %v991_v45, %v5021_v47 }
 0x5d1   :  { %2918 = vpow2.f32 %v2794_v49  ;;  %v2795_v19 = vmul.f32 -1.442695, %v992_v53 }
 0x5d2   :  { %2920 = vtanh.f32 %v992_v53 }
 0x5dc   :  { %v1188_v1 = vpop.f32.mrf.mxu0 }
 0x5dd   :  { %v1195_v56 = vrot.slane %v1188_v1, 2 }
 0x5de   :  { %v2919_v54 = vpop.eup %2918  ;;  %v1190_v21 = vpop.f32.mrf.mxu0 }
 0x5df   :  { %v1000_v6 = vadd.f32 1.0, %v2919_v54  ;;  %v1199_v46 = vadd.f32 %v1195_v56, %v5022_v50  ;;  %v2921_v57 = vpop.eup %2920  ;;  %v1196_v23 = vrot.slane %v1190_v21, 2  ;;  %v4071_v21 = vld [vmem:[#allocation3 + $0x68] sm:$0xff] }
 0x5e1   :  { %2922 = vrcp.f32 %v1000_v6  ;;  %v2799_v55 = vmul.f32 -1.442695, %v1199_v46  ;;  %v1200_v26 = vadd.f32 %v1196_v23, %v4980_v52  ;;  %v4078_v23 = vld [vmem:[#allocation3 + $0x58] sm:$0xff] }
 0x5e3   :  { %2924 = vpow2.f32 %v2799_v55  ;;  %v2800_v56 = vmul.f32 -1.442695, %v1200_v26 }
 0x5ee   :  { %v2923_v8 = vpop.eup %2922 }
 0x5ef   :  { %v1008_v9 = vmul.f32 %v2923_v8, %v2921_v57  ;;  %v1007_v29 = vmul.f32 %v2923_v8, %v5023_v28  ;;  %v4096_v28 = vld [vmem:[#allocation3 + $0x28] sm:$0xff] }
 0x5f0   :  { %v2925_v10 = vpop.eup %2924 }
 0x5f1   :  { %1010 = vrot.lane.b32.xlu1 %v1008_v9, %s3391_s3  ;;  %v1207_v11 = vadd.f32 1.0, %v2925_v10 }
 0x5f3   :  { %2926 = vrcp.f32 %v1207_v11 }
 0x600   :  { %v2927_v14 = vpop.eup %2926 }
 0x601   :  { %v1217_v15 = vmul.f32 %v2927_v14, %v1215_v13 }
 0x643   :  { %v1091_v16 = vpop.f32.mrf.mxu1 }
 0x644   :  { %v1092_v17 = vadd.f32 %v1091_v16, %v4978_v44 }
 0x645   :  { %v1093_v20 = vpop.f32.mrf.mxu1 }
 0x646   :  { %v2796_v18 = vmul.f32 -1.442695, %v1092_v17  ;;  %v1094_v22 = vadd.f32 %v1093_v20, %v4979_v40  ;;  %v4065_v20 = vld [vmem:[#allocation3 + $0x70] sm:$0xff] }
 0x648   :  { %2928 = vpow2.f32 %v2796_v18  ;;  %v2797_v1 = vmul.f32 -1.442695, %v1094_v22 }
 0x649   :  { %2930 = vpow2.f32 %v2795_v19 }
 0x64a   :  { %2932 = vtanh.f32 %v1094_v22  ;;  %v4075_v22 = vld [vmem:[#allocation3 + $0x60] sm:$0xff] }
 0x655   :  { %v2929_v24 = vpop.eup %2928 }
 0x656   :  { %v1102_v25 = vadd.f32 1.0, %v2929_v24  ;;  %v2931_v38 = vpop.eup %2930  ;;  %v4081_v24 = vld [vmem:[#allocation3 + $0x50] sm:$0xff] }
 0x657   :  { %v1001_v27 = vadd.f32 1.0, %v2931_v38  ;;  %v2933_v31 = vpop.eup %2932  ;;  %v4090_v38 = vld [vmem:[#allocation3 + $0x38] sm:$0xff] }
 0x658   :  { %2934 = vrcp.f32 %v1102_v25  ;;  %v4084_v25 = vld [vmem:[#allocation3 + $0x48] sm:$0xff] }
 0x659   :  { %2936 = vtanh.f32 %v1200_v26  ;;  %v4087_v26 = vld [vmem:[#allocation3 + $0x40] sm:$0xff] }
 0x65a   :  { %2938 = vrcp.f32 %v1001_v27  ;;  %v4093_v27 = vld [vmem:[#allocation3 + $0x30] sm:$0xff] }
 0x663   :  { %v1011_v30 = vpop.permute.xlu1 %1010 }
 0x664   :  { %v4051_v32 = vadd.f32 %v1011_v30, %v1007_v29  ;;  %v4099_v29 = vld [vmem:[#allocation3 + $0x20] sm:$0xff]  ;;  %v4102_v30 = vld [vmem:[#allocation3 + $0x18] sm:$0xff] }
 0x665   :  { %v2935_v33 = vpop.eup %2934 }
 0x666   :  { %2940 = vtanh.f32 %v4051_v32  ;;  %v1110_v58 = vmul.f32 %v2935_v33, %v2933_v31  ;;  %v2937_v43 = vpop.eup %2936  ;;  %v1109_v46 = vmul.f32 %v2935_v33, %v3947_v59  ;;  %v4105_v31 = vld [vmem:[#allocation3 + $0x10] sm:$0xff]  ;;  %v4108_v33 = vld [vmem:[#allocation3 + $0x8] sm:$0xff] }
 0x667   :  { %v1218_v49 = vmul.f32 %v2937_v43, %v2927_v14  ;;  %v2939_v52 = vpop.eup %2938  ;;  %2942 = vpow2.f32 %v2797_v1  ;;  %v4112_v43 = vld [vmem:[#allocation3] sm:$0xff]  ;;  %v4129_v1 = vld [vmem:[#allocation5 + $0xd8] sm:$0xff] }
 0x668   :  { %1112 = vrot.lane.b32.xlu0 %v1110_v58, %s3391_s3  ;;  %2944 = vpow2.f32 %v2800_v56  ;;  %v4132_v56 = vld [vmem:[#allocation5 + $0xd0] sm:$0xff] }
 0x66c   :  { %1220 = vrot.lane.b32.xlu0 %v1218_v49, %s3391_s3  ;;  %v4116_v49 = vld [vmem:[#allocation5 + $0xf8] sm:$0xff] }
 0x673   :  { %v2941_v45 = vpop.eup %2940 }
 0x674   :  { %v1015_v53 = vmul.f32 %v2941_v45, %v2939_v52  ;;  %v2943_v54 = vpop.eup %2942  ;;  %v4119_v52 = vld [vmem:[#allocation5 + $0xf0] sm:$0xff]  ;;  %v4123_v45 = vld [vmem:[#allocation5 + $0xe8] sm:$0xff] }
 0x675   :  { %v1103_v6 = vadd.f32 1.0, %v2943_v54  ;;  %v2945_v50 = vpop.eup %2944  ;;  %v4135_v54 = vld [vmem:[#allocation5 + $0xc8] sm:$0xff] }
 0x676   :  { %1227 = vrot.lane.b32.xlu1 %v1015_v53, %s3391_s3  ;;  %v1208_v8 = vadd.f32 1.0, %v2945_v50  ;;  %v4126_v53 = vld [vmem:[#allocation5 + $0xe0] sm:$0xff]  ;;  %v4141_v50 = vld [vmem:[#allocation5 + $0xb8] sm:$0xff] }
 0x677   :  { %2946 = vrcp.f32 %v1103_v6  ;;  %v4138_v6 = vld [vmem:[#allocation5 + $0xc0] sm:$0xff] }
 0x684   :  { %v2947_v11 = vpop.eup %2946 }
 0x6da   :  { %v1113_v55 = vpop.permute.xlu0 %1112 }
 0x6db   :  { %v4058_v57 = vadd.f32 %v1113_v55, %v1109_v46  ;;  %v4144_v46 = vld [vmem:[#allocation5 + $0xb0] sm:$0xff]  ;;  %v4147_v55 = vld [vmem:[#allocation5 + $0xa8] sm:$0xff] }
 0x6dd   :  { %2948 = vtanh.f32 %v4058_v57 }
 0x6de   :  { %v1221_v9 = vpop.permute.xlu0 %1220  ;;  %2950 = vrcp.f32 %v1208_v8  ;;  %v4150_v8 = vld [vmem:[#allocation5 + $0xa0] sm:$0xff] }
 0x6df   :  { %v4061_v10 = vadd.f32 %v1221_v9, %v1217_v15  ;;  %v4153_v9 = vld [vmem:[#allocation5 + $0x98] sm:$0xff] }
 0x6e1   :  { %2952 = vtanh.f32 %v4061_v10 }
 0x6e8   :  { %v1228_v16 = vpop.permute.xlu1 %1227 }
 0x6ea   :  { %v2949_v13 = vpop.eup %2948 }
 0x6eb   :  { %v1117_v14 = vmul.f32 %v2949_v13, %v2947_v11  ;;  %v2951_v17 = vpop.eup %2950  ;;  %v4156_v11 = vld [vmem:[#allocation5 + $0x90] sm:$0xff]  ;;  %v4159_v13 = vld [vmem:[#allocation5 + $0x88] sm:$0xff] }
 0x6ec   :  { %5024 = vst [vmem:[#allocation43_spill] sm:$0xff] %v4159_v13 }
 0x6ed   :  { %v1230_v59 = vsel %vm292_vm2, %v1117_v14, %v1228_v16  ;;  %v1325_v18 = vrot.slane %v1117_v14, 2  ;;  %v4162_v14 = vld [vmem:[#allocation5 + $0x80] sm:$0xff]  ;;  %v4165_v16 = vld [vmem:[#allocation5 + $0x78] sm:$0xff] }
 0x6ee   :  { %v2953_v19 = vpop.eup %2952  ;;  %1296 = vmatmul.mubr.f32.vlgmr.msra.gmra.mxu1 %v1230_v59  ;;  %5025 = vst [vmem:[#allocation20_spill] sm:$0xff] %v4162_v14  ;;  %5026 = vst [vmem:[#allocation21_spill] sm:$0xff] %v4165_v16  ;;  %v4171_v59 = vld [vmem:[#allocation5 + $0x68] sm:$0xff] }
 0x6ef   :  { %1447 = vmatpush1.msra.mxu1 %v4065_v20  ;;  %1326 = vrot.lane.b32.xlu1 %v1325_v18, %s3391_s3  ;;  %v4069_v15 = vmul.f32 %v2953_v19, %v2951_v17  ;;  %v4168_v17 = vld [vmem:[#allocation5 + $0x70] sm:$0xff]  ;;  %5028 = vst [vmem:[#allocation23_spill] sm:$0xff] %v4171_v59  ;;  %v4174_v18 = vld [vmem:[#allocation5 + $0x60] sm:$0xff]  ;;  %v4177_v19 = vld [vmem:[#allocation5 + $0x58] sm:$0xff] }
 0x6f0   :  { %1448 = vmatprep.subr.mxu1 %v4071_v21  ;;  %1494 = vmatprep.mubr.f32.mxu1 %v4905_v48  ;;  %5027 = vst [vmem:[#allocation22_spill] sm:$0xff] %v4168_v17  ;;  %5029 = vst [vmem:[#allocation24_spill] sm:$0xff] %v4174_v18 }
 0x6f1   :  { %1449 = vmatpush1.msra.mxu1 %v4075_v22  ;;  %v1427_v58 = vrot.slane %v4069_v15, 6  ;;  %5030 = vst [vmem:[#allocation25_spill] sm:$0xff] %v4177_v19 }
 0x6f2   :  { %1450 = vmatprep.subr.mxu1 %v4078_v23 }
 0x6f3   :  { %1451 = vmatpush1.msra.mxu1 %v4081_v24 }
 0x6f4   :  { %1452 = vmatprep.subr.mxu1 %v4084_v25 }
 0x6f5   :  { %1453 = vmatpush1.msra.mxu1 %v4087_v26 }
 0x6f6   :  { %1454 = vmatprep.subr.mxu1 %v4090_v38 }
 0x6f7   :  { %1455 = vmatpush1.msra.mxu1 %v4093_v27 }
 0x6f8   :  { %1456 = vmatprep.subr.mxu1 %v4096_v28 }
 0x6f9   :  { %1457 = vmatpush1.msra.mxu1 %v4099_v29 }
 0x6fa   :  { %1458 = vmatprep.subr.mxu1 %v4102_v30 }
 0x6fb   :  { %1459 = vmatpush1.msra.mxu1 %v4105_v31 }
 0x6fc   :  { %1460 = vmatprep.subr.mxu1 %v4108_v33 }
 0x6fd   :  { %1461 = vmatpush1.msra.mxu1 %v4112_v43 }
 0x6fe   :  { %2805 = vmatmul.mubr.msk.f32.vlgmr.msra.gmra.mxu1 %vm292_vm2, %v1427_v58  ;;  %1631 = vmatprep.subr.mxu1 %v4116_v49  ;;  %v4180_v58 = vld [vmem:[#allocation5 + $0x50] sm:$0xff] }
 0x6ff   :  { %1632 = vmatpush1.msra.mxu1 %v4119_v52  ;;  %1695 = vmatprep.mubr.f32.mxu1 %v4905_v48  ;;  %5031 = vst [vmem:[#allocation26_spill] sm:$0xff] %v4180_v58 }
 0x700   :  { %1633 = vmatprep.subr.mxu1 %v4123_v45 }
 0x701   :  { %1634 = vmatpush1.msra.mxu1 %v4126_v53 }
 0x702   :  { %1635 = vmatprep.subr.mxu1 %v4129_v1 }
 0x703   :  { %1636 = vmatpush1.msra.mxu1 %v4132_v56 }
 0x704   :  { %1637 = vmatprep.subr.mxu1 %v4135_v54 }
 0x705   :  { %1638 = vmatpush1.msra.mxu1 %v4138_v6 }
 0x706   :  { %1639 = vmatprep.subr.mxu1 %v4141_v50 }
 0x707   :  { %1640 = vmatpush1.msra.mxu1 %v4144_v46 }
 0x708   :  { %1641 = vmatprep.subr.mxu1 %v4147_v55 }
 0x709   :  { %1642 = vmatpush1.msra.mxu1 %v4150_v8 }
 0x70a   :  { %1643 = vmatprep.subr.mxu1 %v4153_v9 }
 0x70b   :  { %1644 = vmatpush1.msra.mxu1 %v4156_v11 }
 0x70c   :  { %1645 = vmatprep.subr.mxu1 %v4159_v13  ;;  %v4218_v13 = vld [vmem:[#allocation7 + $0xf0] sm:$0xff] }
 0x70d   :  { %1646 = vmatpush1.msra.mxu1 %v4162_v14 }
 0x70e   :  { %1647 = vmatprep.subr.mxu1 %v4165_v16  ;;  %v4183_v16 = vld [vmem:[#allocation5 + $0x48] sm:$0xff] }
 0x70f   :  { %1648 = vmatpush1.msra.mxu1 %v4168_v17  ;;  %5032 = vst [vmem:[#allocation27_spill] sm:$0xff] %v4183_v16  ;;  %v4186_v17 = vld [vmem:[#allocation5 + $0x40] sm:$0xff] }
 0x710   :  { %1649 = vmatprep.subr.mxu1 %v4171_v59  ;;  %5033 = vst [vmem:[#allocation28_spill] sm:$0xff] %v4186_v17  ;;  %v4189_v59 = vld [vmem:[#allocation5 + $0x38] sm:$0xff] }
 0x711   :  { %1650 = vmatpush1.msra.mxu1 %v4174_v18  ;;  %5034 = vst [vmem:[#allocation29_spill] sm:$0xff] %v4189_v59  ;;  %v4192_v18 = vld [vmem:[#allocation5 + $0x30] sm:$0xff] }
 0x712   :  { %1651 = vmatprep.subr.mxu1 %v4177_v19  ;;  %5035 = vst [vmem:[#allocation30_spill] sm:$0xff] %v4192_v18  ;;  %v4195_v19 = vld [vmem:[#allocation5 + $0x28] sm:$0xff] }
 0x713   :  { %1652 = vmatpush1.msra.mxu1 %v4180_v58  ;;  %5036 = vst [vmem:[#allocation31_spill] sm:$0xff] %v4195_v19  ;;  %v4198_v58 = vld [vmem:[#allocation5 + $0x20] sm:$0xff] }
 0x714   :  { %1653 = vmatprep.subr.mxu1 %v4183_v16  ;;  %5037 = vst [vmem:[#allocation32_spill] sm:$0xff] %v4198_v58  ;;  %v4201_v16 = vld [vmem:[#allocation5 + $0x18] sm:$0xff] }
 0x715   :  { %1654 = vmatpush1.msra.mxu1 %v4186_v17  ;;  %5038 = vst [vmem:[#allocation33_spill] sm:$0xff] %v4201_v16  ;;  %v4204_v17 = vld [vmem:[#allocation5 + $0x10] sm:$0xff] }
 0x716   :  { %1655 = vmatprep.subr.mxu1 %v4189_v59  ;;  %5039 = vst [vmem:[#allocation34_spill] sm:$0xff] %v4204_v17  ;;  %v4207_v59 = vld [vmem:[#allocation5 + $0x8] sm:$0xff] }
 0x717   :  { %1656 = vmatpush1.msra.mxu1 %v4192_v18  ;;  %5040 = vst [vmem:[#allocation35_spill] sm:$0xff] %v4207_v59  ;;  %v4210_v18 = vld [vmem:[#allocation5] sm:$0xff] }
 0x718   :  { %1657 = vmatprep.subr.mxu1 %v4195_v19  ;;  %5041 = vst [vmem:[#allocation36_spill] sm:$0xff] %v4210_v18  ;;  %v4213_v19 = vld [vmem:[#allocation7 + $0xf8] sm:$0xff] }
 0x719   :  { %1658 = vmatpush1.msra.mxu1 %v4198_v58  ;;  %5042 = vst [vmem:[#allocation37_spill] sm:$0xff] %v4213_v19 }
 0x71a   :  { %1659 = vmatprep.subr.mxu1 %v4201_v16 }
 0x71b   :  { %1660 = vmatpush1.msra.mxu1 %v4204_v17 }
 0x71c   :  { %1661 = vmatprep.subr.mxu1 %v4207_v59  ;;  %v4222_v59 = vld [vmem:[#allocation7 + $0xe8] sm:$0xff] }
 0x71d   :  { %1662 = vmatpush1.msra.mxu1 %v4210_v18  ;;  %v4225_v18 = vld [vmem:[#allocation7 + $0xe0] sm:$0xff] }
 0x71e   :  { %1836 = vmatprep.subr.mxu1 %v4213_v19  ;;  %5043 = vst [vmem:[#allocation38_spill] sm:$0xff] %v4225_v18  ;;  %v4228_v19 = vld [vmem:[#allocation7 + $0xd8] sm:$0xff] }
 0x71f   :  { %5044 = vst [vmem:[#allocation39_spill] sm:$0xff] %v4228_v19 }
 0x761   :  { %v1327_v58 = vpop.permute.xlu1 %1326 }
 0x762   :  { %v1329_v16 = vsel %vm292_vm2, %v4069_v15, %v1327_v58  ;;  %v4231_v15 = vld [vmem:[#allocation7 + $0xd0] sm:$0xff]  ;;  %v4240_v58 = vld [vmem:[#allocation7 + $0xb8] sm:$0xff] }
 0x763   :  { %v1331_v14 = vrot.slane %v1329_v16, 6  ;;  %5045 = vst [vmem:[#allocation40_spill] sm:$0xff] %v4231_v15  ;;  %v4237_v16 = vld [vmem:[#allocation7 + $0xc0] sm:$0xff]  ;;  %5048 = vst [vmem:[#allocation45_spill] sm:$0xff] %v4240_v58 }
 0x764   :  { %5047 = vst [vmem:[#allocation44_spill] sm:$0xff] %v4237_v16 }
 0x765   :  { %1398 = vmatmul.mubr.f32.vlgmr.msra.gmra.mxu0 %v1331_v14  ;;  %v4234_v14 = vld [vmem:[#allocation7 + $0xc8] sm:$0xff] }
 0x766   :  { %1534 = vmatpush1.msra.mxu0 %v4218_v13  ;;  %1597 = vmatprep.mubr.f32.mxu0 %v4905_v48  ;;  %5046 = vst [vmem:[#allocation41_spill] sm:$0xff] %v4234_v14 }
 0x767   :  { %1535 = vmatprep.subr.mxu0 %v4222_v59 }
 0x768   :  { %1536 = vmatpush1.msra.mxu0 %v4225_v18  ;;  %v4243_v18 = vld [vmem:[#allocation7 + $0xb0] sm:$0xff] }
 0x769   :  { %1537 = vmatprep.subr.mxu0 %v4228_v19  ;;  %5049 = vst [vmem:[#allocation46_spill] sm:$0xff] %v4243_v18  ;;  %v4246_v19 = vld [vmem:[#allocation7 + $0xa8] sm:$0xff] }
 0x76a   :  { %1538 = vmatpush1.msra.mxu0 %v4231_v15  ;;  %5050 = vst [vmem:[#allocation47_spill] sm:$0xff] %v4246_v19  ;;  %v4249_v15 = vld [vmem:[#allocation7 + $0xa0] sm:$0xff] }
 0x76b   :  { %1539 = vmatprep.subr.mxu0 %v4234_v14  ;;  %5051 = vst [vmem:[#allocation48_spill] sm:$0xff] %v4249_v15  ;;  %v4252_v14 = vld [vmem:[#allocation7 + $0x98] sm:$0xff] }
 0x76c   :  { %1540 = vmatpush1.msra.mxu0 %v4237_v16  ;;  %5052 = vst [vmem:[#allocation49_spill] sm:$0xff] %v4252_v14  ;;  %v4255_v16 = vld [vmem:[#allocation7 + $0x90] sm:$0xff] }
 0x76d   :  { %1541 = vmatprep.subr.mxu0 %v4240_v58  ;;  %5053 = vst [vmem:[#allocation50_spill] sm:$0xff] %v4255_v16  ;;  %v4258_v58 = vld [vmem:[#allocation7 + $0x88] sm:$0xff] }
 0x76e   :  { %1542 = vmatpush1.msra.mxu0 %v4243_v18  ;;  %5054 = vst [vmem:[#allocation51_spill] sm:$0xff] %v4258_v58 }
 0x76f   :  { %1543 = vmatprep.subr.mxu0 %v4246_v19 }
 0x770   :  { %1544 = vmatpush1.msra.mxu0 %v4249_v15 }
 0x771   :  { %1545 = vmatprep.subr.mxu0 %v4252_v14 }
 0x772   :  { %1546 = vmatpush1.msra.mxu0 %v4255_v16 }
 0x773   :  { %1547 = vmatprep.subr.mxu0 %v4258_v58 }
 0x774   :  { %1548 = vmatpush1.msra.mxu0 %v5003_v34 }
 0x775   :  { %1549 = vmatprep.subr.mxu0 %v5004_v35 }
 0x776   :  { %1550 = vmatpush1.msra.mxu0 %v5005_v36 }
 0x777   :  { %1551 = vmatprep.subr.mxu0 %v5006_v37 }
 0x778   :  { %1552 = vmatpush1.msra.mxu0 %v5007_v60 }
 0x779   :  { %1553 = vmatprep.subr.mxu0 %v5008_v61 }
 0x77a   :  { %1554 = vmatpush1.msra.mxu0 %v5009_v62  ;;  %v5055_v62 = vld [vmem:[#allocation17_spill] sm:$0xff] }
 0x77b   :  { %1555 = vmatprep.subr.mxu0 %v5010_v63 }
 0x77c   :  { %1556 = vmatpush1.msra.mxu0 %v5011_v0 }
 0x77d   :  { %1557 = vmatprep.subr.mxu0 %v5012_v2 }
 0x77e   :  { %1558 = vmatpush1.msra.mxu0 %v5013_v3 }
 0x77f   :  { %1559 = vmatprep.subr.mxu0 %v5014_v4 }
 0x780   :  { %1560 = vmatpush1.msra.mxu0 %v5015_v5 }
 0x781   :  { %1561 = vmatprep.subr.mxu0 %v5016_v7 }
 0x782   :  { %1562 = vmatpush1.msra.mxu0 %v5017_v12 }
 0x783   :  { %1563 = vmatprep.subr.mxu0 %v5018_v39 }
 0x784   :  { %1564 = vmatpush1.msra.mxu0 %v5019_v42  ;;  %v1517_v42 = vrot.slane %v4061_v10, 6 }
 0x785   :  { %1743 = vmatprep.subr.mxu0 %v4039_v51 }
 0x7ae   :  { %v1297_v34 = vpop.f32.mrf.mxu1 }
 0x7af   :  { %v1298_v35 = vadd.f32 %v1297_v34, %v5020_v41 }
 0x7b0   :  { %v1299_v37 = vpop.f32.mrf.mxu1 }
 0x7b1   :  { %v2801_v36 = vmul.f32 -1.442695, %v1298_v35  ;;  %v1300_v60 = vadd.f32 %v1299_v37, %v5021_v47 }
 0x7b3   :  { %2954 = vpow2.f32 %v2801_v36 }
 0x7b4   :  { %2956 = vtanh.f32 %v1300_v60 }
 0x7be   :  { %v1496_v61 = vpop.f32.mrf.mxu1 }
 0x7bf   :  { %v1501_v63 = vadd.f32 %v1496_v61, %v5055_v62 }
 0x7c0   :  { %v2955_v0 = vpop.eup %2954 }
 0x7c1   :  { %v1308_v2 = vadd.f32 1.0, %v2955_v0  ;;  %v2806_v3 = vmul.f32 -1.442695, %v1501_v63  ;;  %v2957_v4 = vpop.eup %2956  ;;  %v2802_v63 = vmul.f32 -1.442695, %v1300_v60 }
 0x7c3   :  { %2958 = vrcp.f32 %v1308_v2 }
 0x7c4   :  { %2960 = vpow2.f32 %v2806_v3 }
 0x7d0   :  { %v2959_v5 = vpop.eup %2958 }
 0x7d1   :  { %v2961_v7 = vpop.eup %2960  ;;  %v1316_v12 = vmul.f32 %v2959_v5, %v2957_v4  ;;  %v1498_v4 = vpop.f32.mrf.mxu1  ;;  %v1315_v62 = vmul.f32 %v2959_v5, %v4051_v32 }
 0x7d2   :  { %v1509_v39 = vadd.f32 1.0, %v2961_v7 }
 0x7d3   :  { %1318 = vrot.lane.b32.xlu0 %v1316_v12, %s3391_s3  ;;  %v5056_v12 = vld [vmem:[#allocation18_spill] sm:$0xff] }
 0x7d4   :  { %2962 = vrcp.f32 %v1509_v39  ;;  %v1502_v39 = vadd.f32 %v1498_v4, %v5056_v12 }
 0x7d6   :  { %v2807_v5 = vmul.f32 -1.442695, %v1502_v39 }
 0x7e1   :  { %v2963_v34 = vpop.eup %2962 }
 0x7e2   :  { %v1519_v35 = vmul.f32 %v2963_v34, %v1517_v42 }
 0x825   :  { %v1399_v36 = vpop.f32.mrf.mxu0 }
 0x826   :  { %v1400_v37 = vadd.f32 %v1399_v36, %v4978_v44 }
 0x827   :  { %v1401_v0 = vpop.f32.mrf.mxu0 }
 0x828   :  { %v2803_v61 = vmul.f32 -1.442695, %v1400_v37  ;;  %v1402_v2 = vadd.f32 %v1401_v0, %v4979_v40 }
 0x82a   :  { %2964 = vpow2.f32 %v2803_v61  ;;  %v2804_v32 = vmul.f32 -1.442695, %v1402_v2 }
 0x82b   :  { %2966 = vpow2.f32 %v2802_v63 }
 0x82c   :  { %2968 = vtanh.f32 %v1402_v2 }
 0x837   :  { %v2965_v3 = vpop.eup %2964 }
 0x838   :  { %v1410_v7 = vadd.f32 1.0, %v2965_v3  ;;  %v2967_v10 = vpop.eup %2966 }
 0x839   :  { %v1309_v42 = vadd.f32 1.0, %v2967_v10  ;;  %v2969_v37 = vpop.eup %2968 }
 0x83a   :  { %2970 = vrcp.f32 %v1410_v7 }
 0x83b   :  { %2972 = vtanh.f32 %v1502_v39 }
 0x83c   :  { %2974 = vrcp.f32 %v1309_v42 }
 0x845   :  { %v1319_v36 = vpop.permute.xlu0 %1318 }
 0x846   :  { %v4288_v61 = vadd.f32 %v1319_v36, %v1315_v62 }
 0x847   :  { %v2971_v60 = vpop.eup %2970 }
 0x848   :  { %5057 = vst [vmem:[#allocation52_spill] sm:$0xff] %v4288_v61  ;;  %2976 = vtanh.f32 %v4288_v61  ;;  %v1418_v63 = vmul.f32 %v2971_v60, %v2969_v37  ;;  %v2973_v0 = vpop.eup %2972  ;;  %v1417_v37 = vmul.f32 %v2971_v60, %v4058_v57  ;;  %v5058_v60 = vld [vmem:[#allocation43_spill] sm:$0xff] }
 0x849   :  { %v1520_v3 = vmul.f32 %v2973_v0, %v2963_v34  ;;  %v2975_v4 = vpop.eup %2974  ;;  %2978 = vpow2.f32 %v2804_v32  ;;  %v5059_v32 = vld [vmem:[#allocation20_spill] sm:$0xff] }
 0x84a   :  { %1420 = vrot.lane.b32.xlu1 %v1418_v63, %s3391_s3  ;;  %2980 = vpow2.f32 %v2807_v5  ;;  %v5060_v5 = vld [vmem:[#allocation21_spill] sm:$0xff] }
 0x84e   :  { %1522 = vrot.lane.b32.xlu1 %v1520_v3, %s3391_s3 }
 0x855   :  { %v2977_v7 = vpop.eup %2976 }
 0x856   :  { %v1323_v10 = vmul.f32 %v2977_v7, %v2975_v4  ;;  %v2979_v62 = vpop.eup %2978 }
 0x857   :  { %v1411_v42 = vadd.f32 1.0, %v2979_v62  ;;  %v2981_v36 = vpop.eup %2980  ;;  %v5061_v62 = vld [vmem:[#allocation22_spill] sm:$0xff] }
 0x858   :  { %1529 = vrot.lane.b32.xlu0 %v1323_v10, %s3391_s3  ;;  %v1510_v34 = vadd.f32 1.0, %v2981_v36  ;;  %v5063_v36 = vld [vmem:[#allocation24_spill] sm:$0xff] }
 0x859   :  { %2982 = vrcp.f32 %v1411_v42  ;;  %v5062_v42 = vld [vmem:[#allocation23_spill] sm:$0xff] }
 0x866   :  { %v2983_v2 = vpop.eup %2982 }
 0x8bc   :  { %v1421_v61 = vpop.permute.xlu1 %1420 }
 0x8bd   :  { %v4295_v63 = vadd.f32 %v1421_v61, %v1417_v37  ;;  %v5064_v37 = vld [vmem:[#allocation25_spill] sm:$0xff] }
 0x8bf   :  { %2984 = vtanh.f32 %v4295_v63 }
 0x8c0   :  { %v1523_v0 = vpop.permute.xlu1 %1522  ;;  %2986 = vrcp.f32 %v1510_v34  ;;  %v5065_v34 = vld [vmem:[#allocation26_spill] sm:$0xff] }
 0x8c1   :  { %v4298_v3 = vadd.f32 %v1523_v0, %v1519_v35  ;;  %v5066_v0 = vld [vmem:[#allocation27_spill] sm:$0xff] }
 0x8c3   :  { %2988 = vtanh.f32 %v4298_v3 }
 0x8ca   :  { %v1530_v7 = vpop.permute.xlu0 %1529 }
 0x8cc   :  { %v2985_v39 = vpop.eup %2984 }
 0x8cd   :  { %v1425_v4 = vmul.f32 %v2985_v39, %v2983_v2  ;;  %v2987_v10 = vpop.eup %2986  ;;  %v5067_v2 = vld [vmem:[#allocation28_spill] sm:$0xff]  ;;  %v5068_v39 = vld [vmem:[#allocation29_spill] sm:$0xff] }
 0x8cf   :  { %v1532_v57 = vsel %vm292_vm2, %v1425_v4, %v1530_v7  ;;  %1627 = vrot.lane.b32.xlu0 %v1425_v4, %s3391_s3  ;;  %v5069_v4 = vld [vmem:[#allocation30_spill] sm:$0xff]  ;;  %v5070_v7 = vld [vmem:[#allocation31_spill] sm:$0xff] }
 0x8d0   :  { %v2989_v61 = vpop.eup %2988  ;;  %1598 = vmatmul.mubr.f32.vlgmr.msra.gmra.mxu0 %v1532_v57  ;;  %v5072_v57 = vld [vmem:[#allocation33_spill] sm:$0xff] }
 0x8d1   :  { %1744 = vmatpush1.msra.mxu0 %v4065_v20  ;;  %1791 = vmatprep.mubr.f32.mxu0 %v4905_v48  ;;  %v1527_v35 = vmul.f32 %v2989_v61, %v2987_v10  ;;  %v5071_v10 = vld [vmem:[#allocation32_spill] sm:$0xff]  ;;  %v5073_v61 = vld [vmem:[#allocation35_spill] sm:$0xff] }
 0x8d2   :  { %1745 = vmatprep.subr.mxu0 %v4071_v21 }
 0x8d3   :  { %1746 = vmatpush1.msra.mxu0 %v4075_v22 }
 0x8d4   :  { %1747 = vmatprep.subr.mxu0 %v4078_v23 }
 0x8d5   :  { %1748 = vmatpush1.msra.mxu0 %v4081_v24 }
 0x8d6   :  { %1749 = vmatprep.subr.mxu0 %v4084_v25 }
 0x8d7   :  { %1750 = vmatpush1.msra.mxu0 %v4087_v26 }
 0x8d8   :  { %1751 = vmatprep.subr.mxu0 %v4090_v38 }
 0x8d9   :  { %1752 = vmatpush1.msra.mxu0 %v4093_v27 }
 0x8da   :  { %1753 = vmatprep.subr.mxu0 %v4096_v28 }
 0x8db   :  { %1754 = vmatpush1.msra.mxu0 %v4099_v29 }
 0x8dc   :  { %1755 = vmatprep.subr.mxu0 %v4102_v30 }
 0x8dd   :  { %1756 = vmatpush1.msra.mxu0 %v4105_v31 }
 0x8de   :  { %1757 = vmatprep.subr.mxu0 %v4108_v33 }
 0x8df   :  { %1758 = vmatpush1.msra.mxu0 %v4112_v43 }
 0x8e0   :  { %2812 = vmatmul.mubr.msk.f32.vlgmr.msra.gmra.mxu0 %vm292_vm2, %v1527_v35  ;;  %1938 = vmatprep.subr.mxu0 %v4116_v49 }
 0x8e1   :  { %1939 = vmatpush1.msra.mxu0 %v4119_v52  ;;  %2002 = vmatprep.mubr.f32.mxu0 %v4905_v48 }
 0x8e2   :  { %1940 = vmatprep.subr.mxu0 %v4123_v45 }
 0x8e3   :  { %1941 = vmatpush1.msra.mxu0 %v4126_v53 }
 0x8e4   :  { %1942 = vmatprep.subr.mxu0 %v4129_v1 }
 0x8e5   :  { %1943 = vmatpush1.msra.mxu0 %v4132_v56 }
 0x8e6   :  { %1944 = vmatprep.subr.mxu0 %v4135_v54 }
 0x8e7   :  { %1945 = vmatpush1.msra.mxu0 %v4138_v6 }
 0x8e8   :  { %1946 = vmatprep.subr.mxu0 %v4141_v50 }
 0x8e9   :  { %1947 = vmatpush1.msra.mxu0 %v4144_v46 }
 0x8ea   :  { %1948 = vmatprep.subr.mxu0 %v4147_v55 }
 0x8eb   :  { %1949 = vmatpush1.msra.mxu0 %v4150_v8 }
 0x8ec   :  { %1950 = vmatprep.subr.mxu0 %v4153_v9 }
 0x8ed   :  { %1951 = vmatpush1.msra.mxu0 %v4156_v11 }
 0x8ee   :  { %1952 = vmatprep.subr.mxu0 %v5058_v60 }
 0x8ef   :  { %1953 = vmatpush1.msra.mxu0 %v5059_v32 }
 0x8f0   :  { %1954 = vmatprep.subr.mxu0 %v5060_v5 }
 0x8f1   :  { %1955 = vmatpush1.msra.mxu0 %v5061_v62 }
 0x8f2   :  { %1956 = vmatprep.subr.mxu0 %v5062_v42 }
 0x8f3   :  { %1957 = vmatpush1.msra.mxu0 %v5063_v36 }
 0x8f4   :  { %1958 = vmatprep.subr.mxu0 %v5064_v37  ;;  %v5074_v37 = vld [vmem:[#allocation36_spill] sm:$0xff] }
 0x8f5   :  { %1959 = vmatpush1.msra.mxu0 %v5065_v34  ;;  %v5075_v34 = vld [vmem:[#allocation37_spill] sm:$0xff] }
 0x8f6   :  { %1960 = vmatprep.subr.mxu0 %v5066_v0 }
 0x8f7   :  { %1961 = vmatpush1.msra.mxu0 %v5067_v2 }
 0x8f8   :  { %1962 = vmatprep.subr.mxu0 %v5068_v39 }
 0x8f9   :  { %1963 = vmatpush1.msra.mxu0 %v5069_v4 }
 0x8fa   :  { %1964 = vmatprep.subr.mxu0 %v5070_v7 }
 0x8fb   :  { %1965 = vmatpush1.msra.mxu0 %v5071_v10  ;;  %v5076_v10 = vld [vmem:[#allocation38_spill] sm:$0xff] }
 0x8fc   :  { %1966 = vmatprep.subr.mxu0 %v5072_v57  ;;  %v5077_v57 = vld [vmem:[#allocation39_spill] sm:$0xff] }
 0x8fd   :  { %1967 = vmatpush1.msra.mxu0 %v4204_v17  ;;  %v5078_v17 = vld [vmem:[#allocation40_spill] sm:$0xff] }
 0x8fe   :  { %1968 = vmatprep.subr.mxu0 %v5073_v61  ;;  %v5079_v61 = vld [vmem:[#allocation41_spill] sm:$0xff] }
 0x8ff   :  { %1969 = vmatpush1.msra.mxu0 %v5074_v37  ;;  %v5080_v37 = vld [vmem:[#allocation44_spill] sm:$0xff] }
 0x900   :  { %2144 = vmatprep.subr.mxu0 %v5075_v34  ;;  %v5081_v34 = vld [vmem:[#allocation45_spill] sm:$0xff] }
 0x941   :  { %v1628_v0 = vpop.permute.xlu0 %1627 }
 0x942   :  { %v1630_v2 = vsel %vm292_vm2, %v1527_v35, %v1628_v0  ;;  %v4370_v35 = vld [vmem:[#allocation7 + $0x80] sm:$0xff]  ;;  %v4373_v0 = vld [vmem:[#allocation7 + $0x78] sm:$0xff] }
 0x943   :  { %1696 = vmatmul.mubr.f32.vlgmr.msra.gmra.mxu1 %v1630_v2  ;;  %5082 = vst [vmem:[#allocation53_spill] sm:$0xff] %v4370_v35  ;;  %5083 = vst [vmem:[#allocation54_spill] sm:$0xff] %v4373_v0  ;;  %v4376_v2 = vld [vmem:[#allocation7 + $0x70] sm:$0xff] }
 0x944   :  { %1837 = vmatpush1.msra.mxu1 %v4218_v13  ;;  %1900 = vmatprep.mubr.f32.mxu1 %v4905_v48  ;;  %5084 = vst [vmem:[#allocation55_spill] sm:$0xff] %v4376_v2 }
 0x945   :  { %1838 = vmatprep.subr.mxu1 %v4222_v59 }
 0x946   :  { %1839 = vmatpush1.msra.mxu1 %v5076_v10 }
 0x947   :  { %1840 = vmatprep.subr.mxu1 %v5077_v57 }
 0x948   :  { %1841 = vmatpush1.msra.mxu1 %v5078_v17 }
 0x949   :  { %1842 = vmatprep.subr.mxu1 %v5079_v61  ;;  %v5099_v61 = vld [vmem:[#allocation17_spill] sm:$0xff] }
 0x94a   :  { %1843 = vmatpush1.msra.mxu1 %v5080_v37 }
 0x94b   :  { %1844 = vmatprep.subr.mxu1 %v5081_v34 }
 0x94c   :  { %1845 = vmatpush1.msra.mxu1 %v4243_v18 }
 0x94d   :  { %1846 = vmatprep.subr.mxu1 %v4246_v19  ;;  %v4379_v19 = vld [vmem:[#allocation7 + $0x68] sm:$0xff] }
 0x94e   :  { %1847 = vmatpush1.msra.mxu1 %v4249_v15  ;;  %5085 = vst [vmem:[#allocation56_spill] sm:$0xff] %v4379_v19 }
 0x94f   :  { %1848 = vmatprep.subr.mxu1 %v4252_v14  ;;  %v4382_v14 = vld [vmem:[#allocation7 + $0x60] sm:$0xff] }
 0x950   :  { %1849 = vmatpush1.msra.mxu1 %v4255_v16  ;;  %5086 = vst [vmem:[#allocation57_spill] sm:$0xff] %v4382_v14 }
 0x951   :  { %1850 = vmatprep.subr.mxu1 %v4258_v58  ;;  %v4385_v58 = vld [vmem:[#allocation7 + $0x58] sm:$0xff] }
 0x952   :  { %1851 = vmatpush1.msra.mxu1 %v4370_v35  ;;  %5087 = vst [vmem:[#allocation58_spill] sm:$0xff] %v4385_v58  ;;  %v4388_v35 = vld [vmem:[#allocation7 + $0x50] sm:$0xff] }
 0x953   :  { %1852 = vmatprep.subr.mxu1 %v4373_v0  ;;  %5088 = vst [vmem:[#allocation59_spill] sm:$0xff] %v4388_v35  ;;  %v4391_v0 = vld [vmem:[#allocation7 + $0x48] sm:$0xff] }
 0x954   :  { %1853 = vmatpush1.msra.mxu1 %v4376_v2  ;;  %5089 = vst [vmem:[#allocation60_spill] sm:$0xff] %v4391_v0  ;;  %v4394_v2 = vld [vmem:[#allocation7 + $0x40] sm:$0xff] }
 0x955   :  { %1854 = vmatprep.subr.mxu1 %v4379_v19  ;;  %5090 = vst [vmem:[#allocation19_spill] sm:$0xff] %v4394_v2  ;;  %v4397_v19 = vld [vmem:[#allocation7 + $0x38] sm:$0xff] }
 0x956   :  { %1855 = vmatpush1.msra.mxu1 %v4382_v14  ;;  %5091 = vst [vmem:[#allocation16_spill] sm:$0xff] %v4397_v19  ;;  %v4400_v14 = vld [vmem:[#allocation7 + $0x30] sm:$0xff] }
 0x957   :  { %1856 = vmatprep.subr.mxu1 %v4385_v58  ;;  %5092 = vst [vmem:[#allocation18_spill] sm:$0xff] %v4400_v14  ;;  %v4403_v58 = vld [vmem:[#allocation7 + $0x28] sm:$0xff] }
 0x958   :  { %1857 = vmatpush1.msra.mxu1 %v4388_v35  ;;  %5093 = vst [vmem:[#allocation43_spill] sm:$0xff] %v4403_v58  ;;  %v4406_v35 = vld [vmem:[#allocation7 + $0x20] sm:$0xff] }
 0x959   :  { %1858 = vmatprep.subr.mxu1 %v4391_v0  ;;  %5094 = vst [vmem:[#allocation20_spill] sm:$0xff] %v4406_v35  ;;  %v4409_v0 = vld [vmem:[#allocation7 + $0x18] sm:$0xff] }
 0x95a   :  { %1859 = vmatpush1.msra.mxu1 %v4394_v2  ;;  %5095 = vst [vmem:[#allocation21_spill] sm:$0xff] %v4409_v0  ;;  %v4412_v2 = vld [vmem:[#allocation7 + $0x10] sm:$0xff] }
 0x95b   :  { %1860 = vmatprep.subr.mxu1 %v4397_v19  ;;  %5096 = vst [vmem:[#allocation22_spill] sm:$0xff] %v4412_v2  ;;  %v4415_v19 = vld [vmem:[#allocation7 + $0x8] sm:$0xff] }
 0x95c   :  { %1861 = vmatpush1.msra.mxu1 %v4400_v14  ;;  %5097 = vst [vmem:[#allocation23_spill] sm:$0xff] %v4415_v19  ;;  %v4418_v14 = vld [vmem:[#allocation7] sm:$0xff] }
 0x95d   :  { %1862 = vmatprep.subr.mxu1 %v4403_v58  ;;  %5098 = vst [vmem:[#allocation24_spill] sm:$0xff] %v4418_v14 }
 0x95e   :  { %1863 = vmatpush1.msra.mxu1 %v4406_v35 }
 0x95f   :  { %1864 = vmatprep.subr.mxu1 %v4409_v0 }
 0x960   :  { %1865 = vmatpush1.msra.mxu1 %v4412_v2 }
 0x961   :  { %1866 = vmatprep.subr.mxu1 %v4415_v19 }
 0x962   :  { %1867 = vmatpush1.msra.mxu1 %v4418_v14 }
 0x963   :  { %2051 = vmatprep.subr.mxu1 %v4039_v51 }
 0x990   :  { %v1599_v58 = vpop.f32.mrf.mxu0 }
 0x991   :  { %v1600_v35 = vadd.f32 %v1599_v58, %v5020_v41  ;;  %v1820_v58 = vrot.slane %v4298_v3, 6 }
 0x992   :  { %v1601_v0 = vpop.f32.mrf.mxu0 }
 0x993   :  { %v2808_v16 = vmul.f32 -1.442695, %v1600_v35  ;;  %v1602_v15 = vadd.f32 %v1601_v0, %v5021_v47 }
 0x995   :  { %2990 = vpow2.f32 %v2808_v16 }
 0x996   :  { %2992 = vtanh.f32 %v1602_v15 }
 0x9a0   :  { %v1793_v18 = vpop.f32.mrf.mxu0 }
 0x9a1   :  { %v1800_v2 = vrot.slane %v1793_v18, 6 }
 0x9a2   :  { %v2991_v34 = vpop.eup %2990 }
 0x9a3   :  { %v1610_v37 = vadd.f32 1.0, %v2991_v34  ;;  %v1804_v19 = vadd.f32 %v1800_v2, %v5099_v61  ;;  %v2993_v14 = vpop.eup %2992 }
 0x9a5   :  { %2994 = vrcp.f32 %v1610_v37  ;;  %v2813_v17 = vmul.f32 -1.442695, %v1804_v19  ;;  %v2809_v19 = vmul.f32 -1.442695, %v1602_v15 }
 0x9a7   :  { %2996 = vpow2.f32 %v2813_v17  ;;  %v1795_v17 = vpop.f32.mrf.mxu0 }
 0x9b2   :  { %v2995_v51 = vpop.eup %2994 }
 0x9b3   :  { %v1618_v57 = vmul.f32 %v2995_v51, %v2993_v14  ;;  %v1801_v14 = vrot.slane %v1795_v17, 6 }
 0x9b4   :  { %v2997_v10 = vpop.eup %2996 }
 0x9b5   :  { %1620 = vrot.lane.b32.xlu1 %v1618_v57, %s3391_s3  ;;  %v1812_v16 = vadd.f32 1.0, %v2997_v10  ;;  %v1805_v10 = vadd.f32 %v1801_v14, %v5056_v12 }
 0x9b7   :  { %2998 = vrcp.f32 %v1812_v16 }
 0x9c4   :  { %v2999_v35 = vpop.eup %2998 }
 0x9c5   :  { %v1822_v18 = vmul.f32 %v2999_v35, %v1820_v58 }
 0xa03   :  { %v1697_v0 = vpop.f32.mrf.mxu1 }
 0xa04   :  { %v1698_v34 = vadd.f32 %v1697_v0, %v4978_v44 }
 0xa05   :  { %v1699_v37 = vpop.f32.mrf.mxu1 }
 0xa06   :  { %v2810_v2 = vmul.f32 -1.442695, %v1698_v34  ;;  %v1700_v61 = vadd.f32 %v1699_v37, %v4979_v40  ;;  %v5100_v34 = vld [vmem:[#allocation52_spill] sm:$0xff] }
 0xa08   :  { %3000 = vpow2.f32 %v2810_v2  ;;  %v1617_v2 = vmul.f32 %v2995_v51, %v5100_v34  ;;  %v2814_v51 = vmul.f32 -1.442695, %v1805_v10 }
 0xa09   :  { %3002 = vpow2.f32 %v2809_v19 }
 0xa0a   :  { %3004 = vtanh.f32 %v1700_v61 }
 0xa15   :  { %v3001_v47 = vpop.eup %3000 }
 0xa16   :  { %v1708_v57 = vadd.f32 1.0, %v3001_v47  ;;  %v3003_v3 = vpop.eup %3002 }
 0xa17   :  { %v3005_v16 = vpop.eup %3004  ;;  %v1611_v0 = vadd.f32 1.0, %v3003_v3 }
 0xa18   :  { %3006 = vrcp.f32 %v1708_v57  ;;  %v2811_v57 = vmul.f32 -1.442695, %v1700_v61 }
 0xa19   :  { %3008 = vtanh.f32 %v1805_v10 }
 0xa1a   :  { %3010 = vrcp.f32 %v1611_v0 }
 0xa25   :  { %v3007_v58 = vpop.eup %3006 }
 0xa26   :  { %v1716_v44 = vmul.f32 %v3007_v58, %v3005_v16  ;;  %v3009_v37 = vpop.eup %3008 }
 0xa27   :  { %v1621_v15 = vpop.permute.xlu1 %1620  ;;  %v1823_v47 = vmul.f32 %v3009_v37, %v2999_v35  ;;  %v3011_v19 = vpop.eup %3010 }
 0xa28   :  { %v4431_v41 = vadd.f32 %v1621_v15, %v1617_v2  ;;  %1718 = vrot.lane.b32.xlu0 %v1716_v44, %s3391_s3  ;;  %v1715_v44 = vmul.f32 %v3007_v58, %v4295_v63 }
 0xa2a   :  { %3012 = vtanh.f32 %v4431_v41 }
 0xa2b   :  { %3014 = vpow2.f32 %v2811_v57 }
 0xa2c   :  { %1825 = vrot.lane.b32.xlu0 %v1823_v47, %s3391_s3  ;;  %3016 = vpow2.f32 %v2814_v51  ;;  %v5138_v51 = vld [vmem:[#allocation23_spill] sm:$0xff] }
 0xa37   :  { %v3013_v17 = vpop.eup %3012 }
 0xa38   :  { %v1625_v14 = vmul.f32 %v3013_v17, %v3011_v19  ;;  %v3015_v3 = vpop.eup %3014 }
 0xa39   :  { %v1709_v16 = vadd.f32 1.0, %v3015_v3  ;;  %v3017_v34 = vpop.eup %3016  ;;  %v5139_v3 = vld [vmem:[#allocation24_spill] sm:$0xff] }
 0xa3a   :  { %1832 = vrot.lane.b32.xlu1 %v1625_v14, %s3391_s3  ;;  %v1813_v35 = vadd.f32 1.0, %v3017_v34 }
 0xa3b   :  { %3018 = vrcp.f32 %v1709_v16  ;;  %v3214_v16 = vld [vmem:[#allocation3 + $0x78] sm:$0xff] }
 0xa48   :  { %v3019_v61 = vpop.eup %3018 }
 0xa9a   :  { %v1719_v0 = vpop.permute.xlu0 %1718 }
 0xa9b   :  { %v4438_v2 = vadd.f32 %v1719_v0, %v1715_v44  ;;  %v5140_v44 = vld [vmem:[#allocation14_spill] sm:$0xff] }
 0xa9d   :  { %3020 = vtanh.f32 %v4438_v2 }
 0xa9e   :  { %v1826_v15 = vpop.permute.xlu0 %1825  ;;  %3022 = vrcp.f32 %v1813_v35 }
 0xa9f   :  { %v4441_v37 = vadd.f32 %v1826_v15, %v1822_v18  ;;  %v5137_v18 = vld [vmem:[#allocation22_spill] sm:$0xff] }
 0xaa1   :  { %3024 = vtanh.f32 %v4441_v37 }
 0xaaa   :  { %v3021_v10 = vpop.eup %3020 }
 0xaab   :  { %v1723_v47 = vmul.f32 %v3021_v10, %v3019_v61  ;;  %v3023_v17 = vpop.eup %3022  ;;  %v5141_v61 = vld [vmem:[#allocation15_spill] sm:$0xff] }
 0xaac   :  { %v1833_v19 = vpop.permute.xlu1 %1832 }
 0xaad   :  { %v1835_v63 = vsel %vm292_vm2, %v1723_v47, %v1833_v19  ;;  %v1930_v58 = vrot.slane %v1723_v47, 6 }
 0xaae   :  { %v3025_v14 = vpop.eup %3024  ;;  %1901 = vmatmul.mubr.f32.vlgmr.msra.gmra.mxu1 %v1835_v63 }
 0xaaf   :  { %2052 = vmatpush1.msra.mxu1 %v4065_v20  ;;  %1931 = vrot.lane.b32.xlu1 %v1930_v58, %s3391_s3  ;;  %v1830_v57 = vmul.f32 %v3025_v14, %v3023_v17  ;;  %v5142_v58 = vld [vmem:[#allocation17_spill] sm:$0xff] }
 0xab0   :  { %2053 = vmatprep.subr.mxu1 %v4071_v21  ;;  %2099 = vmatprep.mubr.f32.mxu1 %v4905_v48  ;;  %v5101_v21 = vld [vmem:[#allocation25_spill] sm:$0xff] }
 0xab1   :  { %2054 = vmatpush1.msra.mxu1 %v4075_v22  ;;  %v2032_v20 = vrot.slane %v1830_v57, 2  ;;  %v5102_v22 = vld [vmem:[#allocation26_spill] sm:$0xff] }
 0xab2   :  { %2055 = vmatprep.subr.mxu1 %v4078_v23  ;;  %v5103_v23 = vld [vmem:[#allocation27_spill] sm:$0xff] }
 0xab3   :  { %2056 = vmatpush1.msra.mxu1 %v4081_v24  ;;  %v5104_v24 = vld [vmem:[#allocation28_spill] sm:$0xff] }
 0xab4   :  { %2057 = vmatprep.subr.mxu1 %v4084_v25  ;;  %v5105_v25 = vld [vmem:[#allocation32_spill] sm:$0xff] }
 0xab5   :  { %2058 = vmatpush1.msra.mxu1 %v4087_v26  ;;  %v5106_v26 = vld [vmem:[#allocation33_spill] sm:$0xff] }
 0xab6   :  { %2059 = vmatprep.subr.mxu1 %v4090_v38  ;;  %v5107_v38 = vld [vmem:[#allocation34_spill] sm:$0xff] }
 0xab7   :  { %2060 = vmatpush1.msra.mxu1 %v4093_v27  ;;  %v5108_v27 = vld [vmem:[#allocation35_spill] sm:$0xff] }
 0xab8   :  { %2061 = vmatprep.subr.mxu1 %v4096_v28  ;;  %v5109_v28 = vld [vmem:[#allocation36_spill] sm:$0xff] }
 0xab9   :  { %2062 = vmatpush1.msra.mxu1 %v4099_v29  ;;  %v5110_v29 = vld [vmem:[#allocation37_spill] sm:$0xff] }
 0xaba   :  { %2063 = vmatprep.subr.mxu1 %v4102_v30 }
 0xabb   :  { %2064 = vmatpush1.msra.mxu1 %v4105_v31 }
 0xabc   :  { %2065 = vmatprep.subr.mxu1 %v4108_v33 }
 0xabd   :  { %2066 = vmatpush1.msra.mxu1 %v4112_v43  ;;  %v5111_v43 = vld [vmem:[#allocation38_spill] sm:$0xff] }
 0xabe   :  { %2819 = vmatmul.mubr.msk.f32.vlgmr.msra.gmra.mxu1 %vm292_vm2, %v2032_v20  ;;  %2246 = vmatprep.subr.mxu1 %v4116_v49  ;;  %v5112_v49 = vld [vmem:[#allocation39_spill] sm:$0xff] }
 0xabf   :  { %2247 = vmatpush1.msra.mxu1 %v4119_v52  ;;  %2310 = vmatprep.mubr.f32.mxu1 %v4905_v48  ;;  %v5113_v52 = vld [vmem:[#allocation40_spill] sm:$0xff] }
 0xac0   :  { %2248 = vmatprep.subr.mxu1 %v4123_v45  ;;  %v5114_v45 = vld [vmem:[#allocation41_spill] sm:$0xff] }
 0xac1   :  { %2249 = vmatpush1.msra.mxu1 %v4126_v53  ;;  %v5115_v53 = vld [vmem:[#allocation44_spill] sm:$0xff] }
 0xac2   :  { %2250 = vmatprep.subr.mxu1 %v4129_v1  ;;  %v5116_v1 = vld [vmem:[#allocation45_spill] sm:$0xff] }
 0xac3   :  { %2251 = vmatpush1.msra.mxu1 %v4132_v56  ;;  %v5117_v56 = vld [vmem:[#allocation46_spill] sm:$0xff] }
 0xac4   :  { %2252 = vmatprep.subr.mxu1 %v4135_v54  ;;  %v5118_v54 = vld [vmem:[#allocation47_spill] sm:$0xff] }
 0xac5   :  { %2253 = vmatpush1.msra.mxu1 %v4138_v6  ;;  %v5119_v6 = vld [vmem:[#allocation48_spill] sm:$0xff] }
 0xac6   :  { %2254 = vmatprep.subr.mxu1 %v4141_v50  ;;  %v5120_v50 = vld [vmem:[#allocation49_spill] sm:$0xff] }
 0xac7   :  { %2255 = vmatpush1.msra.mxu1 %v4144_v46  ;;  %v5121_v46 = vld [vmem:[#allocation50_spill] sm:$0xff] }
 0xac8   :  { %2256 = vmatprep.subr.mxu1 %v4147_v55  ;;  %v5122_v55 = vld [vmem:[#allocation51_spill] sm:$0xff] }
 0xac9   :  { %2257 = vmatpush1.msra.mxu1 %v4150_v8  ;;  %v5123_v8 = vld [vmem:[#allocation53_spill] sm:$0xff] }
 0xaca   :  { %2258 = vmatprep.subr.mxu1 %v4153_v9  ;;  %v5124_v9 = vld [vmem:[#allocation54_spill] sm:$0xff] }
 0xacb   :  { %2259 = vmatpush1.msra.mxu1 %v4156_v11  ;;  %v5125_v11 = vld [vmem:[#allocation55_spill] sm:$0xff] }
 0xacc   :  { %2260 = vmatprep.subr.mxu1 %v5058_v60  ;;  %v5128_v60 = vld [vmem:[#allocation58_spill] sm:$0xff] }
 0xacd   :  { %2261 = vmatpush1.msra.mxu1 %v5059_v32  ;;  %v5129_v32 = vld [vmem:[#allocation59_spill] sm:$0xff] }
 0xace   :  { %2262 = vmatprep.subr.mxu1 %v5060_v5  ;;  %v5130_v5 = vld [vmem:[#allocation60_spill] sm:$0xff] }
 0xacf   :  { %2263 = vmatpush1.msra.mxu1 %v5061_v62  ;;  %v5131_v62 = vld [vmem:[#allocation19_spill] sm:$0xff] }
 0xad0   :  { %2264 = vmatprep.subr.mxu1 %v5062_v42  ;;  %v5132_v42 = vld [vmem:[#allocation16_spill] sm:$0xff] }
 0xad1   :  { %2265 = vmatpush1.msra.mxu1 %v5063_v36  ;;  %v5133_v36 = vld [vmem:[#allocation18_spill] sm:$0xff] }
 0xad2   :  { %2266 = vmatprep.subr.mxu1 %v5101_v21 }
 0xad3   :  { %2267 = vmatpush1.msra.mxu1 %v5102_v22 }
 0xad4   :  { %2268 = vmatprep.subr.mxu1 %v5103_v23 }
 0xad5   :  { %2269 = vmatpush1.msra.mxu1 %v5104_v24 }
 0xad6   :  { %2270 = vmatprep.subr.mxu1 %v5068_v39  ;;  %v5134_v39 = vld [vmem:[#allocation43_spill] sm:$0xff] }
 0xad7   :  { %2271 = vmatpush1.msra.mxu1 %v5069_v4  ;;  %v5135_v4 = vld [vmem:[#allocation20_spill] sm:$0xff] }
 0xad8   :  { %2272 = vmatprep.subr.mxu1 %v5070_v7  ;;  %v5136_v7 = vld [vmem:[#allocation21_spill] sm:$0xff] }
 0xad9   :  { %2273 = vmatpush1.msra.mxu1 %v5105_v25  ;;  %v2128_v25 = vrot.slane %v4441_v37, 6 }
 0xada   :  { %2274 = vmatprep.subr.mxu1 %v5106_v26 }
 0xadb   :  { %2275 = vmatpush1.msra.mxu1 %v5107_v38 }
 0xadc   :  { %2276 = vmatprep.subr.mxu1 %v5108_v27 }
 0xadd   :  { %2277 = vmatpush1.msra.mxu1 %v5109_v28  ;;  %v5143_v28 = vld [vmem:[#allocation42_spill] sm:$0xff] }
 0xade   :  { %2452 = vmatprep.subr.mxu1 %v5110_v29 }
 0xb21   :  { %v1932_v30 = vpop.permute.xlu1 %1931 }
 0xb22   :  { %v1934_v31 = vsel %vm292_vm2, %v1830_v57, %v1932_v30 }
 0xb23   :  { %v1936_v33 = vrot.slane %v1934_v31, 2 }
 0xb25   :  { %2003 = vmatmul.mubr.f32.vlgmr.msra.gmra.mxu0 %v1936_v33 }
 0xb26   :  { %2145 = vmatpush1.msra.mxu0 %v4218_v13  ;;  %2208 = vmatprep.mubr.f32.mxu0 %v4905_v48  ;;  %v5126_v13 = vld [vmem:[#allocation56_spill] sm:$0xff] }
 0xb27   :  { %2146 = vmatprep.subr.mxu0 %v4222_v59  ;;  %v5127_v59 = vld [vmem:[#allocation57_spill] sm:$0xff] }
 0xb28   :  { %2147 = vmatpush1.msra.mxu0 %v5111_v43 }
 0xb29   :  { %2148 = vmatprep.subr.mxu0 %v5112_v49 }
 0xb2a   :  { %2149 = vmatpush1.msra.mxu0 %v5113_v52 }
 0xb2b   :  { %2150 = vmatprep.subr.mxu0 %v5114_v45 }
 0xb2c   :  { %2151 = vmatpush1.msra.mxu0 %v5115_v53 }
 0xb2d   :  { %2152 = vmatprep.subr.mxu0 %v5116_v1 }
 0xb2e   :  { %2153 = vmatpush1.msra.mxu0 %v5117_v56 }
 0xb2f   :  { %2154 = vmatprep.subr.mxu0 %v5118_v54 }
 0xb30   :  { %2155 = vmatpush1.msra.mxu0 %v5119_v6 }
 0xb31   :  { %2156 = vmatprep.subr.mxu0 %v5120_v50 }
 0xb32   :  { %2157 = vmatpush1.msra.mxu0 %v5121_v46 }
 0xb33   :  { %2158 = vmatprep.subr.mxu0 %v5122_v55 }
 0xb34   :  { %2159 = vmatpush1.msra.mxu0 %v5123_v8 }
 0xb35   :  { %2160 = vmatprep.subr.mxu0 %v5124_v9 }
 0xb36   :  { %2161 = vmatpush1.msra.mxu0 %v5125_v11 }
 0xb37   :  { %2162 = vmatprep.subr.mxu0 %v5126_v13 }
 0xb38   :  { %2163 = vmatpush1.msra.mxu0 %v5127_v59 }
 0xb39   :  { %2164 = vmatprep.subr.mxu0 %v5128_v60 }
 0xb3a   :  { %2165 = vmatpush1.msra.mxu0 %v5129_v32 }
 0xb3b   :  { %2166 = vmatprep.subr.mxu0 %v5130_v5 }
 0xb3c   :  { %2167 = vmatpush1.msra.mxu0 %v5131_v62 }
 0xb3d   :  { %2168 = vmatprep.subr.mxu0 %v5132_v42 }
 0xb3e   :  { %2169 = vmatpush1.msra.mxu0 %v5133_v36 }
 0xb3f   :  { %2170 = vmatprep.subr.mxu0 %v5134_v39 }
 0xb40   :  { %2171 = vmatpush1.msra.mxu0 %v5135_v4 }
 0xb41   :  { %2172 = vmatprep.subr.mxu0 %v5136_v7 }
 0xb42   :  { %2173 = vmatpush1.msra.mxu0 %v5137_v18 }
 0xb43   :  { %2174 = vmatprep.subr.mxu0 %v5138_v51 }
 0xb44   :  { %2175 = vmatpush1.msra.mxu0 %v5139_v3 }
 0xb45   :  { %2359 = vmatprep.subr.mxu0 %v3214_v16 }
 0xb6e   :  { %v1902_v34 = vpop.f32.mrf.mxu1 }
 0xb6f   :  { %v1903_v0 = vadd.f32 %v1902_v34, %v5140_v44 }
 0xb70   :  { %v1904_v15 = vpop.f32.mrf.mxu1 }
 0xb71   :  { %v2815_v35 = vmul.f32 -1.442695, %v1903_v0  ;;  %v1905_v10 = vadd.f32 %v1904_v15, %v5141_v61 }
 0xb73   :  { %3026 = vpow2.f32 %v2815_v35  ;;  %v2816_v31 = vmul.f32 -1.442695, %v1905_v10 }
 0xb74   :  { %3028 = vtanh.f32 %v1905_v10 }
 0xb7e   :  { %v2101_v47 = vpop.f32.mrf.mxu1 }
 0xb7f   :  { %v2108_v19 = vrot.slane %v2101_v47, 4 }
 0xb80   :  { %v3027_v17 = vpop.eup %3026  ;;  %v2103_v43 = vpop.f32.mrf.mxu1 }
 0xb81   :  { %v1913_v63 = vadd.f32 1.0, %v3027_v17  ;;  %v2112_v14 = vadd.f32 %v2108_v19, %v5142_v58  ;;  %v3029_v20 = vpop.eup %3028  ;;  %v2109_v52 = vrot.slane %v2103_v43, 4 }
 0xb83   :  { %3030 = vrcp.f32 %v1913_v63  ;;  %v2820_v57 = vmul.f32 -1.442695, %v2112_v14  ;;  %v2113_v1 = vadd.f32 %v2109_v52, %v5056_v12  ;;  %v3218_v52 = vld [vmem:[#allocation3 + $0x58] sm:$0xff] }
 0xb85   :  { %3032 = vpow2.f32 %v2820_v57  ;;  %v2821_v47 = vmul.f32 -1.442695, %v2113_v1 }
 0xb90   :  { %v3031_v21 = vpop.eup %3030 }
 0xb91   :  { %v1921_v22 = vmul.f32 %v3031_v21, %v3029_v20  ;;  %v1920_v54 = vmul.f32 %v3031_v21, %v4431_v41 }
 0xb92   :  { %v3033_v23 = vpop.eup %3032 }
 0xb93   :  { %1923 = vrot.lane.b32.xlu0 %v1921_v22, %s3391_s3  ;;  %v2120_v24 = vadd.f32 1.0, %v3033_v23 }
 0xb95   :  { %3034 = vrcp.f32 %v2120_v24 }
 0xba2   :  { %v3035_v26 = vpop.eup %3034 }
 0xba3   :  { %v2130_v38 = vmul.f32 %v3035_v26, %v2128_v25 }
 0xbe5   :  { %v2004_v27 = vpop.f32.mrf.mxu0 }
 0xbe6   :  { %v2005_v29 = vadd.f32 %v2004_v27, %v5143_v28 }
 0xbe7   :  { %v2006_v33 = vpop.f32.mrf.mxu0 }
 0xbe8   :  { %v2817_v30 = vmul.f32 -1.442695, %v2005_v29  ;;  %v2007_v49 = vadd.f32 %v2006_v33, %v4979_v40  ;;  %v3215_v33 = vld [vmem:[#allocation3 + $0x70] sm:$0xff] }
 0xbea   :  { %3036 = vpow2.f32 %v2817_v30  ;;  %v2818_v41 = vmul.f32 -1.442695, %v2007_v49 }
 0xbeb   :  { %3038 = vpow2.f32 %v2816_v31 }
 0xbec   :  { %3040 = vtanh.f32 %v2007_v49  ;;  %v3217_v49 = vld [vmem:[#allocation3 + $0x60] sm:$0xff] }
 0xbf7   :  { %v3037_v45 = vpop.eup %3036 }
 0xbf8   :  { %v2015_v53 = vadd.f32 1.0, %v3037_v45  ;;  %v3039_v37 = vpop.eup %3038  ;;  %v3219_v45 = vld [vmem:[#allocation3 + $0x50] sm:$0xff] }
 0xbf9   :  { %v1914_v56 = vadd.f32 1.0, %v3039_v37  ;;  %v3041_v50 = vpop.eup %3040  ;;  %v3222_v37 = vld [vmem:[#allocation3 + $0x38] sm:$0xff] }
 0xbfa   :  { %3042 = vrcp.f32 %v2015_v53  ;;  %v3220_v53 = vld [vmem:[#allocation3 + $0x48] sm:$0xff] }
 0xbfb   :  { %3044 = vtanh.f32 %v2113_v1  ;;  %v3221_v1 = vld [vmem:[#allocation3 + $0x40] sm:$0xff] }
 0xbfc   :  { %3046 = vrcp.f32 %v1914_v56  ;;  %v3223_v56 = vld [vmem:[#allocation3 + $0x30] sm:$0xff] }
 0xc05   :  { %v1924_v6 = vpop.permute.xlu0 %1923 }
 0xc06   :  { %v4539_v46 = vadd.f32 %v1924_v6, %v1920_v54  ;;  %v3224_v54 = vld [vmem:[#allocation3 + $0x28] sm:$0xff]  ;;  %v3225_v6 = vld [vmem:[#allocation3 + $0x20] sm:$0xff] }
 0xc07   :  { %v3043_v55 = vpop.eup %3042 }
 0xc08   :  { %3048 = vtanh.f32 %v4539_v46  ;;  %v2023_v16 = vmul.f32 %v3043_v55, %v3041_v50  ;;  %v3045_v34 = vpop.eup %3044  ;;  %v2022_v14 = vmul.f32 %v3043_v55, %v4438_v2  ;;  %v3226_v50 = vld [vmem:[#allocation3 + $0x18] sm:$0xff]  ;;  %v3227_v55 = vld [vmem:[#allocation3 + $0x10] sm:$0xff] }
 0xc09   :  { %v2131_v0 = vmul.f32 %v3045_v34, %v3035_v26  ;;  %v3047_v35 = vpop.eup %3046  ;;  %3050 = vpow2.f32 %v2818_v41  ;;  %v3233_v41 = vld [vmem:[#allocation5 + $0xe0] sm:$0xff] }
 0xc0a   :  { %2025 = vrot.lane.b32.xlu1 %v2023_v16, %s3391_s3  ;;  %3052 = vpow2.f32 %v2821_v47  ;;  %v3228_v16 = vld [vmem:[#allocation3 + $0x8] sm:$0xff]  ;;  %v3234_v47 = vld [vmem:[#allocation5 + $0xd8] sm:$0xff] }
 0xc0e   :  { %2133 = vrot.lane.b32.xlu1 %v2131_v0, %s3391_s3  ;;  %v3229_v0 = vld [vmem:[#allocation3] sm:$0xff] }
 0xc15   :  { %v3049_v15 = vpop.eup %3048 }
 0xc16   :  { %v1928_v10 = vmul.f32 %v3049_v15, %v3047_v35  ;;  %v3051_v19 = vpop.eup %3050  ;;  %v3230_v35 = vld [vmem:[#allocation5 + $0xf8] sm:$0xff]  ;;  %v3231_v15 = vld [vmem:[#allocation5 + $0xf0] sm:$0xff] }
 0xc17   :  { %v2016_v17 = vadd.f32 1.0, %v3051_v19  ;;  %v3053_v63 = vpop.eup %3052  ;;  %v3235_v19 = vld [vmem:[#allocation5 + $0xd0] sm:$0xff] }
 0xc18   :  { %2140 = vrot.lane.b32.xlu0 %v1928_v10, %s3391_s3  ;;  %v2121_v21 = vadd.f32 1.0, %v3053_v63  ;;  %v3232_v10 = vld [vmem:[#allocation5 + $0xe8] sm:$0xff]  ;;  %v3237_v63 = vld [vmem:[#allocation5 + $0xc0] sm:$0xff] }
 0xc19   :  { %3054 = vrcp.f32 %v2016_v17  ;;  %v3236_v17 = vld [vmem:[#allocation5 + $0xc8] sm:$0xff] }
 0xc26   :  { %v3055_v24 = vpop.eup %3054 }
 0xc7c   :  { %v2026_v57 = vpop.permute.xlu1 %2025 }
 0xc7d   :  { %v4546_v20 = vadd.f32 %v2026_v57, %v2022_v14  ;;  %v3238_v14 = vld [vmem:[#allocation5 + $0xb8] sm:$0xff]  ;;  %v3239_v57 = vld [vmem:[#allocation5 + $0xb0] sm:$0xff] }
 0xc7f   :  { %3056 = vtanh.f32 %v4546_v20 }
 0xc80   :  { %v2134_v22 = vpop.permute.xlu1 %2133  ;;  %3058 = vrcp.f32 %v2121_v21  ;;  %v3240_v21 = vld [vmem:[#allocation5 + $0xa8] sm:$0xff] }
 0xc81   :  { %v4549_v23 = vadd.f32 %v2134_v22, %v2130_v38  ;;  %v3216_v38 = vld [vmem:[#allocation3 + $0x68] sm:$0xff]  ;;  %v3241_v22 = vld [vmem:[#allocation5 + $0xa0] sm:$0xff] }
 0xc83   :  { %3060 = vtanh.f32 %v4549_v23 }
 0xc8a   :  { %v2141_v27 = vpop.permute.xlu0 %2140 }
 0xc8c   :  { %v3057_v25 = vpop.eup %3056 }
 0xc8d   :  { %v2030_v26 = vmul.f32 %v3057_v25, %v3055_v24  ;;  %v3059_v29 = vpop.eup %3058  ;;  %v3242_v24 = vld [vmem:[#allocation5 + $0x98] sm:$0xff]  ;;  %v3243_v25 = vld [vmem:[#allocation5 + $0x90] sm:$0xff] }
 0xc8f   :  { %v2143_v2 = vsel %vm292_vm2, %v2030_v26, %v2141_v27  ;;  %v2238_v30 = vrot.slane %v2030_v26, 4  ;;  %v3244_v26 = vld [vmem:[#allocation5 + $0x88] sm:$0xff]  ;;  %v3245_v27 = vld [vmem:[#allocation5 + $0x80] sm:$0xff] }
 0xc90   :  { %v3061_v31 = vpop.eup %3060  ;;  %2209 = vmatmul.mubr.f32.vlgmr.msra.gmra.mxu0 %v2143_v2  ;;  %v3247_v2 = vld [vmem:[#allocation5 + $0x70] sm:$0xff] }
 0xc91   :  { %2360 = vmatpush1.msra.mxu0 %v3215_v33  ;;  %2239 = vrot.lane.b32.xlu0 %v2238_v30, %s3391_s3  ;;  %v4554_v43 = vmul.f32 %v3061_v31, %v3059_v29  ;;  %v3246_v29 = vld [vmem:[#allocation5 + $0x78] sm:$0xff]  ;;  %v3248_v30 = vld [vmem:[#allocation5 + $0x68] sm:$0xff]  ;;  %v3249_v31 = vld [vmem:[#allocation5 + $0x60] sm:$0xff] }
 0xc92   :  { %2361 = vmatprep.subr.mxu0 %v3216_v38  ;;  %2407 = vmatprep.mubr.f32.mxu0 %v4905_v48  ;;  %v3250_v33 = vld [vmem:[#allocation5 + $0x58] sm:$0xff]  ;;  %v3251_v38 = vld [vmem:[#allocation5 + $0x50] sm:$0xff] }
 0xc93   :  { %2362 = vmatpush1.msra.mxu0 %v3217_v49  ;;  %v2340_v34 = vrot.slane %v4554_v43, 4  ;;  %v3252_v49 = vld [vmem:[#allocation5 + $0x48] sm:$0xff] }
 0xc94   :  { %2363 = vmatprep.subr.mxu0 %v3218_v52  ;;  %v3253_v52 = vld [vmem:[#allocation5 + $0x40] sm:$0xff] }
 0xc95   :  { %2364 = vmatpush1.msra.mxu0 %v3219_v45  ;;  %v3254_v45 = vld [vmem:[#allocation5 + $0x38] sm:$0xff] }
 0xc96   :  { %2365 = vmatprep.subr.mxu0 %v3220_v53  ;;  %v3255_v53 = vld [vmem:[#allocation5 + $0x30] sm:$0xff] }
 0xc97   :  { %2366 = vmatpush1.msra.mxu0 %v3221_v1  ;;  %v3256_v1 = vld [vmem:[#allocation5 + $0x28] sm:$0xff] }
 0xc98   :  { %2367 = vmatprep.subr.mxu0 %v3222_v37  ;;  %v3257_v37 = vld [vmem:[#allocation5 + $0x20] sm:$0xff] }
 0xc99   :  { %2368 = vmatpush1.msra.mxu0 %v3223_v56  ;;  %v3258_v56 = vld [vmem:[#allocation5 + $0x18] sm:$0xff] }
 0xc9a   :  { %2369 = vmatprep.subr.mxu0 %v3224_v54  ;;  %v3259_v54 = vld [vmem:[#allocation5 + $0x10] sm:$0xff] }
 0xc9b   :  { %2370 = vmatpush1.msra.mxu0 %v3225_v6  ;;  %v3260_v6 = vld [vmem:[#allocation5 + $0x8] sm:$0xff] }
 0xc9c   :  { %2371 = vmatprep.subr.mxu0 %v3226_v50  ;;  %v3261_v50 = vld [vmem:[#allocation5] sm:$0xff] }
 0xc9d   :  { %2372 = vmatpush1.msra.mxu0 %v3227_v55 }
 0xc9e   :  { %2373 = vmatprep.subr.mxu0 %v3228_v16 }
 0xc9f   :  { %2374 = vmatpush1.msra.mxu0 %v3229_v0  ;;  %v4562_v0 = vld [vmem:[#allocation7 + $0xf0] sm:$0xff] }
 0xca0   :  { %2826 = vmatmul.mubr.msk.f32.vlgmr.msra.gmra.mxu0 %vm292_vm2, %v2340_v34  ;;  %2554 = vmatprep.subr.mxu0 %v3230_v35  ;;  %v4566_v35 = vld [vmem:[#allocation7 + $0xe8] sm:$0xff] }
 0xca1   :  { %2555 = vmatpush1.msra.mxu0 %v3231_v15  ;;  %2618 = vmatprep.mubr.f32.mxu0 %v4905_v48  ;;  %v4569_v15 = vld [vmem:[#allocation7 + $0xe0] sm:$0xff] }
 0xca2   :  { %2556 = vmatprep.subr.mxu0 %v3232_v10  ;;  %v4572_v10 = vld [vmem:[#allocation7 + $0xd8] sm:$0xff] }
 0xca3   :  { %2557 = vmatpush1.msra.mxu0 %v3233_v41  ;;  %v4578_v41 = vld [vmem:[#allocation7 + $0xc8] sm:$0xff] }
 0xca4   :  { %2558 = vmatprep.subr.mxu0 %v3234_v47  ;;  %v4581_v47 = vld [vmem:[#allocation7 + $0xc0] sm:$0xff] }
 0xca5   :  { %2559 = vmatpush1.msra.mxu0 %v3235_v19  ;;  %v4584_v19 = vld [vmem:[#allocation7 + $0xb8] sm:$0xff] }
 0xca6   :  { %2560 = vmatprep.subr.mxu0 %v3236_v17  ;;  %v4587_v17 = vld [vmem:[#allocation7 + $0xb0] sm:$0xff] }
 0xca7   :  { %2561 = vmatpush1.msra.mxu0 %v3237_v63  ;;  %v4590_v63 = vld [vmem:[#allocation7 + $0xa8] sm:$0xff] }
 0xca8   :  { %2562 = vmatprep.subr.mxu0 %v3238_v14  ;;  %v4593_v14 = vld [vmem:[#allocation7 + $0xa0] sm:$0xff] }
 0xca9   :  { %2563 = vmatpush1.msra.mxu0 %v3239_v57  ;;  %v4596_v57 = vld [vmem:[#allocation7 + $0x98] sm:$0xff] }
 0xcaa   :  { %2564 = vmatprep.subr.mxu0 %v3240_v21  ;;  %v4599_v21 = vld [vmem:[#allocation7 + $0x90] sm:$0xff] }
 0xcab   :  { %2565 = vmatpush1.msra.mxu0 %v3241_v22  ;;  %v4602_v22 = vld [vmem:[#allocation7 + $0x88] sm:$0xff] }
 0xcac   :  { %2566 = vmatprep.subr.mxu0 %v3242_v24  ;;  %v3276_v24 = vld [vmem:[#allocation7 + $0xf8] sm:$0xff] }
 0xcad   :  { %2567 = vmatpush1.msra.mxu0 %v3243_v25 }
 0xcae   :  { %2568 = vmatprep.subr.mxu0 %v3244_v26 }
 0xcaf   :  { %2569 = vmatpush1.msra.mxu0 %v3245_v27 }
 0xcb0   :  { %2570 = vmatprep.subr.mxu0 %v3246_v29 }
 0xcb1   :  { %2571 = vmatpush1.msra.mxu0 %v3247_v2 }
 0xcb2   :  { %2572 = vmatprep.subr.mxu0 %v3248_v30 }
 0xcb3   :  { %2573 = vmatpush1.msra.mxu0 %v3249_v31 }
 0xcb4   :  { %2574 = vmatprep.subr.mxu0 %v3250_v33 }
 0xcb5   :  { %2575 = vmatpush1.msra.mxu0 %v3251_v38 }
 0xcb6   :  { %2576 = vmatprep.subr.mxu0 %v3252_v49 }
 0xcb7   :  { %2577 = vmatpush1.msra.mxu0 %v3253_v52 }
 0xcb8   :  { %2578 = vmatprep.subr.mxu0 %v3254_v45 }
 0xcb9   :  { %2579 = vmatpush1.msra.mxu0 %v3255_v53 }
 0xcba   :  { %2580 = vmatprep.subr.mxu0 %v3256_v1 }
 0xcbb   :  { %2581 = vmatpush1.msra.mxu0 %v3257_v37 }
 0xcbc   :  { %2582 = vmatprep.subr.mxu0 %v3258_v56 }
 0xcbd   :  { %2583 = vmatpush1.msra.mxu0 %v3259_v54  ;;  %v2436_v54 = vrot.slane %v4549_v23, 6 }
 0xcbe   :  { %2584 = vmatprep.subr.mxu0 %v3260_v6 }
 0xcbf   :  { %2585 = vmatpush1.msra.mxu0 %v3261_v50 }
 0xd03   :  { %v2240_v55 = vpop.permute.xlu0 %2239 }
 0xd04   :  { %v2242_v16 = vsel %vm292_vm2, %v4554_v43, %v2240_v55  ;;  %v4575_v43 = vld [vmem:[#allocation7 + $0xd0] sm:$0xff] }
 0xd05   :  { %v2244_v34 = vrot.slane %v2242_v16, 4 }
 0xd07   :  { %2311 = vmatmul.mubr.f32.vlgmr.msra.gmra.mxu1 %v2244_v34 }
 0xd08   :  { %2453 = vmatpush1.msra.mxu1 %v4562_v0  ;;  %2516 = vmatprep.mubr.f32.mxu1 %v4905_v48 }
 0xd09   :  { %2454 = vmatprep.subr.mxu1 %v4566_v35 }
 0xd0a   :  { %2455 = vmatpush1.msra.mxu1 %v4569_v15 }
 0xd0b   :  { %2456 = vmatprep.subr.mxu1 %v4572_v10 }
 0xd0c   :  { %2457 = vmatpush1.msra.mxu1 %v4575_v43 }
 0xd0d   :  { %2458 = vmatprep.subr.mxu1 %v4578_v41 }
 0xd0e   :  { %2459 = vmatpush1.msra.mxu1 %v4581_v47 }
 0xd0f   :  { %2460 = vmatprep.subr.mxu1 %v4584_v19 }
 0xd10   :  { %2461 = vmatpush1.msra.mxu1 %v4587_v17 }
 0xd11   :  { %2462 = vmatprep.subr.mxu1 %v4590_v63 }
 0xd12   :  { %2463 = vmatpush1.msra.mxu1 %v4593_v14 }
 0xd13   :  { %2464 = vmatprep.subr.mxu1 %v4596_v57 }
 0xd14   :  { %2465 = vmatpush1.msra.mxu1 %v4599_v21 }
 0xd15   :  { %2466 = vmatprep.subr.mxu1 %v4602_v22 }
 0xd16   :  { %2467 = vmatpush1.msra.mxu1 %v5123_v8 }
 0xd17   :  { %2468 = vmatprep.subr.mxu1 %v5124_v9 }
 0xd18   :  { %2469 = vmatpush1.msra.mxu1 %v5125_v11 }
 0xd19   :  { %2470 = vmatprep.subr.mxu1 %v5126_v13 }
 0xd1a   :  { %2471 = vmatpush1.msra.mxu1 %v5127_v59 }
 0xd1b   :  { %2472 = vmatprep.subr.mxu1 %v5128_v60 }
 0xd1c   :  { %2473 = vmatpush1.msra.mxu1 %v5129_v32 }
 0xd1d   :  { %2474 = vmatprep.subr.mxu1 %v5130_v5 }
 0xd1e   :  { %2475 = vmatpush1.msra.mxu1 %v5131_v62 }
 0xd1f   :  { %2476 = vmatprep.subr.mxu1 %v5132_v42 }
 0xd20   :  { %2477 = vmatpush1.msra.mxu1 %v5133_v36 }
 0xd21   :  { %2478 = vmatprep.subr.mxu1 %v5134_v39 }
 0xd22   :  { %2479 = vmatpush1.msra.mxu1 %v5135_v4 }
 0xd23   :  { %2480 = vmatprep.subr.mxu1 %v5136_v7 }
 0xd24   :  { %2481 = vmatpush1.msra.mxu1 %v5137_v18 }
 0xd25   :  { %2482 = vmatprep.subr.mxu1 %v5138_v51 }
 0xd26   :  { %2483 = vmatpush1.msra.mxu1 %v5139_v3 }
 0xd27   :  { %2652 = vmatprep.subr.mxu1 %v3276_v24 }
 0xd50   :  { %v2210_v25 = vpop.f32.mrf.mxu0 }
 0xd51   :  { %v2211_v26 = vadd.f32 %v2210_v25, %v5140_v44 }
 0xd52   :  { %v2212_v29 = vpop.f32.mrf.mxu0 }
 0xd53   :  { %v2822_v27 = vmul.f32 -1.442695, %v2211_v26  ;;  %v2213_v2 = vadd.f32 %v2212_v29, %v5141_v61 }
 0xd55   :  { %3062 = vpow2.f32 %v2822_v27  ;;  %v2823_v34 = vmul.f32 -1.442695, %v2213_v2 }
 0xd56   :  { %3064 = vtanh.f32 %v2213_v2 }
 0xd60   :  { %v2409_v30 = vpop.f32.mrf.mxu0 }
 0xd61   :  { %v2416_v31 = vrot.slane %v2409_v30, 2 }
 0xd62   :  { %v3063_v33 = vpop.eup %3062  ;;  %v2411_v25 = vpop.f32.mrf.mxu0 }
 0xd63   :  { %v2221_v38 = vadd.f32 1.0, %v3063_v33  ;;  %v2420_v49 = vadd.f32 %v2416_v31, %v5142_v58  ;;  %v3065_v45 = vpop.eup %3064  ;;  %v2417_v27 = vrot.slane %v2411_v25, 2 }
 0xd65   :  { %3066 = vrcp.f32 %v2221_v38  ;;  %v2827_v52 = vmul.f32 -1.442695, %v2420_v49  ;;  %v2421_v31 = vadd.f32 %v2417_v27, %v5056_v12 }
 0xd67   :  { %3068 = vpow2.f32 %v2827_v52 }
 0xd72   :  { %v3067_v53 = vpop.eup %3066 }
 0xd73   :  { %v2229_v1 = vmul.f32 %v3067_v53, %v3065_v45  ;;  %v2228_v38 = vmul.f32 %v3067_v53, %v4539_v46  ;;  %v2828_v53 = vmul.f32 -1.442695, %v2421_v31 }
 0xd74   :  { %v3069_v37 = vpop.eup %3068 }
 0xd75   :  { %2231 = vrot.lane.b32.xlu1 %v2229_v1, %s3391_s3  ;;  %v2428_v56 = vadd.f32 1.0, %v3069_v37 }
 0xd77   :  { %3070 = vrcp.f32 %v2428_v56 }
 0xd84   :  { %v3071_v6 = vpop.eup %3070 }
 0xd85   :  { %v2438_v50 = vmul.f32 %v3071_v6, %v2436_v54 }
 0xdc7   :  { %v2312_v55 = vpop.f32.mrf.mxu1 }
 0xdc8   :  { %v2313_v16 = vadd.f32 %v2312_v55, %v5143_v28 }
 0xdc9   :  { %v2314_v24 = vpop.f32.mrf.mxu1 }
 0xdca   :  { %v2824_v58 = vmul.f32 -1.442695, %v2313_v16  ;;  %v2315_v26 = vadd.f32 %v2314_v24, %v4979_v40 }
 0xdcc   :  { %3072 = vpow2.f32 %v2824_v58  ;;  %v2825_v46 = vmul.f32 -1.442695, %v2315_v26 }
 0xdcd   :  { %3074 = vpow2.f32 %v2823_v34 }
 0xdce   :  { %3076 = vtanh.f32 %v2315_v26 }
 0xdd9   :  { %v3073_v29 = vpop.eup %3072 }
 0xdda   :  { %v2323_v30 = vadd.f32 1.0, %v3073_v29  ;;  %v3075_v23 = vpop.eup %3074 }
 0xddb   :  { %v2222_v33 = vadd.f32 1.0, %v3075_v23  ;;  %v3077_v52 = vpop.eup %3076 }
 0xddc   :  { %3078 = vrcp.f32 %v2323_v30 }
 0xddd   :  { %3080 = vtanh.f32 %v2421_v31 }
 0xdde   :  { %3082 = vrcp.f32 %v2222_v33 }
 0xde7   :  { %v2232_v49 = vpop.permute.xlu1 %2231 }
 0xde8   :  { %v4631_v2 = vadd.f32 %v2232_v49, %v2228_v38 }
 0xde9   :  { %v3079_v45 = vpop.eup %3078 }
 0xdea   :  { %3084 = vtanh.f32 %v4631_v2  ;;  %v2331_v1 = vmul.f32 %v3079_v45, %v3077_v52  ;;  %v3081_v37 = vpop.eup %3080  ;;  %v2330_v24 = vmul.f32 %v3079_v45, %v4546_v20 }
 0xdeb   :  { %v2439_v56 = vmul.f32 %v3081_v37, %v3071_v6  ;;  %v3083_v12 = vpop.eup %3082  ;;  %3086 = vpow2.f32 %v2825_v46 }
 0xdec   :  { %2333 = vrot.lane.b32.xlu0 %v2331_v1, %s3391_s3  ;;  %3088 = vpow2.f32 %v2828_v53 }
 0xdf0   :  { %2441 = vrot.lane.b32.xlu0 %v2439_v56, %s3391_s3 }
 0xdf7   :  { %v3085_v54 = vpop.eup %3084 }
 0xdf8   :  { %v2236_v55 = vmul.f32 %v3085_v54, %v3083_v12  ;;  %v3087_v16 = vpop.eup %3086 }
 0xdf9   :  { %v2324_v58 = vadd.f32 1.0, %v3087_v16  ;;  %v3089_v34 = vpop.eup %3088 }
 0xdfa   :  { %2448 = vrot.lane.b32.xlu1 %v2236_v55, %s3391_s3  ;;  %v2429_v6 = vadd.f32 1.0, %v3089_v34 }
 0xdfb   :  { %3090 = vrcp.f32 %v2324_v58 }
 0xe08   :  { %v3091_v26 = vpop.eup %3090 }
 0xe5e   :  { %v2334_v25 = vpop.permute.xlu0 %2333 }
 0xe5f   :  { %v4638_v27 = vadd.f32 %v2334_v25, %v2330_v24 }
 0xe61   :  { %3092 = vtanh.f32 %v4638_v27 }
 0xe62   :  { %v2442_v29 = vpop.permute.xlu0 %2441  ;;  %3094 = vrcp.f32 %v2429_v6 }
 0xe63   :  { %v2444_v30 = vadd.f32 %v2442_v29, %v2438_v50 }
 0xe65   :  { %3096 = vtanh.f32 %v2444_v30 }
 0xe6c   :  { %v2449_v33 = vpop.permute.xlu1 %2448 }
 0xe6e   :  { %v3093_v31 = vpop.eup %3092 }
 0xe6f   :  { %v2338_v23 = vmul.f32 %v3093_v31, %v3091_v26  ;;  %v3095_v38 = vpop.eup %3094 }
 0xe71   :  { %v2451_v49 = vsel %vm292_vm2, %v2338_v23, %v2449_v33  ;;  %v2546_v52 = vrot.slane %v2338_v23, 2 }
 0xe72   :  { %v3097_v20 = vpop.eup %3096  ;;  %2517 = vmatmul.mubr.f32.vlgmr.msra.gmra.mxu1 %v2451_v49 }
 0xe73   :  { %2547 = vrot.lane.b32.xlu1 %v2546_v52, %s3391_s3  ;;  %v2446_v45 = vmul.f32 %v3097_v20, %v3095_v38  ;;  %2653 = vmatpush1.msra.mxu1 %v4562_v0  ;;  %v2835_v52 = vld [vmem:[#allocation10] ss:$0 sm:$0xff] }
 0xe74   :  { %2654 = vmatprep.subr.mxu1 %v4566_v35  ;;  %2716 = vmatprep.mubr.f32.mxu1 %v4905_v48 }
 0xe75   :  { %2655 = vmatpush1.msra.mxu1 %v4569_v15 }
 0xe76   :  { %2656 = vmatprep.subr.mxu1 %v4572_v10 }
 0xe77   :  { %2657 = vmatpush1.msra.mxu1 %v4575_v43 }
 0xe78   :  { %2658 = vmatprep.subr.mxu1 %v4578_v41 }
 0xe79   :  { %2659 = vmatpush1.msra.mxu1 %v4581_v47 }
 0xe7a   :  { %2660 = vmatprep.subr.mxu1 %v4584_v19 }
 0xe7b   :  { %2661 = vmatpush1.msra.mxu1 %v4587_v17 }
 0xe7c   :  { %2662 = vmatprep.subr.mxu1 %v4590_v63 }
 0xe7d   :  { %2663 = vmatpush1.msra.mxu1 %v4593_v14 }
 0xe7e   :  { %2664 = vmatprep.subr.mxu1 %v4596_v57 }
 0xe7f   :  { %2665 = vmatpush1.msra.mxu1 %v4599_v21 }
 0xe80   :  { %2666 = vmatprep.subr.mxu1 %v4602_v22 }
 0xe81   :  { %2667 = vmatpush1.msra.mxu1 %v5123_v8 }
 0xe82   :  { %2668 = vmatprep.subr.mxu1 %v5124_v9 }
 0xe83   :  { %2669 = vmatpush1.msra.mxu1 %v5125_v11 }
 0xe84   :  { %2670 = vmatprep.subr.mxu1 %v5126_v13 }
 0xe85   :  { %2671 = vmatpush1.msra.mxu1 %v5127_v59 }
 0xe86   :  { %2672 = vmatprep.subr.mxu1 %v5128_v60 }
 0xe87   :  { %2673 = vmatpush1.msra.mxu1 %v5129_v32 }
 0xe88   :  { %2674 = vmatprep.subr.mxu1 %v5130_v5 }
 0xe89   :  { %2675 = vmatpush1.msra.mxu1 %v5131_v62 }
 0xe8a   :  { %2676 = vmatprep.subr.mxu1 %v5132_v42 }
 0xe8b   :  { %2677 = vmatpush1.msra.mxu1 %v5133_v36 }
 0xe8c   :  { %2678 = vmatprep.subr.mxu1 %v5134_v39 }
 0xe8d   :  { %2679 = vmatpush1.msra.mxu1 %v5135_v4 }
 0xe8e   :  { %2680 = vmatprep.subr.mxu1 %v5136_v7 }
 0xe8f   :  { %2681 = vmatpush1.msra.mxu1 %v5137_v18 }
 0xe90   :  { %2682 = vmatprep.subr.mxu1 %v5138_v51 }
 0xe91   :  { %2683 = vmatpush1.msra.mxu1 %v5139_v3 }
 0xee5   :  { %v2548_v48 = vpop.permute.xlu1 %2547 }
 0xee6   :  { %v2550_v8 = vsel %vm292_vm2, %v2446_v45, %v2548_v48 }
 0xee7   :  { %v2552_v9 = vrot.slane %v2550_v8, 6  ;;  %v2836_v8 = vld [vmem:[#allocation2] ss:$0 sm:$0xff] }
 0xee9   :  { %2619 = vmatmul.mubr.f32.vlgmr.msra.gmra.mxu0 %v2552_v9 }
 0xf32   :  { %v2518_v11 = vpop.f32.mrf.mxu1 }
 0xf33   :  { %v2519_v13 = vadd.f32 %v2518_v11, %v5140_v44 }
 0xf34   :  { %v2520_v60 = vpop.f32.mrf.mxu1 }
 0xf35   :  { %v2829_v59 = vmul.f32 -1.442695, %v2519_v13  ;;  %v2521_v32 = vadd.f32 %v2520_v60, %v5141_v61 }
 0xf37   :  { %3098 = vpow2.f32 %v2829_v59  ;;  %v2830_v51 = vmul.f32 -1.442695, %v2521_v32 }
 0xf38   :  { %3100 = vtanh.f32 %v2521_v32 }
 0xf44   :  { %v3099_v5 = vpop.eup %3098 }
 0xf45   :  { %v2529_v62 = vadd.f32 1.0, %v3099_v5  ;;  %v3101_v42 = vpop.eup %3100 }
 0xf47   :  { %3102 = vrcp.f32 %v2529_v62 }
 0xf54   :  { %v3103_v36 = vpop.eup %3102 }
 0xf55   :  { %v2537_v39 = vmul.f32 %v3103_v36, %v3101_v42  ;;  %v2536_v41 = vmul.f32 %v3103_v36, %v4631_v2 }
 0xf57   :  { %2539 = vrot.lane.b32.xlu0 %v2537_v39, %s3391_s3 }
 0xfa9   :  { %v2620_v4 = vpop.f32.mrf.mxu0 }
 0xfaa   :  { %v2621_v7 = vadd.f32 %v2620_v4, %v5143_v28 }
 0xfab   :  { %v2622_v3 = vpop.f32.mrf.mxu0 }
 0xfac   :  { %v2831_v18 = vmul.f32 -1.442695, %v2621_v7  ;;  %v2623_v0 = vadd.f32 %v2622_v3, %v4979_v40 }
 0xfae   :  { %3104 = vpow2.f32 %v2831_v18  ;;  %v2832_v21 = vmul.f32 -1.442695, %v2623_v0 }
 0xfaf   :  { %3106 = vpow2.f32 %v2830_v51 }
 0xfb0   :  { %3108 = vtanh.f32 %v2623_v0 }
 0xfbb   :  { %v3105_v35 = vpop.eup %3104 }
 0xfbc   :  { %v2631_v15 = vadd.f32 1.0, %v3105_v35  ;;  %v3107_v10 = vpop.eup %3106 }
 0xfbd   :  { %v2530_v43 = vadd.f32 1.0, %v3107_v10  ;;  %v3109_v19 = vpop.eup %3108 }
 0xfbe   :  { %3110 = vrcp.f32 %v2631_v15 }
 0xfbf   :  { %3112 = vrcp.f32 %v2530_v43 }
 0xfc9   :  { %v2540_v47 = vpop.permute.xlu0 %2539 }
 0xfca   :  { %v2542_v17 = vadd.f32 %v2540_v47, %v2536_v41 }
 0xfcb   :  { %v3111_v63 = vpop.eup %3110 }
 0xfcc   :  { %3114 = vtanh.f32 %v2542_v17  ;;  %v2639_v28 = vmul.f32 %v3111_v63, %v3109_v19  ;;  %v3113_v14 = vpop.eup %3112  ;;  %v2638_v2 = vmul.f32 %v3111_v63, %v4638_v27 }
 0xfcd   :  { %3116 = vpow2.f32 %v2832_v21 }
 0xfce   :  { %2641 = vrot.lane.b32.xlu1 %v2639_v28, %s3391_s3 }
 0xfd9   :  { %v3115_v57 = vpop.eup %3114 }
 0xfda   :  { %v2544_v40 = vmul.f32 %v3115_v57, %v3113_v14  ;;  %v3117_v22 = vpop.eup %3116 }
 0xfdb   :  { %v2632_v50 = vadd.f32 1.0, %v3117_v22 }
 0xfdc   :  { %2648 = vrot.lane.b32.xlu0 %v2544_v40, %s3391_s3 }
 0xfdd   :  { %3118 = vrcp.f32 %v2632_v50 }
 0xfea   :  { %v3119_v56 = vpop.eup %3118 }
0x1040   :  { %v2642_v1 = vpop.permute.xlu1 %2641 }
0x1041   :  { %v2644_v37 = vadd.f32 %v2642_v1, %v2638_v2 }
0x1043   :  { %3120 = vtanh.f32 %v2644_v37 }
0x104e   :  { %v2649_v55 = vpop.permute.xlu0 %2648 }
0x1050   :  { %v3121_v12 = vpop.eup %3120 }
0x1051   :  { %v2646_v54 = vmul.f32 %v3121_v12, %v3119_v56 }
0x1053   :  { %v2651_v46 = vsel %vm292_vm2, %v2646_v54, %v2649_v55 }
0x1054   :  { %2717 = vmatmul.mubr.f32.vlgmr.msra.gmra.mxu1 %v2651_v46 }
0x1114   :  { %v2718_v53 = vpop.f32.mrf.mxu1 }
0x1115   :  { %v2719_v16 = vadd.f32 %v2718_v53, %v5140_v44 }
0x1116   :  { %v2720_v34 = vpop.f32.mrf.mxu1 }
0x1117   :  { %v2833_v58 = vmul.f32 -1.442695, %v2719_v16  ;;  %v2721_v24 = vadd.f32 %v2720_v34, %v5141_v61 }
0x1119   :  { %3122 = vpow2.f32 %v2833_v58  ;;  %v2834_v26 = vmul.f32 -1.442695, %v2721_v24 }
0x111a   :  { %3124 = vtanh.f32 %v2721_v24 }
0x1126   :  { %v3123_v25 = vpop.eup %3122 }
0x1127   :  { %v2729_v27 = vadd.f32 1.0, %v3123_v25  ;;  %v3125_v6 = vpop.eup %3124 }
0x1129   :  { %3126 = vrcp.f32 %v2729_v27 }
0x112a   :  { %3128 = vpow2.f32 %v2834_v26 }
0x1136   :  { %v3127_v29 = vpop.eup %3126 }
0x1137   :  { %v2737_v30 = vmul.f32 %v3127_v29, %v3125_v6  ;;  %v3129_v31 = vpop.eup %3128  ;;  %v2736_v33 = vmul.f32 %v3127_v29, %v2542_v17 }
0x1138   :  { %v2730_v23 = vadd.f32 1.0, %v3129_v31 }
0x1139   :  { %2739 = vrot.lane.b32.xlu1 %v2737_v30, %s3391_s3 }
0x113a   :  { %3130 = vrcp.f32 %v2730_v23 }
0x1147   :  { %v3131_v49 = vpop.eup %3130 }
0x11ab   :  { %v2740_v44 = vpop.permute.xlu1 %2739 }
0x11ac   :  { %v2742_v38 = vadd.f32 %v2740_v44, %v2736_v33 }
0x11ae   :  { %3132 = vtanh.f32 %v2742_v38 }
0x11bb   :  { %v3133_v61 = vpop.eup %3132 }
0x11bc   :  { %v2744_v20 = vmul.f32 %v3133_v61, %v3131_v49 }
0x11be   :  { %v2752_v45 = vmul.f32 %v2835_v52, %v2744_v20 }
0x11c0   :  { %v2754_v48 = vsel %vm2753_vm3, %v2752_v45, 0.0 }
0x11c1   :  { %2755 = vadd.xlane.f32.xlu0 %v2754_v48 }
0x124a   :  { %v2756_v9 = vpop.xlane.xlu0 %2755 }
0x124b   :  { %v2764_v11 = vadd.f32 %v2836_v8, %v2756_v9 }
0x124d   :  { %2766 = vst.msk [vmem:[%s4702_s10] sm:$0x3] %vm2765_vm4, %v2764_v11 }
0x124e   :  { %2771 = vsyncpa [#allocation4], 1 }
0x124f   :  { %2772 = vsyncpa [#allocation6], 1 }
0x1250   :  { %2773 = vsyncpa [#allocation9], 1 }

</bundles_post_ra>
